<compile_context>
chip_gen: v7x
topology: tpu7x:2x2x1
jax: 0.10.0
libtpu: 0.0.40
codegen_flags: <defaults>
</compile_context>

<pallas_src>
import numpy as np
import jax
import jax.numpy as jnp
from jax.experimental import pallas as pl
from jax.experimental.pallas import tpu as pltpu


# ----------------------------- model configuration -----------------------------
HASH_TABLE_LENGTH = 512        # small synthetic size (reference default is 512*512)
IN_FEATURES = 3
HIDDEN_FEATURES = 64
HIDDEN_LAYERS = 2
OUT_FEATURES = 3
FIRST_OMEGA_0 = 6.0
HIDDEN_OMEGA_0 = 6.0


# ----------------------------- Pallas kernel -----------------------------------
def make_diner_kernel(num_hidden_layers, in_features):
    """Builds the feature-major DINER MLP kernel for `num_hidden_layers` hidden
    SineLayers (kernel structure now follows the config, not a hardcoded 2)."""

    def kernel(*refs):
        # refs = (x_ref, w1, b1, w_h1, b_h1, ..., w_fin, b_fin, o_ref)
        x_ref, o_ref = refs[0], refs[-1]
        w_refs = refs[1:-1:2]
        b_refs = refs[2:-1:2]

        x = x_ref[...]                       # (IN, TN)  f32, rows on lane axis
        w1 = w_refs[0][...]                  # (H, IN)   f32, omega folded in

        # --- layer 1 (K = in_features, tiny): VPU broadcast-FMAs, off the MXU --
        h = b_refs[0][...]                   # (H, 1) -> broadcasts over lanes
        for k in range(in_features):
            h = h + w1[:, k:k + 1] * x[k:k + 1, :]
        h = jnp.sin(h)                       # (H, TN) f32, omega already folded
        # TODO(synk): if bundle dumps show the VALU slot saturated by the sin
        # lowering, replace jnp.sin with a one-step range-reduced odd polynomial
        # (SIREN pre-activations stay within ~|x| <= 20).

        # --- hidden sine layers: bf16 MXU inputs, f32 accumulate / elementwise -
        # TODO(synk): on v6e/v7x the bias+sin chain could run in bf16 (halves
        # vld/vst bytes on the (H, TN) intermediates); kept f32 because the
        # compounded bf16 error sits too close to the 2e-2 tolerance.
        for li in range(1, 1 + num_hidden_layers):
            h = jnp.dot(w_refs[li][...], h.astype(jnp.bfloat16),
                        preferred_element_type=jnp.float32) + b_refs[li][...]
            h = jnp.sin(h)

        # --- final linear + clamp to [-1, 1] -----------------------------------
        y = jnp.dot(w_refs[-1][...], h.astype(jnp.bfloat16),
                    preferred_element_type=jnp.float32) + b_refs[-1][...]
        o_ref[...] = jnp.clip(y, -1.0, 1.0)

    return kernel


def _pick_lane_tile(n):
    """Lane tile (multiple of 128) dividing n.

    * Capped at 4096: double-buffered I/O tiles plus the (H, TN) f32
      intermediates stay well inside v5e's 16 MiB default scoped VMEM and v7x's
      64 MiB physical VMEM.
    * Prefer >= 4 grid steps so v7x megacore (2 TCs via the 'parallel' axis)
      gets >= 2 steps per core and DMA/compute pipelining stays alive; fall
      back to >= 2 steps, then a single step.
    """
    candidates = (4096, 2048, 1024, 512, 256, 128)
    for min_steps in (4, 2):
        for t in candidates:
            if t * min_steps <= n and n % t == 0:
                return t
    return n


@jax.jit
def diner_forward(x_t, kparams):
    """Feature-major forward.  x_t: (IN_FEATURES, N) f32 -> (OUT_FEATURES, N)."""
    in_f, n = x_t.shape
    assert in_f == IN_FEATURES
    assert n % 128 == 0, "row count must be a multiple of 128"

    tn = _pick_lane_tile(n)
    grid = (n // tn,)
    num_hidden = len(kparams) // 2 - 2
    kernel = make_diner_kernel(num_hidden, IN_FEATURES)

    def resident(arr):
        # Constant index map -> stays VMEM-resident across grid steps.
        return pl.BlockSpec(arr.shape, lambda i: (0, 0))

    flops_per_row = 2 * (IN_FEATURES * HIDDEN_FEATURES
                         + num_hidden * HIDDEN_FEATURES * HIDDEN_FEATURES
                         + HIDDEN_FEATURES * OUT_FEATURES)
    cost = pl.CostEstimate(
        flops=flops_per_row * n,
        transcendentals=(1 + num_hidden) * HIDDEN_FEATURES * n,
        bytes_accessed=4 * n * (IN_FEATURES + OUT_FEATURES),
    )

    out_t = pl.pallas_call(
        kernel,
        out_shape=jax.ShapeDtypeStruct((OUT_FEATURES, n), jnp.float32),
        grid=grid,
        in_specs=[pl.BlockSpec((IN_FEATURES, tn), lambda i: (0, i))]
                 + [resident(p) for p in kparams],
        out_specs=pl.BlockSpec((OUT_FEATURES, tn), lambda i: (0, i)),
        compiler_params=pltpu.CompilerParams(
            dimension_semantics=("parallel",),
            vmem_limit_bytes=32 * 1024 * 1024),
        cost_estimate=cost,
    )(x_t, *kparams)
    return out_t


# ----------------------------- parameter init (deterministic) ------------------
def init_params(key):
    """SIREN / DINER init.  Weights stored as (in, out); biases as (1, out)."""
    num_layers = HIDDEN_LAYERS + 2
    keys = jax.random.split(key, 1 + 2 * num_layers)
    ki = iter(keys)

    def uniform(k, shape, bound):
        return jax.random.uniform(k, shape, jnp.float32, -bound, bound)

    # hash table: 0.0001 * (rand * 2 - 1)  -> U(-1e-4, 1e-4)
    table = uniform(next(ki), (HASH_TABLE_LENGTH, IN_FEATURES), 1e-4)

    layers = []
    # SineLayer 1 (is_first): weight U(-1/in, 1/in)
    w1 = uniform(next(ki), (IN_FEATURES, HIDDEN_FEATURES), 1.0 / IN_FEATURES)
    b1 = uniform(next(ki), (1, HIDDEN_FEATURES), 1.0 / np.sqrt(IN_FEATURES))
    layers.append((w1, b1))

    hid_bound = np.sqrt(6.0 / HIDDEN_FEATURES) / HIDDEN_OMEGA_0
    lin_b_bound = 1.0 / np.sqrt(HIDDEN_FEATURES)
    for _ in range(HIDDEN_LAYERS):
        w = uniform(next(ki), (HIDDEN_FEATURES, HIDDEN_FEATURES), hid_bound)
        b = uniform(next(ki), (1, HIDDEN_FEATURES), lin_b_bound)
        layers.append((w, b))

    # Final linear: weight U(-sqrt(6/hidden)/omega, +), default bias init
    w_fin = uniform(next(ki), (HIDDEN_FEATURES, OUT_FEATURES), hid_bound)
    b_fin = uniform(next(ki), (1, OUT_FEATURES), lin_b_bound)
    layers.append((w_fin, b_fin))

    return table, tuple(layers)


def prepare_kernel_params(table, params):
    """One-time transform into the kernel's canonical layouts:
      * hash table stored feature-major (IN_FEATURES, N) -> the per-call rows.T
        relayout is removed from the hot path,
      * weights (out, in), biases (out, 1), omega folded into all sine layers,
      * hidden/final weights pre-cast to bf16 (MXU inputs); first-layer weights
        and all biases stay f32 (VPU/EUP path)."""
    layers = list(params)
    (w1, b1) = layers[0]
    kp = [(FIRST_OMEGA_0 * w1).T,
          (FIRST_OMEGA_0 * b1).reshape(HIDDEN_FEATURES, 1)]
    for (w, b) in layers[1:-1]:
        kp.append((HIDDEN_OMEGA_0 * w).T.astype(jnp.bfloat16))
        kp.append((HIDDEN_OMEGA_0 * b).reshape(HIDDEN_FEATURES, 1))
    (w_fin, b_fin) = layers[-1]
    kp.append(w_fin.T.astype(jnp.bfloat16))
    kp.append(b_fin.reshape(OUT_FEATURES, 1))

    table_t = table.T                                  # (IN_FEATURES, N), one-time
    return table_t, tuple(kp)


def diner_apply(coords, table, table_t, kparams, hash_mod=True):
    """Matches DINER.forward: run the net on the hash table (hash_mod) or coords."""
    x_t = table_t if hash_mod else coords.T
    out_t = diner_forward(x_t, kparams)
    # Single small (OUT, N) -> (N, OUT) relayout kept only for interface parity
    # with the PyTorch module; feature-major consumers can use out_t directly.
    return {"model_out": out_t.T, "table": table}


# ----------------------------- reference (pure JAX, f32) ------------------------
def diner_reference(table, params):
    h = table
    (w1, b1) = params[0]
    h = jnp.sin(FIRST_OMEGA_0 * (h @ w1 + b1))
    for (w, b) in params[1:-1]:
        h = jnp.sin(HIDDEN_OMEGA_0 * (h @ w + b))
    (w_fin, b_fin) = params[-1]
    return jnp.clip(h @ w_fin + b_fin, -1.0, 1.0)


# ----------------------------- main ---------------------------------------------
if __name__ == "__main__":
    key = jax.random.PRNGKey(0)
    table, params = init_params(key)

    # coords input (unused because hash_mod=True, kept for interface parity)
    coords = jax.random.uniform(jax.random.PRNGKey(1),
                                (HASH_TABLE_LENGTH, IN_FEATURES), jnp.float32,
                                -1.0, 1.0)

    table_t, kparams = prepare_kernel_params(table, params)  # one-time transform

    result = diner_apply(coords, table, table_t, kparams, hash_mod=True)
    out = jax.block_until_ready(result["model_out"])

    ref = diner_reference(table, params)
    # bf16 MXU inputs (f32 accumulation) -> relaxed tolerance vs the f32 reference
    np.testing.assert_allclose(np.asarray(out), np.asarray(ref),
                               rtol=2e-2, atol=2e-2)

    assert out.shape == (HASH_TABLE_LENGTH, OUT_FEATURES)
    assert result["table"].shape == (HASH_TABLE_LENGTH, IN_FEATURES)
    print("KERNEL_OK")
</pallas_src>

<mosaic_0001>
module attributes {stable_mosaic.version = 11 : i64} {
  func.func @kernel(%arg0: i32, %arg1: memref<3x128xf32, #tpu.memory_space<vmem>>, %arg2: memref<64x3xf32, #tpu.memory_space<vmem>>, %arg3: memref<64x1xf32, #tpu.memory_space<vmem>>, %arg4: memref<64x64xbf16, #tpu.memory_space<vmem>>, %arg5: memref<64x1xf32, #tpu.memory_space<vmem>>, %arg6: memref<64x64xbf16, #tpu.memory_space<vmem>>, %arg7: memref<64x1xf32, #tpu.memory_space<vmem>>, %arg8: memref<3x64xbf16, #tpu.memory_space<vmem>>, %arg9: memref<3x1xf32, #tpu.memory_space<vmem>>, %arg10: memref<3x128xf32, #tpu.memory_space<vmem>>) attributes {dimension_semantics = [#tpu.dimension_semantics<parallel>], iteration_bounds = array<i64: 4>, scalar_prefetch = 0 : i64, scratch_operands = 0 : i64, tpu.core_type = #tpu.core_type<tc>, window_params = [{transform_indices = @transform_0, window_bounds = array<i64: 3, 128>}, {pipeline_mode = #tpu.pipeline_mode<synchronous>, transform_indices = @transform_1, window_bounds = array<i64: 64, 3>}, {pipeline_mode = #tpu.pipeline_mode<synchronous>, transform_indices = @transform_2, window_bounds = array<i64: 64, 1>}, {pipeline_mode = #tpu.pipeline_mode<synchronous>, transform_indices = @transform_3, window_bounds = array<i64: 64, 64>}, {pipeline_mode = #tpu.pipeline_mode<synchronous>, transform_indices = @transform_4, window_bounds = array<i64: 64, 1>}, {pipeline_mode = #tpu.pipeline_mode<synchronous>, transform_indices = @transform_5, window_bounds = array<i64: 64, 64>}, {pipeline_mode = #tpu.pipeline_mode<synchronous>, transform_indices = @transform_6, window_bounds = array<i64: 64, 1>}, {pipeline_mode = #tpu.pipeline_mode<synchronous>, transform_indices = @transform_7, window_bounds = array<i64: 3, 64>}, {pipeline_mode = #tpu.pipeline_mode<synchronous>, transform_indices = @transform_8, window_bounds = array<i64: 3, 1>}, {transform_indices = @transform_9, window_bounds = array<i64: 3, 128>}]} {
    %c0 = arith.constant 0 : index
    %c0_0 = arith.constant 0 : index
    %0 = vector.load %arg1[%c0, %c0_0] : memref<3x128xf32, #tpu.memory_space<vmem>>, vector<3x128xf32>
    %c0_1 = arith.constant 0 : index
    %c0_2 = arith.constant 0 : index
    %1 = vector.load %arg2[%c0_1, %c0_2] : memref<64x3xf32, #tpu.memory_space<vmem>>, vector<64x3xf32>
    %c0_3 = arith.constant 0 : index
    %c0_4 = arith.constant 0 : index
    %2 = vector.load %arg3[%c0_3, %c0_4] : memref<64x1xf32, #tpu.memory_space<vmem>>, vector<64x1xf32>
    %3 = vector.extract_strided_slice %1 {offsets = [0, 0], sizes = [64, 1], strides = [1, 1]} : vector<64x3xf32> to vector<64x1xf32>
    %4 = vector.extract_strided_slice %0 {offsets = [0, 0], sizes = [1, 128], strides = [1, 1]} : vector<3x128xf32> to vector<1x128xf32>
    %5 = vector.broadcast %3 : vector<64x1xf32> to vector<64x128xf32>
    %6 = vector.broadcast %4 : vector<1x128xf32> to vector<64x128xf32>
    %7 = arith.mulf %5, %6 : vector<64x128xf32>
    %8 = vector.broadcast %2 : vector<64x1xf32> to vector<64x128xf32>
    %9 = arith.addf %8, %7 : vector<64x128xf32>
    %10 = vector.extract_strided_slice %1 {offsets = [0, 1], sizes = [64, 1], strides = [1, 1]} : vector<64x3xf32> to vector<64x1xf32>
    %11 = vector.extract_strided_slice %0 {offsets = [1, 0], sizes = [1, 128], strides = [1, 1]} : vector<3x128xf32> to vector<1x128xf32>
    %12 = vector.broadcast %10 : vector<64x1xf32> to vector<64x128xf32>
    %13 = vector.broadcast %11 : vector<1x128xf32> to vector<64x128xf32>
    %14 = arith.mulf %12, %13 : vector<64x128xf32>
    %15 = arith.addf %9, %14 : vector<64x128xf32>
    %16 = vector.extract_strided_slice %1 {offsets = [0, 2], sizes = [64, 1], strides = [1, 1]} : vector<64x3xf32> to vector<64x1xf32>
    %17 = vector.extract_strided_slice %0 {offsets = [2, 0], sizes = [1, 128], strides = [1, 1]} : vector<3x128xf32> to vector<1x128xf32>
    %18 = vector.broadcast %16 : vector<64x1xf32> to vector<64x128xf32>
    %19 = vector.broadcast %17 : vector<1x128xf32> to vector<64x128xf32>
    %20 = arith.mulf %18, %19 : vector<64x128xf32>
    %21 = arith.addf %15, %20 : vector<64x128xf32>
    %22 = math.sin %21 : vector<64x128xf32>
    %c0_5 = arith.constant 0 : index
    %c0_6 = arith.constant 0 : index
    %23 = vector.load %arg4[%c0_5, %c0_6] : memref<64x64xbf16, #tpu.memory_space<vmem>>, vector<64x64xbf16>
    %24 = arith.truncf %22 : vector<64x128xf32> to vector<64x128xbf16>
    %cst = arith.constant dense<0.000000e+00> : vector<64x128xf32>
    %25 = tpu.matmul %23, %24, %cst {dimension_numbers = #tpu.dot_dimension_numbers<[1], [0], [0], [1], [0, 0, 1, 1], [], []>} : vector<64x64xbf16>, vector<64x128xbf16>, vector<64x128xf32> -> vector<64x128xf32>
    %c0_7 = arith.constant 0 : index
    %c0_8 = arith.constant 0 : index
    %26 = vector.load %arg5[%c0_7, %c0_8] : memref<64x1xf32, #tpu.memory_space<vmem>>, vector<64x1xf32>
    %27 = vector.broadcast %26 : vector<64x1xf32> to vector<64x128xf32>
    %28 = arith.addf %25, %27 : vector<64x128xf32>
    %29 = math.sin %28 : vector<64x128xf32>
    %c0_9 = arith.constant 0 : index
    %c0_10 = arith.constant 0 : index
    %30 = vector.load %arg6[%c0_9, %c0_10] : memref<64x64xbf16, #tpu.memory_space<vmem>>, vector<64x64xbf16>
    %31 = arith.truncf %29 : vector<64x128xf32> to vector<64x128xbf16>
    %cst_11 = arith.constant dense<0.000000e+00> : vector<64x128xf32>
    %32 = tpu.matmul %30, %31, %cst_11 {dimension_numbers = #tpu.dot_dimension_numbers<[1], [0], [0], [1], [0, 0, 1, 1], [], []>} : vector<64x64xbf16>, vector<64x128xbf16>, vector<64x128xf32> -> vector<64x128xf32>
    %c0_12 = arith.constant 0 : index
    %c0_13 = arith.constant 0 : index
    %33 = vector.load %arg7[%c0_12, %c0_13] : memref<64x1xf32, #tpu.memory_space<vmem>>, vector<64x1xf32>
    %34 = vector.broadcast %33 : vector<64x1xf32> to vector<64x128xf32>
    %35 = arith.addf %32, %34 : vector<64x128xf32>
    %36 = math.sin %35 : vector<64x128xf32>
    %c0_14 = arith.constant 0 : index
    %c0_15 = arith.constant 0 : index
    %37 = vector.load %arg8[%c0_14, %c0_15] : memref<3x64xbf16, #tpu.memory_space<vmem>>, vector<3x64xbf16>
    %38 = arith.truncf %36 : vector<64x128xf32> to vector<64x128xbf16>
    %cst_16 = arith.constant dense<0.000000e+00> : vector<3x128xf32>
    %39 = tpu.matmul %37, %38, %cst_16 {dimension_numbers = #tpu.dot_dimension_numbers<[1], [0], [0], [1], [0, 0, 1, 1], [], []>} : vector<3x64xbf16>, vector<64x128xbf16>, vector<3x128xf32> -> vector<3x128xf32>
    %c0_17 = arith.constant 0 : index
    %c0_18 = arith.constant 0 : index
    %40 = vector.load %arg9[%c0_17, %c0_18] : memref<3x1xf32, #tpu.memory_space<vmem>>, vector<3x1xf32>
    %41 = vector.broadcast %40 : vector<3x1xf32> to vector<3x128xf32>
    %42 = arith.addf %39, %41 : vector<3x128xf32>
    %cst_19 = arith.constant -1.000000e+00 : f32
    %cst_20 = arith.constant 1.000000e+00 : f32
    %43 = vector.broadcast %cst_19 : f32 to vector<3x128xf32>
    %44 = arith.maximumf %43, %42 : vector<3x128xf32>
    %45 = vector.broadcast %cst_20 : f32 to vector<3x128xf32>
    %46 = arith.minimumf %45, %44 : vector<3x128xf32>
    %c0_21 = arith.constant 0 : index
    %c0_22 = arith.constant 0 : index
    %47 = vector.load %arg10[%c0_21, %c0_22] : memref<3x128xf32, #tpu.memory_space<vmem>>, vector<3x128xf32>
    tpu.vector_store %arg10[%c0_21, %c0_22], %46 {strides = array<i32>} : memref<3x128xf32, #tpu.memory_space<vmem>>, vector<3x128xf32>,
    return
  }
  func.func @transform_0(%arg0: i32) -> (i32, i32) {
    %c0_i32 = arith.constant 0 : i32
    %c0_i32_0 = arith.constant 0 : i32
    return %c0_i32, %arg0 : i32, i32
  }
  func.func @transform_1(%arg0: i32) -> (i32, i32) {
    %c0_i32 = arith.constant 0 : i32
    %c0_i32_0 = arith.constant 0 : i32
    %c0_i32_1 = arith.constant 0 : i32
    return %c0_i32, %c0_i32_0 : i32, i32
  }
  func.func @transform_2(%arg0: i32) -> (i32, i32) {
    %c0_i32 = arith.constant 0 : i32
    %c0_i32_0 = arith.constant 0 : i32
    %c0_i32_1 = arith.constant 0 : i32
    return %c0_i32, %c0_i32_0 : i32, i32
  }
  func.func @transform_3(%arg0: i32) -> (i32, i32) {
    %c0_i32 = arith.constant 0 : i32
    %c0_i32_0 = arith.constant 0 : i32
    %c0_i32_1 = arith.constant 0 : i32
    return %c0_i32, %c0_i32_0 : i32, i32
  }
  func.func @transform_4(%arg0: i32) -> (i32, i32) {
    %c0_i32 = arith.constant 0 : i32
    %c0_i32_0 = arith.constant 0 : i32
    %c0_i32_1 = arith.constant 0 : i32
    return %c0_i32, %c0_i32_0 : i32, i32
  }
  func.func @transform_5(%arg0: i32) -> (i32, i32) {
    %c0_i32 = arith.constant 0 : i32
    %c0_i32_0 = arith.constant 0 : i32
    %c0_i32_1 = arith.constant 0 : i32
    return %c0_i32, %c0_i32_0 : i32, i32
  }
  func.func @transform_6(%arg0: i32) -> (i32, i32) {
    %c0_i32 = arith.constant 0 : i32
    %c0_i32_0 = arith.constant 0 : i32
    %c0_i32_1 = arith.constant 0 : i32
    return %c0_i32, %c0_i32_0 : i32, i32
  }
  func.func @transform_7(%arg0: i32) -> (i32, i32) {
    %c0_i32 = arith.constant 0 : i32
    %c0_i32_0 = arith.constant 0 : i32
    %c0_i32_1 = arith.constant 0 : i32
    return %c0_i32, %c0_i32_0 : i32, i32
  }
  func.func @transform_8(%arg0: i32) -> (i32, i32) {
    %c0_i32 = arith.constant 0 : i32
    %c0_i32_0 = arith.constant 0 : i32
    %c0_i32_1 = arith.constant 0 : i32
    return %c0_i32, %c0_i32_0 : i32, i32
  }
  func.func @transform_9(%arg0: i32) -> (i32, i32) {
    %c0_i32 = arith.constant 0 : i32
    %c0_i32_0 = arith.constant 0 : i32
    return %c0_i32, %arg0 : i32, i32
  }
}

</mosaic_0001>

<bundles_post_ra>
// kernel: diner_forward.1
= control target key start
LH: loop header
LB: loop body
LE: loop exit
PB: predicated region body
PF: predicated region fallthrough
CT: control target
= control target key end

     0   :  { %14 = vsyncpa [#allocation3], 0  ;;  %s6562_s0 = inlined_call_operand.vmem [shape: f32[3,512], index: 0, kind: input, shape index: {}]   ;;  %s6563_s1 = inlined_call_operand.vmem [shape: f32[64,3], index: 1, kind: input, shape index: {}]   ;;  %s6564_s2 = inlined_call_operand.vmem [shape: f32[64,1], index: 2, kind: input, shape index: {}]   ;;  %s6565_s3 = inlined_call_operand.vmem [shape: bf16[64,64], index: 3, kind: input, shape index: {}]   ;;  %s6566_s4 = inlined_call_operand.vmem [shape: f32[64,1], index: 4, kind: input, shape index: {}]   ;;  %s6567_s5 = inlined_call_operand.vmem [shape: bf16[64,64], index: 5, kind: input, shape index: {}]   ;;  %s6568_s6 = inlined_call_operand.vmem [shape: f32[64,1], index: 6, kind: input, shape index: {}]   ;;  %s6569_s7 = inlined_call_operand.vmem [shape: bf16[3,64], index: 7, kind: input, shape index: {}]   ;;  %s6570_s8 = inlined_call_operand.vmem [shape: f32[3,1], index: 8, kind: input, shape index: {}]   ;;  %s6571_s9 = inlined_call_operand.hbm [shape: f32[3,512], index: 9, kind: output, shape index: {}]  }
   0x1   :  { %16 = vsyncpa [#allocation3 + $0x1], 0  ;;  %s4076_s30 = smov 0   ;;  %s4078_s10 = smov 0  }
   0x2   :  { %s4080_s11 = smov 0   ;;  %s4082_s12 = smov 0  }
   0x3 LB: > { %s4097_s13 = sadd.s32 4294967295, %s4012_s12   ;;  %s3491_s14 = sadd.s32 4294967294, %s4012_s12   ;;  %s4012_s12 = sphi %s4082_s12, %s6736_s12   ;;  %s4008_s11 = sphi %s4080_s11, %s6735_s11   ;;  %s4004_s10 = sphi %s4078_s10, %s6734_s10   ;;  %s4000_s30 = sphi %s4076_s30, %s6733_s30  }
   0x4   : > { %s4101_s15 = sadd.s32 1, %s4012_s12   ;;  %s223_s16 = sadd.s32 1, %s4008_s11 }
   0x5   : > { %s220_s17 = ssub.s32 %s4012_s12, %s4101_s15  ;;  %p233_p0 = scmp.ne.s32.totalorder %s4008_s11, %s4004_s10 }
   0x6   : > { %p221_p1 = scmp.eq.s32.totalorder %s220_s17, 0  ;;  %p234_p2 = scmp.eq.s32.totalorder %s4097_s13, 3 }
   0x7   : > { %p239_p3 = scmp.ne.s32.totalorder %s4004_s10, %s4000_s30  ;;  %p240_p4 = scmp.eq.s32.totalorder %s3491_s14, 3 }
   0x8   : > { %s4112_s18 = scalar_select %p221_p1, %s4008_s11, %s223_s16  }
   0x9   : > { %p4114_p5 = por %p234_p2, %p233_p0  ;;  %p4118_p6 = por %p240_p4, %p239_p3 }
   0xa   : > { %p3494_p7 = scmp.ge.s32.totalorder %s4012_s12, 1  ;;  %p289_p8 = scmp.lt.s32.totalorder %s4012_s12, 5 }
   0xc   : > { %p290_p9 = pnand %p3494_p7, %p289_p8 }
   0xe   : > { %293 = sbr.rel (%p290_p9) target bundleno = 1522 (0x5f2), region = 56 }
  0x15   : > { %v338_v0 = vld [vmem:[%s6564_s2] sm:$0xff]  ;;  %v4014_v2 = vmov 0   ;;  %v339_v3 = vld [vmem:[%s6564_s2 + $0x8] sm:$0xff]  ;;  %v333_v5 = vld [vmem:[%s6563_s1 + $0x18] sm:$0xff]  ;;  %v4015_v6 = vmov 1   ;;  %v4016_v11 = vmov 2   ;;  %v386_v21 = vlaneseq }
  0x16   : > { %v330_v1 = vld [vmem:[%s6563_s1] sm:$0xff]  ;;  %3827 = vset.pattern.permute.xlu1 %v4014_v2  ;;  %3826 = vset.pattern.permute.xlu0 %v4014_v2  ;;  %v331_v4 = vld [vmem:[%s6563_s1 + $0x8] sm:$0xff]  ;;  %v340_v7 = vld [vmem:[%s6564_s2 + $0x10] sm:$0xff]  ;;  %p324_p10 = scmp.lt.s32.totalorder %s4097_s13, 3  ;;  %s321_s26 = sand.u32 1, %s4004_s10  }
  0x17   : > { %400 = vperm.xlu1 %3827, %v338_v0   ;;  %348 = vperm.xlu0 %3826, %v330_v1   ;;  %v332_v8 = vld [vmem:[%s6563_s1 + $0x10] sm:$0xff]  ;;  %v335_v9 = vld [vmem:[%s6563_s1 + $0x28] sm:$0xff]  ;;  %v342_v10 = vld [vmem:[%s6564_s2 + $0x20] sm:$0xff]  ;;  %v387_v24 = vshrl.u32 %v386_v21, 7  ;;  %s3495_s27 = sshll.u32 %s321_s26, 2  ;;  %s3612_s28 = sshll.u32 %s4097_s13, 6 }
  0x18   : > { %v337_v12 = vld [vmem:[%s6563_s1 + $0x38] sm:$0xff]  ;;  %v344_v14 = vld [vmem:[%s6564_s2 + $0x30] sm:$0xff]  ;;  %v334_v15 = vld [vmem:[%s6563_s1 + $0x20] sm:$0xff]  ;;  %s325_s29 = scalar_select %p324_p10, %s4097_s13, 3 }
  0x19   : > { %v341_v13 = vld [vmem:[%s6564_s2 + $0x18] sm:$0xff]  ;;  %v336_v16 = vld [vmem:[%s6563_s1 + $0x30] sm:$0xff]  ;;  %v343_v17 = vld [vmem:[%s6564_s2 + $0x28] sm:$0xff]  ;;  %v388_v27 = vsub.s32 0, %v387_v24  ;;  %v480_v28 = vsub.s32 1, %v387_v24  ;;  %v532_v36 = vsub.s32 2, %v387_v24 }
  0x1a   : > { %v345_v18 = vld [vmem:[%s6564_s2 + $0x38] sm:$0xff]  ;;  %s3496_s14 = sshll.u32 %s325_s29, 2  ;;  %s323_s29 = scalar_lea.vmem [#allocation2], %s3495_s27 }
  0x1b   : > { %405 = vperm.xlu1 %3827, %v339_v3   ;;  %353 = vperm.xlu0 %3826, %v331_v4   ;;  %s327_s21 = scalar_lea.vmem %s6562_s0, %s3496_s14  ;;  %s3432_s14 = sshll.u32 %s323_s29, 4  ;;  %s6522_s14 = int_to_ptr.vmem [resolvable:$true] %s3432_s14 }
  0x1c   : > { %v329_v30 = vld [vmem:[%s327_s21] sm:$0x7]  ;;  %s6520_s21 = scalar_lea.hbm %s6571_s9, %s3612_s28  ;;  %s3419_s22 = scalar_lea.sflag [#allocation3], %s321_s26 }
  0x1d   : > { %v4187_v32 = vrot.slane %v329_v30, %v388_v27  ;;  %v4189_v33 = vrot.slane %v329_v30, %v480_v28  ;;  %v4195_v41 = vrot.slane %v329_v30, %v532_v36  ;;  %s3950_s13 = scalar_lea.vmem %s6522_s14, 64  ;;  %s4025_s23 = smov [#allocation2]  }
  0x1e   : > { %p3951_p11 = scmp.ne.s32.totalorder %s6522_s14, %s3950_s13  ;;  %s3954_s24 = sshll.u32 %s4025_s23, 4  ;;  %s3955_s24 = int_to_ptr.vmem [resolvable:$false] %s3954_s24 }
  0x1f   : > { %3828 = vset.pattern.permute.xlu1 %v4015_v6  ;;  %363 = vperm.xlu0 %3826, %v333_v5   ;;  %s3956_s25 = scalar_lea.vmem %s3955_s24, 128  ;;  %p3957_p0 = scmp.lt.s32.totalorder %s6522_s14, %s3955_s24 }
  0x20   : > { %451 = vperm.xlu1 %3828, %v331_v4   ;;  %p3952_p12 = pnand %p3951_p11, %p4114_p5  ;;  %p3958_p1 = scmp.lt.s32.totalorder %s3956_s25, %s3950_s13 }
  0x22   : > { %p3953_p13 = pneg %p3952_p12  ;;  %p3959_p2 = por %p3958_p1, %p3957_p0 }
  0x23   : > { %410 = vperm.xlu0 %3826, %v340_v7  }
  0x24   : > { %3829 = vset.pattern.permute.xlu1 %v4014_v2  ;;  %p3960_p3 = pnand %p3959_p2, %p3953_p13 }
  0x25   : > { %358 = vperm.xlu1 %3829, %v332_v8  }
  0x27   : > { %373 = vperm.xlu0 %3826, %v335_v9  }
  0x29   : > { %3830 = vset.pattern.permute.xlu1 %v4016_v11 }
  0x2a   : > { %499 = vperm.xlu1 %3830, %v330_v1  }
  0x2b   : > { %420 = vperm.xlu0 %3826, %v342_v10  }
  0x2e   : > { %503 = vperm.xlu1 %3830, %v331_v4  }
  0x2f   : > { %383 = vperm.xlu0 %3826, %v337_v12  }
  0x32   : > { %3831 = vset.pattern.permute.xlu1 %v4014_v2 }
  0x33   : > { %415 = vperm.xlu1 %3831, %v341_v13   ;;  %430 = vperm.xlu0 %3826, %v344_v14  }
  0x37   : > { %3832 = vset.pattern.permute.xlu1 %v4015_v6  ;;  %3839 = vset.pattern.permute.xlu0 %v4015_v6 }
  0x38   : > { %459 = vperm.xlu1 %3832, %v333_v5   ;;  %447 = vperm.xlu0 %3839, %v330_v1  }
  0x3c   : > { %3833 = vset.pattern.permute.xlu1 %v4014_v2  ;;  %455 = vperm.xlu0 %3839, %v332_v8  }
  0x3d   : > { %368 = vperm.xlu1 %3833, %v334_v15  }
  0x40   : > { %463 = vperm.xlu0 %3839, %v334_v15  }
  0x41   : > { %3834 = vset.pattern.permute.xlu1 %v4016_v11 }
  0x42   : > { %507 = vperm.xlu1 %3834, %v332_v8  }
  0x44   : > { %471 = vperm.xlu0 %3839, %v336_v16  }
  0x46   : > { %511 = vperm.xlu1 %3834, %v333_v5  }
  0x48   : > { %3843 = vset.pattern.permute.xlu0 %v4016_v11 }
  0x49   : > { %527 = vperm.xlu0 %3843, %v337_v12  }
  0x4a   : > { %3835 = vset.pattern.permute.xlu1 %v4014_v2 }
  0x4b   : > { %425 = vperm.xlu1 %3835, %v343_v17  }
  0x4d   : > { %3845 = vset.pattern.permute.xlu0 %v4014_v2 }
  0x4f   : > { %3836 = vset.pattern.permute.xlu1 %v4015_v6 }
  0x50   : > { %467 = vperm.xlu1 %3836, %v335_v9  }
  0x54   : > { %3837 = vset.pattern.permute.xlu1 %v4014_v2 }
  0x55   : > { %378 = vperm.xlu1 %3837, %v336_v16  }
  0x59   : > { %3838 = vset.pattern.permute.xlu1 %v4016_v11 }
  0x5a   : > { %515 = vperm.xlu1 %3838, %v334_v15  }
  0x5e   : > { %519 = vperm.xlu1 %3838, %v335_v9  }
  0x62   : > { %3840 = vset.pattern.permute.xlu1 %v4014_v2 }
  0x63   : > { %435 = vperm.xlu1 %3840, %v345_v18  }
  0x67   : > { %3841 = vset.pattern.permute.xlu1 %v4015_v6 }
  0x68   : > { %475 = vperm.xlu1 %3841, %v337_v12  }
  0x6c   : > { %3842 = vset.pattern.permute.xlu1 %v4016_v11 }
  0x6d   : > { %523 = vperm.xlu1 %3842, %v336_v16  }
  0x71   : > { %3844 = vset.pattern.permute.xlu1 %v4014_v2 }
  0x96   : > { %v401_v19 = vpop.permute.xlu1 %400  ;;  %v349_v20 = vpop.permute.xlu0 %348 }
  0x97   : > { %v390_v51 = vmul.f32 %v4187_v32, %v349_v20 }
  0x99   : > { %v438_v56 = vadd.f32 %v401_v19, %v390_v51 }
  0x9a   : > { %v406_v22 = vpop.permute.xlu1 %405  ;;  %v354_v23 = vpop.permute.xlu0 %353 }
  0x9b   : > { %v391_v35 = vmul.f32 %v4187_v32, %v354_v23 }
  0x9d   : > { %v439_v40 = vadd.f32 %v406_v22, %v391_v35 }
  0x9e   : > { %v364_v25 = vpop.permute.xlu0 %363 }
  0x9f   : > { %v452_v26 = vpop.permute.xlu1 %451  ;;  %v393_v0 = vmul.f32 %v4187_v32, %v364_v25 }
  0xa0   : > { %v483_v38 = vmul.f32 %v4189_v33, %v452_v26 }
  0xa2   : > { %v411_v29 = vpop.permute.xlu0 %410  ;;  %v491_v43 = vadd.f32 %v483_v38, %v439_v40  ;;  %v6590_v38 = vmov 2102212464  }
  0xa4   : > { %v359_v31 = vpop.permute.xlu1 %358 }
  0xa5   : > { %v392_v58 = vmul.f32 %v4187_v32, %v359_v31 }
  0xa6   : > { %v374_v34 = vpop.permute.xlu0 %373 }
  0xa7   : > { %v440_v1 = vadd.f32 %v411_v29, %v392_v58  ;;  %v4231_v25 = vmul.f32 %v4187_v32, %v374_v34 }
  0xa9   : > { %v500_v37 = vpop.permute.xlu1 %499 }
  0xaa   : > { %v4193_v39 = vpop.permute.xlu0 %420  ;;  %v534_v63 = vmul.f32 %v4195_v41, %v500_v37 }
  0xad   : > { %v504_v42 = vpop.permute.xlu1 %503 }
  0xae   : > { %v535_v44 = vmul.f32 %v4195_v41, %v504_v42  ;;  %v4198_v45 = vpop.permute.xlu0 %383 }
  0xb0   : > { %v4200_v46 = vadd.f32 %v535_v44, %v491_v43  ;;  %v6609_v43 = vmov 920167782  }
  0xb2   : > { %6627 = vst [vmem:[#allocation5_spill] sm:$0xff] %v4200_v46  ;;  %v657_v47 = vand.u32 2139095040, %v4200_v46  ;;  %v416_v48 = vpop.permute.xlu1 %415  ;;  %v4203_v49 = vpop.permute.xlu0 %430  ;;  %v6572_v19 = vand.u32 2147483647, %v4200_v46 }
  0xb3   : > { %v441_v7 = vadd.f32 %v416_v48, %v393_v0 }
  0xb4   : > { %v658_v50 = vshrl.u32 %v657_v47, 23  ;;  %v4240_v29 = vand.u32 8388607, %v6572_v19 }
  0xb6   : > { %v3501_v55 = vadd.s32 4294967169, %v658_v50  ;;  %6631 = vst [vmem:[#allocation9_spill] sm:$0xff] %v4240_v29 }
  0xb7   : > { %v460_v52 = vpop.permute.xlu1 %459  ;;  %v448_v53 = vpop.permute.xlu0 %447 }
  0xb8   : > { %v482_v54 = vmul.f32 %v4189_v33, %v448_v53  ;;  %v664_v61 = vadd.s32 1, %v3501_v55  ;;  %v485_v4 = vmul.f32 %v4189_v33, %v460_v52  ;;  %v6594_v52 = vmov 1326507024  }
  0xba   : > { %v490_v60 = vadd.f32 %v482_v54, %v438_v56  ;;  %vm665_vm0 = vcmp.gt.s32.totalorder %v664_v61, 0  ;;  %v493_v12 = vadd.f32 %v485_v4, %v441_v7  ;;  %v6584_v4 = vmov 2131351028  }
  0xbb   : > { %v456_v57 = vpop.permute.xlu0 %455  ;;  %v666_v9 = vsel %vm665_vm0, %v664_v61, 0 }
  0xbc   : > { %v369_v59 = vpop.permute.xlu1 %368  ;;  %v484_v62 = vmul.f32 %v4189_v33, %v456_v57  ;;  %v4211_v2 = vadd.f32 %v534_v63, %v490_v60  ;;  %v4221_v16 = vand.u32 31, %v666_v9  ;;  %v4243_v37 = vshrl.u32 %v666_v9, 5 }
  0xbd   : > { %v394_v23 = vmul.f32 %v4187_v32, %v369_v59  ;;  %v6578_v60 = vmov 683565275  }
  0xbe   : > { %6628 = vst [vmem:[#allocation6_spill] sm:$0xff] %v4211_v2  ;;  %v492_v5 = vadd.f32 %v484_v62, %v440_v1  ;;  %v553_v10 = vand.u32 2139095040, %v4211_v2  ;;  %v4234_v26 = vsub.s32 32, %v4221_v16  ;;  %v6574_v36 = vand.u32 2147483647, %v4211_v2 }
  0xbf   : > { %v4247_v34 = vshll.u32 %v6590_v38, %v4221_v16  ;;  %v464_v40 = vpop.permute.xlu0 %463  ;;  %v4252_v44 = vshll.u32 %v6609_v43, %v4221_v16  ;;  %v4255_v47 = vadd.f32 %v4193_v39, %v394_v23  ;;  %v6580_v1 = vmov 2475754826  }
  0xc0   : > { %v554_v20 = vshrl.u32 %v553_v10, 23  ;;  %v4259_v51 = vshrl.u32 %v6609_v43, %v4234_v26  ;;  %v4263_v53 = vshrl.u32 %v6594_v52, %v4234_v26  ;;  %v4268_v57 = vmul.f32 %v4189_v33, %v464_v40 }
  0xc1   : > { %v508_v3 = vpop.permute.xlu1 %507  ;;  %v4274_v58 = vand.u32 8388607, %v6574_v36  ;;  %vm689_vm13 = vcmp.lt.s32.totalorder %v4243_v37, 4  ;;  %v6643_v2 = vmov 1326507024  }
  0xc2   : > { %v536_v6 = vmul.f32 %v4195_v41, %v508_v3  ;;  %v3497_v30 = vadd.s32 4294967169, %v554_v20 }
  0xc4   : > { %v4215_v8 = vadd.f32 %v536_v6, %v492_v5  ;;  %v4265_v56 = vadd.s32 1, %v3497_v30 }
  0xc5   : > { %v512_v11 = vpop.permute.xlu1 %511 }
  0xc6   : > { %6629 = vst [vmem:[#allocation7_spill] sm:$0xff] %v4215_v8  ;;  %v6575_v13 = vand.u32 2147483647, %v4215_v8  ;;  %v761_v14 = vand.u32 2139095040, %v4215_v8  ;;  %v537_v15 = vmul.f32 %v4195_v41, %v512_v11  ;;  %vm561_vm7 = vcmp.gt.s32.totalorder %v4265_v56, 0 }
  0xc8   : > { %v762_v17 = vshrl.u32 %v761_v14, 23  ;;  %v4223_v18 = vadd.f32 %v537_v15, %v493_v12  ;;  %v765_v21 = vand.u32 8388607, %v6575_v13 }
  0xca   : > { %6630 = vst [vmem:[#allocation8_spill] sm:$0xff] %v4223_v18  ;;  %v3505_v22 = vadd.s32 4294967169, %v762_v17  ;;  %v865_v24 = vand.u32 2139095040, %v4223_v18  ;;  %v4236_v28 = vpop.permute.xlu1 %425  ;;  %v766_v31 = vor.u32 8388608, %v765_v21  ;;  %v6573_v42 = vand.u32 2147483647, %v4223_v18 }
  0xcc   : > { %v768_v27 = vadd.s32 1, %v3505_v22  ;;  %v866_v35 = vshrl.u32 %v865_v24, 23  ;;  %v4270_v39 = vshll.u32 %v766_v31, 8  ;;  %v869_v62 = vand.u32 8388607, %v6573_v42 }
  0xce   : > { %vm769_vm1 = vcmp.gt.s32.totalorder %v768_v27, 0  ;;  %v3509_v50 = vadd.s32 4294967169, %v866_v35 }
  0xcf   : > { %v770_v48 = vsel %vm769_vm1, %v768_v27, 0  ;;  %v468_v0 = vpop.permute.xlu1 %467 }
  0xd0   : > { %v771_v54 = vshrl.u32 %v770_v48, 5  ;;  %v772_v55 = vand.u32 31, %v770_v48  ;;  %v872_v63 = vadd.s32 1, %v3509_v50 }
  0xd2   : > { %v773_v59 = vsub.s32 32, %v772_v55  ;;  %v775_v61 = vshll.u32 %v6578_v60, %v772_v55  ;;  %v778_v3 = vshll.u32 %v6580_v1, %v772_v55  ;;  %v781_v5 = vshll.u32 %v6584_v4, %v772_v55 }
  0xd3   : > { %v784_v6 = vshll.u32 %v6590_v38, %v772_v55  ;;  %v787_v7 = vshll.u32 %v6609_v43, %v772_v55  ;;  %vm790_vm2 = vcmp.lt.s32.totalorder %v771_v54, 1  ;;  %vm792_vm3 = vcmp.lt.s32.totalorder %v771_v54, 3 }
  0xd4   : > { %v776_v9 = vshrl.u32 %v6580_v1, %v773_v59  ;;  %v779_v10 = vshrl.u32 %v6584_v4, %v773_v59  ;;  %v782_v11 = vshrl.u32 %v6590_v38, %v773_v59  ;;  %v774_v12 = vshrl.u32 %v6578_v60, %v773_v59  ;;  %v4292_v40 = vpop.permute.xlu1 %378 }
  0xd5   : > { %v785_v14 = vshrl.u32 %v6609_v43, %v773_v59  ;;  %v788_v15 = vshrl.u32 %v6594_v52, %v773_v59  ;;  %vm873_vm4 = vcmp.gt.s32.totalorder %v872_v63, 0  ;;  %vm793_vm5 = vcmp.lt.s32.totalorder %v771_v54, 4 }
  0xd6   : > { %v777_v17 = vor.u32 %v776_v9, %v775_v61  ;;  %v780_v20 = vor.u32 %v779_v10, %v778_v3  ;;  %v783_v21 = vor.u32 %v782_v11, %v781_v5  ;;  %v874_v24 = vsel %vm873_vm4, %v872_v63, 0 }
  0xd7   : > { %v786_v22 = vor.u32 %v785_v14, %v784_v6  ;;  %v789_v23 = vor.u32 %v788_v15, %v787_v7  ;;  %v870_v59 = vor.u32 8388608, %v869_v62  ;;  %vm791_vm6 = vcmp.lt.s32.totalorder %v771_v54, 2 }
  0xd8   : > { %v794_v27 = vsel %vm790_vm2, %v774_v12, %v777_v17  ;;  %v795_v30 = vsel %vm793_vm5, %v783_v21, 2102212464  ;;  %v798_v31 = vsel %vm790_vm2, %v777_v17, %v780_v20  ;;  %v802_v35 = vsel %vm790_vm2, %v780_v20, %v783_v21 }
  0xd9   : > { %v796_v48 = vsel %vm792_vm3, %v780_v20, %v795_v30  ;;  %v799_v50 = vsel %vm793_vm5, %v786_v22, 920167782  ;;  %v803_v55 = vsel %vm793_vm5, %v789_v23, 1326507024  ;;  %v876_v63 = vand.u32 31, %v874_v24 }
  0xda   : > { %v800_v61 = vsel %vm792_vm3, %v783_v21, %v799_v50  ;;  %v804_v3 = vsel %vm792_vm3, %v786_v22, %v803_v55  ;;  %v797_v5 = vsel %vm791_vm6, %v794_v27, %v796_v48  ;;  %v443_v9 = vadd.f32 %v4236_v28, %v4231_v25  ;;  %v516_v22 = vpop.permute.xlu1 %515 }
  0xdb   : > { %v801_v6 = vsel %vm791_vm6, %v798_v31, %v800_v61  ;;  %v805_v7 = vsel %vm791_vm6, %v802_v35, %v804_v3  ;;  %v875_v62 = vshrl.u32 %v874_v24, 5  ;;  %v877_v15 = vsub.s32 32, %v876_v63 }
  0xdc   : > { %v4300_v10 = vmul.u32.u64.low %v4270_v39, %v805_v7  ;;  %v4301_v11 = vmul.u32.u64.high %v4270_v39, %v805_v7, %v4300_v10  ;;  %v4304_v12 = vmul.u32.u64.low %v4270_v39, %v801_v6  ;;  %v4305_v14 = vmul.u32.u64.high %v4270_v39, %v801_v6, %v4304_v12 }
  0xdd   : > { %v4308_v54 = vshll.u32 %v870_v59, 8  ;;  %v487_v17 = vmul.f32 %v4189_v33, %v468_v0  ;;  %v813_v20 = vmul.u32 %v4270_v39, %v797_v5  ;;  %v879_v25 = vshll.u32 %v6578_v60, %v876_v63 }
  0xde   : > { %v882_v28 = vshll.u32 %v6580_v1, %v876_v63  ;;  %v885_v21 = vshll.u32 %v6584_v4, %v876_v63  ;;  %v880_v23 = vshrl.u32 %v6580_v1, %v877_v15  ;;  %v883_v24 = vshrl.u32 %v6584_v4, %v877_v15 }
  0xdf   : > { %v886_v27 = vshrl.u32 %v6590_v38, %v877_v15  ;;  %v888_v30 = vshll.u32 %v6590_v38, %v876_v63  ;;  %vm815_vm8 = vc.u32 %v4301_v11, %v4304_v12  ;;  %v816_v39 = vadd.s32 1, %v4305_v14 }
  0xe0   : > { %v889_v0 = vshrl.u32 %v6609_v43, %v877_v15  ;;  %v891_v31 = vshll.u32 %v6609_v43, %v876_v63  ;;  %v881_v35 = vor.u32 %v880_v23, %v879_v25  ;;  %v884_v48 = vor.u32 %v883_v24, %v882_v28  ;;  %v520_v63 = vpop.permute.xlu1 %519 }
  0xe1   : > { %v887_v50 = vor.u32 %v886_v27, %v885_v21  ;;  %v892_v55 = vshrl.u32 %v6594_v52, %v877_v15  ;;  %v817_v59 = vsel %vm815_vm8, %v816_v39, %v4305_v14  ;;  %vm894_vm9 = vcmp.lt.s32.totalorder %v875_v62, 1 }
  0xe2   : > { %v890_v61 = vor.u32 %v889_v0, %v888_v30  ;;  %vm897_vm10 = vcmp.lt.s32.totalorder %v875_v62, 4  ;;  %v818_v3 = vadd.s32 %v817_v59, %v813_v20  ;;  %vm896_vm11 = vcmp.lt.s32.totalorder %v875_v62, 3 }
  0xe3   : > { %v893_v5 = vor.u32 %v892_v55, %v891_v31  ;;  %v899_v6 = vsel %vm897_vm10, %v887_v50, 2102212464  ;;  %v878_v7 = vshrl.u32 %v6578_v60, %v877_v15  ;;  %v902_v10 = vsel %vm894_vm9, %v881_v35, %v884_v48 }
  0xe4   : > { %v903_v19 = vsel %vm897_vm10, %v890_v61, 920167782  ;;  %v906_v42 = vsel %vm894_vm9, %v884_v48, %v887_v50  ;;  %v819_v25 = vadd.s32 536870912, %v818_v3  ;;  %vm895_vm12 = vcmp.lt.s32.totalorder %v875_v62, 2 }
  0xe5   : > { %v904_v28 = vsel %vm896_vm11, %v887_v50, %v903_v19  ;;  %v907_v21 = vsel %vm897_vm10, %v893_v5, 1326507024  ;;  %v898_v23 = vsel %vm894_vm9, %v878_v7, %v881_v35  ;;  %v900_v24 = vsel %vm896_vm11, %v884_v48, %v899_v6  ;;  %v472_v6 = vpop.permute.xlu0 %471 }
  0xe6   : > { %v905_v14 = vsel %vm895_vm12, %v902_v10, %v904_v28  ;;  %v908_v27 = vsel %vm896_vm11, %v890_v61, %v907_v21  ;;  %v4328_v30 = vshrl.u32 %v819_v25, 30  ;;  %v494_v15 = vadd.f32 %v4268_v57, %v4255_v47  ;;  %v436_v57 = vpop.permute.xlu1 %435 }
  0xe7   : > { %v909_v20 = vsel %vm895_vm12, %v906_v42, %v908_v27  ;;  %v4331_v39 = vmul.u32.u64.low %v4308_v54, %v905_v14  ;;  %v4332_v0 = vmul.u32.u64.high %v4308_v54, %v905_v14, %v4331_v39  ;;  %v538_v19 = vmul.f32 %v4195_v41, %v516_v22 }
  0xe8   : > { %6632 = vst [vmem:[#allocation10_spill] sm:$0xff] %v4328_v30  ;;  %v4338_v31 = vmul.u32.u64.low %v4308_v54, %v909_v20  ;;  %v4339_v62 = vmul.u32.u64.high %v4308_v54, %v909_v20, %v4338_v31  ;;  %v562_v35 = vsel %vm561_vm7, %v4265_v56, 0  ;;  %v901_v48 = vsel %vm895_vm12, %v898_v23, %v900_v24 }
  0xe9   : > { %v495_v42 = vadd.f32 %v487_v17, %v443_v9  ;;  %v539_v50 = vmul.f32 %v4195_v41, %v520_v63  ;;  %v397_v55 = vmul.f32 %v4187_v32, %v4198_v45  ;;  %v821_v59 = vshll.u32 %v4328_v30, 30  ;;  %v528_v27 = vpop.permute.xlu0 %527 }
  0xea   : > { %v4349_v47 = vadd.f32 %v538_v19, %v494_v15  ;;  %v4354_v22 = vor.u32 %v4259_v51, %v4247_v34  ;;  %v685_v56 = vor.u32 %v4263_v53, %v4252_v44  ;;  %v920_v9 = vadd.s32 1, %v4332_v0  ;;  %v476_v14 = vpop.permute.xlu1 %475 }
  0xeb   : > { %v4359_v17 = vadd.f32 %v539_v50, %v495_v42  ;;  %v4362_v45 = vand.u32 31, %v562_v35  ;;  %v917_v5 = vmul.u32 %v4308_v54, %v901_v48  ;;  %vm919_vm14 = vc.u32 %v4339_v62, %v4331_v39 }
  0xec   : > { %6633 = vst [vmem:[#allocation11_spill] sm:$0xff] %v4349_v47  ;;  %6634 = vst [vmem:[#allocation12_spill] sm:$0xff] %v4354_v22  ;;  %v921_v34 = vsel %vm919_vm14, %v920_v9, %v4332_v0  ;;  %v969_v51 = vand.u32 2139095040, %v4349_v47  ;;  %v558_v44 = vor.u32 8388608, %v4274_v58  ;;  %v672_v53 = vshrl.u32 %v6580_v1, %v4234_v26 }
  0xed   : > { %6635 = vst [vmem:[#allocation13_spill] sm:$0xff] %v4359_v17  ;;  %v4372_v7 = vsub.s32 %v818_v3, %v821_v59  ;;  %v922_v10 = vadd.s32 %v921_v34, %v917_v5  ;;  %v4376_v63 = vshrl.u32 %v6578_v60, %v4234_v26  ;;  %v671_v54 = vshll.u32 %v6578_v60, %v4221_v16 }
  0xee   : > { %v4383_v25 = vsel %vm689_vm13, %v4354_v22, 920167782  ;;  %v4387_v58 = vsel %vm689_vm13, %v685_v56, 1326507024  ;;  %v970_v28 = vshrl.u32 %v969_v51, 23  ;;  %v1073_v3 = vand.u32 2139095040, %v4359_v17 }
  0xef   : > { %6636 = vst [vmem:[#allocation14_spill] sm:$0xff] %v4376_v63  ;;  %6637 = vst [vmem:[#allocation15_spill] sm:$0xff] %v4387_v58  ;;  %v4391_v21 = vsub.s32 32, %v4362_v45  ;;  %v923_v23 = vadd.s32 536870912, %v922_v10  ;;  %v4394_v24 = vmul.f32 %v4189_v33, %v472_v6  ;;  %v675_v20 = vshrl.u32 %v6584_v4, %v4234_v26 }
  0xf0   : > { %v3513_v0 = vadd.s32 4294967169, %v970_v28  ;;  %v4398_v15 = vshll.u32 %v558_v44, 8  ;;  %v4400_v31 = vor.u32 %v672_v53, %v671_v54  ;;  %v674_v19 = vshll.u32 %v6580_v1, %v4221_v16 }
  0xf1   : > { %v4404_v48 = vshrl.u32 %v562_v35, 5  ;;  %v824_v42 = vsub.s32 0, %v4372_v7  ;;  %v4407_v50 = vshrl.u32 %v923_v23, 30  ;;  %v4411_v59 = vshll.u32 %v6584_v4, %v4221_v16 }
  0xf2   : > { %v976_v56 = vadd.s32 1, %v3513_v0  ;;  %v1074_v9 = vshrl.u32 %v1073_v3, 23  ;;  %v489_v5 = vmul.f32 %v4189_v33, %v476_v14  ;;  %v541_v6 = vmul.f32 %v4195_v41, %v528_v27 }
  0xf3   : > { %6638 = vst [vmem:[#allocation16_spill] sm:$0xff] %v4407_v50  ;;  %v925_v34 = vshll.u32 %v4407_v50, 30  ;;  %v567_v35 = vshll.u32 %v6578_v60, %v4362_v45  ;;  %v568_v51 = vshrl.u32 %v6580_v1, %v4391_v21  ;;  %v4420_v44 = vor.u32 %v675_v20, %v674_v19 }
  0xf4   : > { %v396_v16 = vmul.f32 %v4187_v32, %v4292_v40  ;;  %vm977_vm15 = vcmp.gt.s32.totalorder %v976_v56, 0  ;;  %v445_v53 = vadd.f32 %v436_v57, %v397_v55  ;;  %v571_v33 = vshrl.u32 %v6584_v4, %v4391_v21 }
  0xf5   : > { %v3506_v54 = vmin.u32 %v824_v42, %v4372_v7  ;;  %v4427_v28 = vsub.s32 %v922_v10, %v925_v34  ;;  %v6577_v3 = vand.u32 2147483647, %v4349_v47  ;;  %v978_v23 = vsel %vm977_vm15, %v976_v56, 0 }
  0xf6   : > { %v6576_v14 = vand.u32 2147483647, %v4359_v17  ;;  %v3517_v27 = vadd.s32 4294967169, %v1074_v9  ;;  %v497_v20 = vadd.f32 %v489_v5, %v445_v53  ;;  %v570_v0 = vshll.u32 %v6580_v1, %v4362_v45 }
  0xf7   : > { %v980_v32 = vand.u32 31, %v978_v23  ;;  %v4435_v40 = vshrl.u32 %v6578_v60, %v4391_v21  ;;  %v4439_v55 = vshll.u32 %v6584_v4, %v4362_v45  ;;  %v4443_v57 = vshrl.u32 %v6590_v38, %v4391_v21 }
  0xf8   : > { %v4447_v10 = vadd.s32 %v4304_v12, %v4301_v11  ;;  %v4450_v19 = vadd.f32 %v4203_v49, %v396_v16  ;;  %v4452_v42 = vor.u32 %v568_v51, %v567_v35  ;;  %v4454_v56 = vor.u32 %v571_v33, %v570_v0 }
  0xf9   : > { %v826_v9 = vclz %v3506_v54  ;;  %v928_v5 = vsub.s32 0, %v4427_v28  ;;  %v973_v34 = vand.u32 8388607, %v6577_v3  ;;  %v981_v53 = vsub.s32 32, %v980_v32 }
  0xfa   : > { %v979_v36 = vshrl.u32 %v978_v23, 5  ;;  %v1077_v13 = vand.u32 8388607, %v6576_v14  ;;  %v1080_v11 = vadd.s32 1, %v3517_v27  ;;  %v4461_v12 = vadd.f32 %v541_v6, %v497_v20 }
  0xfb   : > { %v983_v49 = vshll.u32 %v6578_v60, %v980_v32  ;;  %v984_v35 = vshrl.u32 %v6580_v1, %v981_v53  ;;  %v986_v51 = vshll.u32 %v6580_v1, %v980_v32  ;;  %v987_v16 = vshrl.u32 %v6584_v4, %v981_v53 }
  0xfc   : > { %v989_v33 = vshll.u32 %v6584_v4, %v980_v32  ;;  %v990_v54 = vshrl.u32 %v6590_v38, %v981_v53  ;;  %v992_v23 = vshll.u32 %v6590_v38, %v980_v32  ;;  %v993_v0 = vshrl.u32 %v6609_v43, %v981_v53 }
  0xfd   : > { %v3507_v14 = vadd.s32 4294967294, %v826_v9  ;;  %v3510_v6 = vmin.u32 %v928_v5, %v4427_v28  ;;  %v985_v27 = vor.u32 %v984_v35, %v983_v49  ;;  %v988_v20 = vor.u32 %v987_v16, %v986_v51 }
  0xfe   : > { %v991_v3 = vor.u32 %v990_v54, %v989_v33  ;;  %v994_v61 = vor.u32 %v993_v0, %v992_v23  ;;  %v995_v60 = vshll.u32 %v6609_v43, %v980_v32  ;;  %v996_v1 = vshrl.u32 %v6594_v52, %v981_v53 }
  0xff   : > { %v974_v17 = vor.u32 8388608, %v973_v34  ;;  %vm1001_vm0 = vcmp.lt.s32.totalorder %v979_v36, 4  ;;  %v1078_v4 = vor.u32 8388608, %v1077_v13  ;;  %v1281_v46 = vand.u32 2139095040, %v4461_v12 }
 0x100   : > { %v6639_v47 = vmov 683565275   ;;  %v997_v50 = vor.u32 %v996_v1, %v995_v60  ;;  %v1003_v9 = vsel %vm1001_vm0, %v991_v3, 2102212464  ;;  %vm1081_vm1 = vcmp.gt.s32.totalorder %v1080_v11, 0 }
 0x101   : > { %v982_v38 = vshrl.u32 %v6639_v47, %v981_v53  ;;  %vm3508_vm2 = vcmp.lt.s32.totalorder %v3507_v14, 0  ;;  %v930_v5 = vclz %v3510_v6  ;;  %vm998_vm3 = vcmp.lt.s32.totalorder %v979_v36, 1 }
 0x102   : > { %vm1000_vm4 = vcmp.lt.s32.totalorder %v979_v36, 3  ;;  %v1006_v35 = vsel %vm998_vm3, %v985_v27, %v988_v20  ;;  %v1007_v34 = vsel %vm1001_vm0, %v994_v61, 920167782  ;;  %vm999_vm5 = vcmp.lt.s32.totalorder %v979_v36, 2 }
 0x103   : > { %v1002_v49 = vsel %vm998_vm3, %v982_v38, %v985_v27  ;;  %v1004_v32 = vsel %vm1000_vm4, %v988_v20, %v1003_v9  ;;  %v1008_v13 = vsel %vm1000_vm4, %v991_v3, %v1007_v34  ;;  %v1010_v51 = vsel %vm998_vm3, %v988_v20, %v991_v3 }
 0x104   : > { %v1082_v16 = vsel %vm1081_vm1, %v1080_v11, 0  ;;  %v1009_v53 = vsel %vm999_vm5, %v1006_v35, %v1008_v13  ;;  %v1011_v60 = vsel %vm1001_vm0, %v997_v50, 1326507024  ;;  %v1014_v1 = vshll.u32 %v974_v17, 8 }
 0x105   : > { %v1282_v33 = vshrl.u32 %v1281_v46, 23  ;;  %v4482_v54 = vsel %vm3508_vm2, 0, %v3507_v14  ;;  %v3511_v23 = vadd.s32 4294967294, %v930_v5  ;;  %v1005_v38 = vsel %vm999_vm5, %v1002_v49, %v1004_v32 }
 0x106   : > { %v1012_v0 = vsel %vm1000_vm4, %v994_v61, %v1011_v60  ;;  %v4485_v27 = vmul.u32.u64.low %v1014_v1, %v1009_v53  ;;  %v4486_v9 = vmul.u32.u64.high %v1014_v1, %v1009_v53, %v4485_v27  ;;  %v1084_v34 = vand.u32 31, %v1082_v16 }
 0x107   : > { %v1013_v6 = vsel %vm999_vm5, %v1010_v51, %v1012_v0  ;;  %v4492_v20 = vshll.u32 %v1078_v4, 8  ;;  %v830_v17 = vsub.s32 32, %v4482_v54  ;;  %v834_v50 = vsub.s32 4294967266, %v4482_v54 }
 0x108   : > { %v4489_v3 = vmul.u32.u64.low %v1014_v1, %v1013_v6  ;;  %v4490_v11 = vmul.u32.u64.high %v1014_v1, %v1013_v6, %v4489_v3  ;;  %v1085_v14 = vsub.s32 32, %v1084_v34  ;;  %v3525_v36 = vadd.s32 4294967169, %v1282_v33 }
 0x109   : > { %vm3512_vm6 = vcmp.lt.s32.totalorder %v3511_v23, 0  ;;  %v1021_v61 = vmul.u32 %v1014_v1, %v1005_v38  ;;  %v1083_v5 = vshrl.u32 %v1082_v16, 5  ;;  %v1087_v49 = vshll.u32 %v6639_v47, %v1084_v34 }
 0x10a   : > { %v1024_v32 = vadd.s32 1, %v4486_v9  ;;  %v6640_v35 = vmov 2475754826   ;;  %v6641_v51 = vmov 2131351028   ;;  %vm1023_vm7 = vc.u32 %v4490_v11, %v4485_v27 }
 0x10b   : > { %v1088_v13 = vshrl.u32 %v6640_v35, %v1085_v14  ;;  %v1090_v4 = vshll.u32 %v6640_v35, %v1084_v34  ;;  %v1091_v53 = vshrl.u32 %v6641_v51, %v1085_v14  ;;  %v1093_v60 = vshll.u32 %v6641_v51, %v1084_v34 }
 0x10c   : > { %v6642_v0 = vmov 2102212464   ;;  %v1025_v16 = vsel %vm1023_vm7, %v1024_v32, %v4486_v9  ;;  %v1097_v3 = vshrl.u32 %v6609_v43, %v1085_v14  ;;  %v1099_v30 = vshll.u32 %v6609_v43, %v1084_v34 }
 0x10d   : > { %v1094_v33 = vshrl.u32 %v6642_v0, %v1085_v14  ;;  %v1096_v1 = vshll.u32 %v6642_v0, %v1084_v34  ;;  %v1089_v38 = vor.u32 %v1088_v13, %v1087_v49  ;;  %v1092_v6 = vor.u32 %v1091_v53, %v1090_v4  ;;  %v524_v53 = vpop.permute.xlu1 %523 }
 0x10e   : > { %v1026_v46 = vadd.s32 %v1025_v16, %v1021_v61  ;;  %v1100_v18 = vshrl.u32 %v6643_v2, %v1085_v14  ;;  %v4512_v63 = vsel %vm3512_vm6, 0, %v3511_v23  ;;  %v1086_v8 = vshrl.u32 %v6639_v47, %v1085_v14 }
 0x10f   : > { %v1095_v52 = vor.u32 %v1094_v33, %v1093_v60  ;;  %v1098_v29 = vor.u32 %v1097_v3, %v1096_v1  ;;  %vm1102_vm8 = vcmp.lt.s32.totalorder %v1083_v5, 1  ;;  %vm1104_vm9 = vcmp.lt.s32.totalorder %v1083_v5, 3 }
 0x110   : > { %v1027_v22 = vadd.s32 536870912, %v1026_v46  ;;  %v1101_v58 = vor.u32 %v1100_v18, %v1099_v30  ;;  %vm1105_vm10 = vcmp.lt.s32.totalorder %v1083_v5, 4  ;;  %v1110_v49 = vsel %vm1102_vm8, %v1089_v38, %v1092_v6 }
 0x111   : > { %v1107_v9 = vsel %vm1105_vm10, %v1095_v52, 2102212464  ;;  %v1111_v32 = vsel %vm1105_vm10, %v1098_v29, 920167782  ;;  %v1114_v61 = vsel %vm1102_vm8, %v1092_v6, %v1095_v52  ;;  %vm1103_vm11 = vcmp.lt.s32.totalorder %v1083_v5, 2 }
 0x112   : > { %v4515_v13 = vshrl.u32 %v1027_v22, 30  ;;  %v1112_v34 = vsel %vm1104_vm9, %v1095_v52, %v1111_v32  ;;  %v1115_v4 = vsel %vm1105_vm10, %v1101_v58, 1326507024  ;;  %v1106_v23 = vsel %vm1102_vm8, %v1086_v8, %v1089_v38 }
 0x113   : > { %v1108_v60 = vsel %vm1104_vm9, %v1092_v6, %v1107_v9  ;;  %v1113_v14 = vsel %vm1103_vm11, %v1110_v49, %v1112_v34  ;;  %v1116_v33 = vsel %vm1104_vm9, %v1098_v29, %v1115_v4  ;;  %v1288_v52 = vadd.s32 1, %v3525_v36 }
 0x114   : > { %6644 = vst [vmem:[#allocation17_spill] sm:$0xff] %v4515_v13  ;;  %v1029_v1 = vshll.u32 %v4515_v13, 30  ;;  %v1117_v18 = vsel %vm1103_vm11, %v1114_v61, %v1116_v33  ;;  %v4521_v30 = vmul.u32.u64.low %v4492_v20, %v1113_v14  ;;  %v4522_v16 = vmul.u32.u64.high %v4492_v20, %v1113_v14, %v4521_v30 }
 0x115   : > { %v4526_v22 = vmul.u32.u64.low %v4492_v20, %v1117_v18  ;;  %v4527_v3 = vmul.u32.u64.high %v4492_v20, %v1117_v18, %v4526_v22  ;;  %v540_v8 = vmul.f32 %v4195_v41, %v524_v53  ;;  %v832_v58 = vshrl.u32 %v4447_v10, %v830_v17 }
 0x116   : > { %v835_v38 = vadd.s32 127, %v834_v50  ;;  %v496_v29 = vadd.f32 %v4394_v24, %v4450_v19  ;;  %v1109_v6 = vsel %vm1103_vm11, %v1106_v23, %v1108_v60  ;;  %v918_v9 = vadd.s32 %v4331_v39, %v4339_v62 }
 0x117   : > { %v938_v49 = vsub.s32 4294967266, %v4512_v63  ;;  %v6645_v32 = vand.u32 2147483647, %v4461_v12  ;;  %vm1289_vm12 = vcmp.gt.s32.totalorder %v1288_v52, 0  ;;  %v831_v41 = vshll.u32 %v4372_v7, %v4482_v54 }
 0x118   : > { %v4541_v36 = vsub.s32 %v1026_v46, %v1029_v1  ;;  %v1128_v10 = vadd.s32 1, %v4522_v16  ;;  %v1290_v17 = vsel %vm1289_vm12, %v1288_v52, 0  ;;  %v1125_v24 = vmul.u32 %v4492_v20, %v1109_v6 }
 0x119   : > { %v1285_v61 = vand.u32 8388607, %v6645_v32  ;;  %vm1127_vm14 = vc.u32 %v4527_v3, %v4521_v30  ;;  %v1292_v39 = vand.u32 31, %v1290_v17  ;;  %v4547_v62 = vadd.f32 %v540_v8, %v496_v29 }
 0x11a   : > { %v4549_v19 = vor.u32 %v832_v58, %v831_v41  ;;  %v836_v50 = vshll.u32 %v835_v38, 23  ;;  %v934_v5 = vsub.s32 32, %v4512_v63  ;;  %v1129_v7 = vsel %vm1127_vm14, %v1128_v10, %v4522_v16 }
 0x11b   : > { %v939_v54 = vadd.s32 127, %v938_v49  ;;  %v1130_v46 = vadd.s32 %v1129_v7, %v1125_v24  ;;  %v1286_v34 = vor.u32 8388608, %v1285_v61  ;;  %v1293_v4 = vsub.s32 32, %v1292_v39 }
 0x11c   : > { %v1032_v53 = vsub.s32 0, %v4541_v36  ;;  %v4554_v20 = vshrl.u32 %v1290_v17, 5  ;;  %v1295_v23 = vshll.u32 %v6639_v47, %v1292_v39  ;;  %v1298_v60 = vshll.u32 %v6640_v35, %v1292_v39 }
 0x11d   : > { %v1131_v14 = vadd.s32 536870912, %v1130_v46  ;;  %v1296_v33 = vshrl.u32 %v6640_v35, %v1293_v4  ;;  %v1299_v1 = vshrl.u32 %v6641_v51, %v1293_v4  ;;  %v1301_v18 = vshll.u32 %v6641_v51, %v1292_v39 }
 0x11e   : > { %v1302_v16 = vshrl.u32 %v6642_v0, %v1293_v4  ;;  %v1304_v22 = vshll.u32 %v6642_v0, %v1292_v39  ;;  %v1305_v52 = vshrl.u32 %v6609_v43, %v1293_v4  ;;  %v1308_v8 = vshrl.u32 %v6643_v2, %v1293_v4 }
 0x11f   : > { %v837_v58 = vor.u32 4788187, %v836_v50  ;;  %v4565_v38 = vshrl.u32 %v1131_v14, 30  ;;  %v1297_v29 = vor.u32 %v1296_v33, %v1295_v23  ;;  %v1300_v6 = vor.u32 %v1299_v1, %v1298_v60 }
 0x120   : > { %v3514_v49 = vmin.u32 %v1032_v53, %v4541_v36  ;;  %v1303_v32 = vor.u32 %v1302_v16, %v1301_v18  ;;  %v1306_v61 = vor.u32 %v1305_v52, %v1304_v22  ;;  %v1307_v41 = vshll.u32 %v6609_v43, %v1292_v39  ;;  %v1395_v22 = vld [vmem:[%s6566_s4 + $0x8] sm:$0xff]  ;;  %v1396_v52 = vld [vmem:[%s6566_s4 + $0x10] sm:$0xff] }
 0x121   : > { %v936_v10 = vshrl.u32 %v918_v9, %v934_v5  ;;  %v940_v17 = vshll.u32 %v939_v54, 23  ;;  %v1133_v24 = vshll.u32 %v4565_v38, 30  ;;  %v1177_v7 = vand.u32 2139095040, %v4547_v62  ;;  %1414 = vperm.xlu0 %3845, %v1396_v52   ;;  %v1398_v52 = vld [vmem:[%s6566_s4 + $0x20] sm:$0xff] }
 0x122   : > { %v1309_v13 = vor.u32 %v1308_v8, %v1307_v41  ;;  %vm1310_vm15 = vcmp.lt.s32.totalorder %v4554_v20, 1  ;;  %vm1313_vm0 = vcmp.lt.s32.totalorder %v4554_v20, 4  ;;  %v4573_v50 = vshll.u32 %v1286_v34, 8 }
 0x123   : > { %v4575_v23 = vsub.s32 %v1130_v46, %v1133_v24  ;;  %v1315_v53 = vsel %vm1313_vm0, %v1303_v32, 2102212464  ;;  %v1318_v9 = vsel %vm1310_vm15, %v1297_v29, %v1300_v6  ;;  %v6608_v39 = vand.u32 2147483647, %v4547_v62  ;;  %v1394_v46 = vld [vmem:[%s6566_s4] sm:$0xff] }
 0x124   : > { %v1034_v5 = vclz %v3514_v49  ;;  %v1294_v54 = vshrl.u32 %v6639_v47, %v1293_v4  ;;  %vm1312_vm1 = vcmp.lt.s32.totalorder %v4554_v20, 3  ;;  %v1319_v60 = vsel %vm1313_vm0, %v1306_v61, 920167782  ;;  %1404 = vperm.xlu1 %3844, %v1394_v46  }
 0x125   : > { %vm1311_vm2 = vcmp.lt.s32.totalorder %v4554_v20, 2  ;;  %v1320_v34 = vsel %vm1312_vm1, %v1303_v32, %v1319_v60  ;;  %v1322_v14 = vsel %vm1310_vm15, %v1300_v6, %v1303_v32  ;;  %v1178_v33 = vshrl.u32 %v1177_v7, 23  ;;  %v1399_v7 = vld [vmem:[%s6566_s4 + $0x28] sm:$0xff] }
 0x126   : > { %v1314_v4 = vsel %vm1310_vm15, %v1294_v54, %v1297_v29  ;;  %v1316_v1 = vsel %vm1312_vm1, %v1300_v6, %v1315_v53  ;;  %v1321_v18 = vsel %vm1311_vm2, %v1318_v9, %v1320_v34  ;;  %v1323_v16 = vsel %vm1313_vm0, %v1309_v13, 1326507024  ;;  %1429 = vperm.xlu0 %3845, %v1399_v7   ;;  %v2385_v7 = vld [vmem:[%s6568_s6 + $0x8] sm:$0xff] }
 0x127   : > { %v1136_v8 = vsub.s32 0, %v4575_v23  ;;  %v1324_v49 = vsel %vm1312_vm1, %v1306_v61, %v1323_v16  ;;  %v4606_v29 = vmul.u32.u64.low %v4573_v50, %v1321_v18  ;;  %v4607_v6 = vmul.u32.u64.high %v4573_v50, %v1321_v18, %v4606_v29 }
 0x128   : > { %v838_v32 = vand.u32 2147483647, %v837_v58  ;;  %v935_v13 = vshll.u32 %v4427_v28, %v4512_v63  ;;  %v3515_v41 = vadd.s32 4294967294, %v1034_v5  ;;  %v1325_v24 = vsel %vm1311_vm2, %v1322_v14, %v1324_v49  ;;  %1409 = vperm.xlu1 %3844, %v1395_v22  }
 0x129   : > { %v941_v53 = vor.u32 4788187, %v940_v17  ;;  %v4618_v61 = vmul.u32.u64.low %v4573_v50, %v1325_v24  ;;  %v4619_v9 = vmul.u32.u64.high %v4573_v50, %v1325_v24, %v4618_v61  ;;  %v3521_v54 = vadd.s32 4294967169, %v1178_v33  ;;  %v1397_v17 = vld [vmem:[%s6566_s4 + $0x18] sm:$0xff] }
 0x12a   : > { %v840_v58 = vcvt.s32.f32 %v4549_v19  ;;  %v1317_v63 = vsel %vm1311_vm2, %v1314_v4, %v1316_v1  ;;  %v1181_v28 = vand.u32 8388607, %v6608_v39  ;;  %v576_v5 = vshll.u32 %v6642_v0, %v4362_v45 }
 0x12b   : > { %v937_v60 = vor.u32 %v936_v10, %v935_v13  ;;  %v3518_v46 = vmin.u32 %v1136_v8, %v4575_v23  ;;  %v1336_v34 = vadd.s32 1, %v4607_v6  ;;  %v1184_v14 = vadd.s32 1, %v3521_v54  ;;  %v1401_v10 = vld [vmem:[%s6566_s4 + $0x38] sm:$0xff] }
 0x12c   : > { %v4633_v19 = vmul.f32 %v840_v58, %v838_v32  ;;  %vm3516_vm3 = vcmp.lt.s32.totalorder %v3515_v41, 0  ;;  %v577_v20 = vshrl.u32 %v6609_v43, %v4391_v21  ;;  %v4639_v33 = vshrl.u32 %v6643_v2, %v4391_v21  ;;  %1419 = vperm.xlu1 %3844, %v1397_v17   ;;  %1439 = vperm.xlu0 %3845, %v1401_v10   ;;  %v1400_v58 = vld [vmem:[%s6566_s4 + $0x30] sm:$0xff] }
 0x12d   : > { %v942_v4 = vand.u32 2147483647, %v941_v53  ;;  %v1333_v1 = vmul.u32 %v4573_v50, %v1317_v63  ;;  %vm1335_vm4 = vc.u32 %v4619_v9, %v4606_v29  ;;  %vm1185_vm5 = vcmp.gt.s32.totalorder %v1184_v14, 0 }
 0x12e   : > { %v1337_v18 = vsel %vm1335_vm4, %v1336_v34, %v4607_v6  ;;  %v1182_v16 = vor.u32 8388608, %v1181_v28  ;;  %v1186_v22 = vsel %vm1185_vm5, %v1184_v14, 0  ;;  %v4650_v21 = vshll.u32 %v6609_v43, %v4362_v45 }
 0x12f   : > { %v944_v8 = vcvt.s32.f32 %v937_v60  ;;  %v4655_v49 = vsel %vm3516_vm3, 0, %v3515_v41  ;;  %v1138_v50 = vclz %v3518_v46  ;;  %v1338_v32 = vadd.s32 %v1337_v18, %v1333_v1 }
 0x130   : > { %v1188_v13 = vand.u32 31, %v1186_v22  ;;  %v4659_v6 = vor.u32 %v4443_v57, %v4439_v55  ;;  %v4661_v24 = vor.u32 %v577_v20, %v576_v5  ;;  %v581_v45 = vor.u32 %v4639_v33, %v4650_v21  ;;  %1424 = vperm.xlu1 %3844, %v1398_v52   ;;  %2399 = vperm.xlu0 %3845, %v2385_v7   ;;  %v2387_v20 = vld [vmem:[%s6568_s6 + $0x18] sm:$0xff] }
 0x131   : > { %v842_v41 = vxor.u32 2147483648, %v4633_v19  ;;  %v4669_v53 = vmul.f32 %v944_v8, %v942_v4  ;;  %v1339_v61 = vadd.s32 536870912, %v1338_v32  ;;  %vm582_vm6 = vcmp.lt.s32.totalorder %v4404_v48, 1 }
 0x132   : > { %v1042_v55 = vsub.s32 4294967266, %v4655_v49  ;;  %v1189_v57 = vsub.s32 32, %v1188_v13  ;;  %v4673_v54 = vshll.u32 %v1182_v16, 8  ;;  %vm585_vm7 = vcmp.lt.s32.totalorder %v4404_v48, 4 }
 0x133   : > { %v3519_v63 = vadd.s32 4294967294, %v1138_v50  ;;  %v4679_v28 = vshrl.u32 %v1339_v61, 30  ;;  %v1191_v5 = vshll.u32 %v6639_v47, %v1188_v13  ;;  %v1194_v17 = vshll.u32 %v6640_v35, %v1188_v13 }
 0x134   : > { %vm584_vm8 = vcmp.lt.s32.totalorder %v4404_v48, 3  ;;  %v1192_v60 = vshrl.u32 %v6640_v35, %v1189_v57  ;;  %v1195_v46 = vshrl.u32 %v6641_v51, %v1189_v57  ;;  %v1197_v34 = vshll.u32 %v6641_v51, %v1188_v13  ;;  %1434 = vperm.xlu1 %3844, %v1400_v58   ;;  %2409 = vperm.xlu0 %3845, %v2387_v20  }
 0x135   : > { %v1198_v14 = vshrl.u32 %v6642_v0, %v1189_v57  ;;  %v1341_v10 = vshll.u32 %v4679_v28, 30  ;;  %v1187_v4 = vshrl.u32 %v1186_v22, 5  ;;  %v1200_v1 = vshll.u32 %v6642_v0, %v1188_v13  ;;  %v2384_v22 = vld [vmem:[%s6568_s6] sm:$0xff] }
 0x136   : > { %v1201_v18 = vshrl.u32 %v6609_v43, %v1189_v57  ;;  %vm583_vm9 = vcmp.lt.s32.totalorder %v4404_v48, 2  ;;  %v1193_v16 = vor.u32 %v1192_v60, %v1191_v5  ;;  %v1196_v52 = vor.u32 %v1195_v46, %v1194_v17 }
 0x137   : > { %v1199_v8 = vor.u32 %v1198_v14, %v1197_v34  ;;  %v4699_v50 = vsel %vm582_vm6, %v4435_v40, %v4452_v42  ;;  %v4704_v7 = vsub.s32 %v1338_v32, %v1341_v10  ;;  %v1203_v39 = vshll.u32 %v6609_v43, %v1188_v13  ;;  %v2389_v13 = vld [vmem:[%s6568_s6 + $0x28] sm:$0xff] }
 0x138   : > { %v1202_v61 = vor.u32 %v1201_v18, %v1200_v1  ;;  %v1204_v58 = vshrl.u32 %v6643_v2, %v1189_v57  ;;  %v1190_v5 = vshrl.u32 %v6639_v47, %v1189_v57  ;;  %v587_v17 = vsel %vm585_vm7, %v4659_v6, 2102212464  ;;  %2394 = vperm.xlu1 %3844, %v2384_v22   ;;  %2419 = vperm.xlu0 %3845, %v2389_v13  }
 0x139   : > { %v590_v40 = vsel %vm582_vm6, %v4452_v42, %v4454_v56  ;;  %v591_v32 = vsel %vm585_vm7, %v4661_v24, 920167782  ;;  %v1344_v60 = vsub.s32 0, %v4704_v7  ;;  %vm1206_vm10 = vcmp.lt.s32.totalorder %v1187_v4, 1  ;;  %v2386_v42 = vld [vmem:[%s6568_s6 + $0x10] sm:$0xff] }
 0x13a   : > { %v1205_v57 = vor.u32 %v1204_v58, %v1203_v39  ;;  %vm1209_vm11 = vcmp.lt.s32.totalorder %v1187_v4, 4  ;;  %vm1208_vm12 = vcmp.lt.s32.totalorder %v1187_v4, 3  ;;  %v1214_v34 = vsel %vm1206_vm10, %v1193_v16, %v1196_v52  ;;  %v2391_v58 = vld [vmem:[%s6568_s6 + $0x38] sm:$0xff] }
 0x13b   : > { %v1211_v46 = vsel %vm1209_vm11, %v1199_v8, 2102212464  ;;  %v1215_v14 = vsel %vm1209_vm11, %v1202_v61, 920167782  ;;  %v3526_v20 = vmin.u32 %v1344_v60, %v4704_v7  ;;  %vm1207_vm14 = vcmp.lt.s32.totalorder %v1187_v4, 2  ;;  %v2390_v4 = vld [vmem:[%s6568_s6 + $0x30] sm:$0xff] }
 0x13c   : > { %v1216_v10 = vsel %vm1208_vm12, %v1199_v8, %v1215_v14  ;;  %v1218_v1 = vsel %vm1206_vm10, %v1196_v52, %v1199_v8  ;;  %vm3520_vm15 = vcmp.lt.s32.totalorder %v3519_v63, 0  ;;  %v1219_v18 = vsel %vm1209_vm11, %v1205_v57, 1326507024  ;;  %2404 = vperm.xlu1 %3844, %v2386_v42   ;;  %2429 = vperm.xlu0 %3845, %v2391_v58   ;;  %v3366_v58 = vld [vmem:[%s6570_s8] sm:$0x7] }
 0x13d   : > { %v1217_v39 = vsel %vm1207_vm14, %v1214_v34, %v1216_v10  ;;  %v592_v22 = vsel %vm584_vm8, %v4659_v6, %v591_v32  ;;  %v1346_v43 = vclz %v3526_v20  ;;  %v1210_v60 = vsel %vm1206_vm10, %v1190_v5, %v1193_v16  ;;  %v2388_v20 = vld [vmem:[%s6568_s6 + $0x20] sm:$0xff] }
 0x13e   : > { %v1212_v14 = vsel %vm1208_vm12, %v1196_v52, %v1211_v46  ;;  %v1220_v8 = vsel %vm1208_vm12, %v1202_v61, %v1219_v18  ;;  %v4742_v57 = vmul.u32.u64.low %v4673_v54, %v1217_v39  ;;  %v4743_v34 = vmul.u32.u64.high %v4673_v54, %v1217_v39, %v4742_v57 }
 0x13f   : > { %v1221_v13 = vsel %vm1207_vm14, %v1218_v1, %v1220_v8  ;;  %v593_v32 = vsel %vm583_vm9, %v590_v40, %v592_v22  ;;  %v4751_v16 = vsel %vm3520_vm15, 0, %v3519_v63  ;;  %v594_v5 = vsel %vm582_vm6, %v4454_v56, %v4659_v6 }
 0x140   : > { %v4754_v52 = vmul.u32.u64.low %v4673_v54, %v1221_v13  ;;  %v4755_v61 = vmul.u32.u64.high %v4673_v54, %v1221_v13, %v4754_v52  ;;  %v588_v40 = vsel %vm584_vm8, %v4454_v56, %v587_v17  ;;  %v595_v63 = vsel %vm585_vm7, %v581_v45, 1326507024  ;;  %2414 = vperm.xlu1 %3844, %v2388_v20  }
 0x141   : > { %v4770_v46 = vmul.u32.u64.low %v4398_v15, %v593_v32  ;;  %v4771_v42 = vmul.u32.u64.high %v4398_v15, %v593_v32, %v4770_v46  ;;  %v1038_v10 = vsub.s32 32, %v4655_v49  ;;  %v1213_v6 = vsel %vm1207_vm14, %v1210_v60, %v1212_v14 }
 0x142   : > { %v596_v1 = vsel %vm584_vm8, %v4661_v24, %v595_v63  ;;  %v678_v56 = vshrl.u32 %v6642_v0, %v4234_v26  ;;  %v1043_v33 = vadd.s32 127, %v1042_v55  ;;  %v3527_v21 = vadd.s32 4294967294, %v1346_v43 }
 0x143   : > { %v1232_v45 = vadd.s32 1, %v4743_v34  ;;  %v597_v17 = vsel %vm583_vm9, %v594_v5, %v596_v1  ;;  %v1022_v24 = vadd.s32 %v4485_v27, %v4490_v11  ;;  %v1126_v26 = vadd.s32 %v4521_v30, %v4527_v3  ;;  %v6648_v1 = vld [vmem:[#allocation9_spill] sm:$0xff] }
 0x144   : > { %v1146_v39 = vsub.s32 4294967266, %v4751_v16  ;;  %v589_v43 = vsel %vm583_vm9, %v4699_v50, %v588_v40  ;;  %v1229_v55 = vmul.u32 %v4673_v54, %v1213_v6  ;;  %vm1231_vm0 = vc.u32 %v4755_v61, %v4742_v57  ;;  %2424 = vperm.xlu1 %3844, %v2390_v4   ;;  %v6647_v6 = vld [vmem:[#allocation12_spill] sm:$0xff] }
 0x145   : > { %v4801_v18 = vmul.u32.u64.low %v4398_v15, %v597_v17  ;;  %v4802_v22 = vmul.u32.u64.high %v4398_v15, %v597_v17, %v4801_v18  ;;  %v1142_v27 = vsub.s32 32, %v4751_v16  ;;  %v1233_v11 = vsel %vm1231_vm0, %v1232_v45, %v4743_v34 }
 0x146   : > { %v608_v30 = vadd.s32 1, %v4771_v42  ;;  %v679_v3 = vor.u32 %v678_v56, %v4411_v59  ;;  %v1040_v48 = vshrl.u32 %v1022_v24, %v1038_v10  ;;  %v1044_v50 = vshll.u32 %v1043_v33, 23  ;;  %v6646_v10 = vld [vmem:[#allocation15_spill] sm:$0xff] }
 0x147   : > { %vm3528_vm1 = vcmp.lt.s32.totalorder %v3527_v21, 0  ;;  %v1234_v54 = vadd.s32 %v1233_v11, %v1229_v55  ;;  %v1147_v60 = vadd.s32 127, %v1146_v39  ;;  %v605_v14 = vmul.u32 %v4398_v15, %v589_v43 }
 0x148   : > { %vm686_vm2 = vcmp.lt.s32.totalorder %v4243_v37, 1  ;;  %vm688_vm3 = vcmp.lt.s32.totalorder %v4243_v37, 3  ;;  %vm607_vm4 = vc.u32 %v4802_v22, %v4770_v46  ;;  %v1144_v34 = vshrl.u32 %v1126_v26, %v1142_v27  ;;  %3369 = vperm.xlu1 %3844, %v3366_v58   ;;  %v6651_v26 = vld [vmem:[#allocation14_spill] sm:$0xff]  ;;  %v6652_v27 = vld [vmem:[#allocation8_spill] sm:$0xff] }
 0x149   : > { %v1235_v8 = vadd.s32 536870912, %v1234_v54  ;;  %v694_v59 = vsel %vm686_vm2, %v4400_v31, %v4420_v44  ;;  %v696_v13 = vsel %vm688_vm3, %v679_v3, %v4383_v25  ;;  %v4823_v32 = vsel %vm3528_vm1, 0, %v3527_v21  ;;  %v6650_v21 = vld [vmem:[#allocation7_spill] sm:$0xff] }
 0x14a   : > { %v609_v15 = vsel %vm607_vm4, %v608_v30, %v4771_v42  ;;  %vm687_vm5 = vcmp.lt.s32.totalorder %v4243_v37, 2  ;;  %v691_v5 = vsel %vm689_vm13, %v679_v3, 2102212464  ;;  %v698_v40 = vsel %vm686_vm2, %v4420_v44, %v679_v3 }
 0x14b   : > { %v4827_v20 = vshrl.u32 %v1235_v8, 30  ;;  %v610_v52 = vadd.s32 %v609_v15, %v605_v14  ;;  %v1148_v63 = vshll.u32 %v1147_v60, 23  ;;  %v697_v25 = vsel %vm687_vm5, %v694_v59, %v696_v13 }
 0x14c   : > { %v700_v42 = vsel %vm688_vm3, %v6647_v6, %v6646_v10  ;;  %v6649_v56 = vor.u32 8388608, %v6648_v1  ;;  %vm760_vm6 = vcmp.lt.s32.totalorder %v6650_v21, 0  ;;  %v1354_v45 = vsub.s32 4294967266, %v4823_v32 }
 0x14d   : > { %v1237_v17 = vshll.u32 %v4827_v20, 30  ;;  %v611_v4 = vadd.s32 536870912, %v610_v52  ;;  %v701_v24 = vsel %vm687_vm5, %v698_v40, %v700_v42  ;;  %v690_v39 = vsel %vm686_vm2, %v6651_v26, %v4400_v31  ;;  %v6653_v42 = vld [vmem:[#allocation6_spill] sm:$0xff] }
 0x14e   : > { %v702_v33 = vshll.u32 %v6649_v56, 8  ;;  %v692_v43 = vsel %vm688_vm3, %v4420_v44, %v691_v5  ;;  %vm864_vm13 = vcmp.lt.s32.totalorder %v6652_v27, 0  ;;  %v1039_v31 = vshll.u32 %v4541_v36, %v4655_v49 }
 0x14f   : > { %v4858_v11 = vsub.s32 %v1234_v54, %v1237_v17  ;;  %v4860_v30 = vshrl.u32 %v611_v4, 30  ;;  %v1045_v60 = vor.u32 4788187, %v1044_v50  ;;  %v1143_v44 = vshll.u32 %v4575_v23, %v4751_v16 }
 0x150   : > { %v4854_v55 = vmul.u32.u64.low %v702_v33, %v701_v24  ;;  %v4855_v18 = vmul.u32.u64.high %v702_v33, %v701_v24, %v4854_v55  ;;  %v4862_v3 = vmul.u32.u64.low %v702_v33, %v697_v25  ;;  %v4863_v58 = vmul.u32.u64.high %v702_v33, %v697_v25, %v4862_v3 }
 0x151   : > { %v1149_v14 = vor.u32 4788187, %v1148_v63  ;;  %v1350_v8 = vsub.s32 32, %v4823_v32  ;;  %v1240_v59 = vsub.s32 0, %v4858_v11  ;;  %v613_v54 = vshll.u32 %v4860_v30, 30 }
 0x152   : > { %v693_v13 = vsel %vm687_vm5, %v690_v39, %v692_v43  ;;  %v1041_v15 = vor.u32 %v1040_v48, %v1039_v31  ;;  %v1334_v5 = vadd.s32 %v4606_v29, %v4619_v9  ;;  %v1355_v40 = vadd.s32 127, %v1354_v45 }
 0x153   : > { %vm711_vm7 = vc.u32 %v4855_v18, %v4862_v3  ;;  %v1145_v36 = vor.u32 %v1144_v34, %v1143_v44  ;;  %v3522_v23 = vmin.u32 %v1240_v59, %v4858_v11  ;;  %v4880_v49 = vsub.s32 %v610_v52, %v613_v54 }
 0x154   : > { %v712_v16 = vadd.s32 1, %v4863_v58  ;;  %v946_v50 = vxor.u32 2147483648, %v4669_v53  ;;  %v1046_v63 = vand.u32 2147483647, %v1045_v60  ;;  %v1150_v37 = vand.u32 2147483647, %v1149_v14 }
 0x155   : > { %v709_v25 = vmul.u32 %v702_v33, %v693_v13  ;;  %v1352_v48 = vshrl.u32 %v1334_v5, %v1350_v8  ;;  %v1242_v10 = vclz %v3522_v23  ;;  %v616_v29 = vsub.s32 0, %v4880_v49 }
 0x156   : > { %v713_v9 = vsel %vm711_vm7, %v712_v16, %v4863_v58  ;;  %v843_v34 = vsel %vm760_vm6, %v842_v41, %v4633_v19  ;;  %v1048_v52 = vcvt.s32.f32 %v1041_v15  ;;  %v1356_v6 = vshll.u32 %v1355_v40, 23  ;;  %v6654_v19 = vld [vmem:[#allocation10_spill] sm:$0xff] }
 0x157   : > { %vm552_vm8 = vcmp.lt.s32.totalorder %v6653_v42, 0  ;;  %v714_v1 = vadd.s32 %v713_v9, %v709_v25  ;;  %v1152_v56 = vcvt.s32.f32 %v1145_v36  ;;  %v1351_v33 = vshll.u32 %v4704_v7, %v4823_v32 }
 0x158   : > { %v3523_v45 = vadd.s32 4294967294, %v1242_v10  ;;  %v3498_v17 = vmin.u32 %v616_v29, %v4880_v49  ;;  %v947_v4 = vsel %vm864_vm13, %v946_v50, %v4669_v53  ;;  %v4898_v24 = vmul.f32 %v1048_v52, %v1046_v63 }
 0x159   : > { %v715_v26 = vadd.s32 536870912, %v714_v1  ;;  %v844_v41 = vsub.s32 4, %v6654_v19  ;;  %v4901_v39 = vmul.f32 %v1152_v56, %v1150_v37  ;;  %v1353_v43 = vor.u32 %v1352_v48, %v1351_v33 }
 0x15a   : > { %vm3524_vm9 = vcmp.lt.s32.totalorder %v3523_v45, 0  ;;  %v618_v55 = vclz %v3498_v17  ;;  %v1357_v58 = vor.u32 4788187, %v1356_v6  ;;  %v6655_v32 = vand.u32 2147483647, %v6650_v21  ;;  %v6664_v6 = vld [vmem:[#allocation16_spill] sm:$0xff] }
 0x15b   : > { %v1245_v31 = vsel %vm3524_vm9, 0, %v3523_v45  ;;  %v4903_v7 = vshrl.u32 %v715_v26, 30  ;;  %v636_v14 = vsub.s32 4, %v4860_v30  ;;  %v1230_v59 = vadd.s32 %v4742_v57, %v4755_v61  ;;  %v6666_v17 = vld [vmem:[#allocation5_spill] sm:$0xff] }
 0x15c   : > { %vm4907_vm10 = vcmp.le.f32.partialorder %v6655_v32, 0.7853982  ;;  %v1250_v53 = vsub.s32 4294967266, %v1245_v31  ;;  %v3499_v44 = vadd.s32 4294967294, %v618_v55  ;;  %v1246_v54 = vsub.s32 32, %v1245_v31 }
 0x15d   : > { %v846_v8 = vsel %vm4907_vm10, %v6650_v21, %v843_v34  ;;  %v6658_v13 = vand.u32 2147483647, %v6653_v42  ;;  %v717_v5 = vshll.u32 %v4903_v7, 30  ;;  %v845_v40 = vsel %vm760_vm6, %v844_v41, %v6654_v19  ;;  %v6667_v19 = vld [vmem:[#allocation13_spill] sm:$0xff] }
 0x15e   : > { %v1360_v36 = vcvt.s32.f32 %v1353_v43  ;;  %v1251_v23 = vadd.s32 127, %v1250_v53  ;;  %v606_v16 = vadd.s32 %v4770_v46, %v4802_v22  ;;  %vm3500_vm12 = vcmp.lt.s32.totalorder %v3499_v44, 0 }
 0x15f   : > { %vm4919_vm11 = vcmp.le.f32.partialorder %v6658_v13, 0.7853982  ;;  %v1358_v57 = vand.u32 2147483647, %v1357_v58  ;;  %v621_v61 = vsel %vm3500_vm12, 0, %v3499_v44  ;;  %v4929_v50 = vsub.s32 %v714_v1, %v717_v5 }
 0x160   : > { %3854 = vcosq.f32 %v846_v8  ;;  %v1252_v63 = vshll.u32 %v1251_v23, 23  ;;  %v622_v37 = vsub.s32 32, %v621_v61  ;;  %v637_v25 = vsel %vm552_vm8, %v636_v14, %v4860_v30  ;;  %v6665_v30 = vld [vmem:[#allocation11_spill] sm:$0xff] }
 0x161   : > { %v847_v48 = vsel %vm4907_vm10, 0, %v845_v40  ;;  %v1248_v10 = vshrl.u32 %v1230_v59, %v1246_v54  ;;  %v626_v29 = vsub.s32 4294967266, %v621_v61  ;;  %v720_v9 = vsub.s32 0, %v4929_v50 }
 0x162   : > { %3856 = vsinq.f32 %v846_v8  ;;  %v1247_v46 = vshll.u32 %v4858_v11, %v1245_v31  ;;  %v624_v22 = vshrl.u32 %v606_v16, %v622_v37  ;;  %v6661_v34 = vand.u32 2147483647, %v6652_v27 }
 0x163   : > { %v948_v1 = vsub.s32 4, %v6664_v6  ;;  %vm968_vm15 = vcmp.lt.s32.totalorder %v6665_v30, 0  ;;  %v1253_v56 = vor.u32 4788187, %v1252_v63  ;;  %v623_v33 = vshll.u32 %v4880_v49, %v621_v61 }
 0x164   : > { %vm4940_vm14 = vcmp.le.f32.partialorder %v6661_v34, 0.7853982  ;;  %v627_v45 = vadd.s32 127, %v626_v29  ;;  %vm656_vm0 = vcmp.lt.s32.totalorder %v6666_v17, 0  ;;  %v3502_v26 = vmin.u32 %v720_v9, %v4929_v50 }
 0x165   : > { %v1050_v11 = vxor.u32 2147483648, %v4898_v24  ;;  %vm1072_vm1 = vcmp.lt.s32.totalorder %v6667_v19, 0  ;;  %v1361_v41 = vmul.f32 %v1360_v36, %v1358_v57  ;;  %v950_v43 = vsel %vm4940_vm14, %v6652_v27, %v947_v4 }
 0x166   : > { %vm1280_vm2 = vcmp.lt.s32.totalorder %v4461_v12, 0  ;;  %v1249_v55 = vor.u32 %v1248_v10, %v1247_v46  ;;  %v625_v58 = vor.u32 %v624_v22, %v623_v33  ;;  %v628_v31 = vshll.u32 %v627_v45, 23 }
 0x167   : > { %v722_v49 = vclz %v3502_v26  ;;  %v1154_v32 = vxor.u32 2147483648, %v4901_v39  ;;  %v639_v60 = vsel %vm4919_vm11, 0, %v637_v25  ;;  %v851_v53 = vadd.s32 3, %v847_v48 }
 0x168   : > { %v949_v44 = vsel %vm864_vm13, %v948_v1, %v6664_v6  ;;  %v1254_v14 = vand.u32 2147483647, %v1253_v56  ;;  %v629_v8 = vor.u32 4788187, %v628_v31  ;;  %v6668_v4 = vand.u32 2147483647, %v6666_v17 }
 0x169   : > { %v3503_v54 = vadd.s32 4294967294, %v722_v49  ;;  %3858 = vsinq.f32 %v950_v43  ;;  %v1362_v13 = vxor.u32 2147483648, %v1361_v41  ;;  %v710_v5 = vadd.s32 %v4862_v3, %v4855_v18 }
 0x16a   : > { %vm4963_vm3 = vcmp.le.f32.partialorder %v6668_v4, 0.7853982  ;;  %v740_v40 = vsub.s32 4, %v4903_v7  ;;  %3860 = vcosq.f32 %v950_v43  ;;  %v4970_v36 = vpop.eup %3854  ;;  %v1256_v23 = vcvt.s32.f32 %v1249_v55 }
 0x16b   : > { %v630_v16 = vand.u32 2147483647, %v629_v8  ;;  %v632_v57 = vcvt.s32.f32 %v625_v58  ;;  %vm3504_vm4 = vcmp.lt.s32.totalorder %v3503_v54, 0  ;;  %v643_v61 = vadd.s32 3, %v639_v60 }
 0x16c   : > { %v725_v63 = vsel %vm3504_vm4, 0, %v3503_v54  ;;  %v4972_v37 = vand.u32 3, %v851_v53  ;;  %v951_v25 = vsel %vm4940_vm14, 0, %v949_v44  ;;  %v3857_v48 = vpop.eup %3856  ;;  %v1257_v10 = vmul.f32 %v1256_v23, %v1254_v14  ;;  %v6677_v44 = vld [vmem:[#allocation17_spill] sm:$0xff] }
 0x16d   : > { %v633_v29 = vmul.f32 %v632_v57, %v630_v16  ;;  %v726_v18 = vsub.s32 32, %v725_v63  ;;  %v730_v3 = vsub.s32 4294967266, %v725_v63  ;;  %v1051_v9 = vsel %vm968_vm15, %v1050_v11, %v4898_v24 }
 0x16e   : > { %v1155_v46 = vsel %vm1072_vm1, %v1154_v32, %v4901_v39  ;;  %vm1176_vm5 = vcmp.lt.s32.totalorder %v4547_v62, 0  ;;  %v741_v22 = vsel %vm656_vm0, %v740_v40, %v4903_v7  ;;  %v727_v52 = vshll.u32 %v4929_v50, %v725_v63 }
 0x16f   : > { %v634_v34 = vxor.u32 2147483648, %v633_v29  ;;  %v728_v6 = vshrl.u32 %v710_v5, %v726_v18  ;;  %v731_v1 = vadd.s32 127, %v730_v3  ;;  %v4989_v56 = vsel %vm1280_vm2, %v1362_v13, %v1361_v41 }
 0x170   : > { %v4991_v24 = vand.u32 3, %v643_v61  ;;  %vm854_vm6 = vcmp.eq.s32.totalorder %v4972_v37, 0  ;;  %v955_v39 = vadd.s32 3, %v951_v25  ;;  %v1258_v33 = vxor.u32 2147483648, %v1257_v10 }
 0x171   : > { %v635_v45 = vsel %vm552_vm8, %v634_v34, %v633_v29  ;;  %v729_v26 = vor.u32 %v728_v6, %v727_v52  ;;  %v732_v7 = vshll.u32 %v731_v1, 23  ;;  %vm857_vm13 = vcmp.eq.s32.totalorder %v4972_v37, 2 }
 0x172   : > { %v638_v50 = vsel %vm4919_vm11, %v6653_v42, %v635_v45  ;;  %v743_v11 = vsel %vm4963_vm3, 0, %v741_v22  ;;  %v855_v41 = vxor.u32 2147483648, %v3857_v48  ;;  %v858_v43 = vxor.u32 2147483648, %v4970_v36 }
 0x173   : > { %v3859_v55 = vpop.eup %3858  ;;  %3862 = vcosq.f32 %v638_v50  ;;  %v733_v58 = vor.u32 4788187, %v732_v7  ;;  %v6671_v31 = vand.u32 2147483647, %v6665_v30  ;;  %v6674_v32 = vand.u32 2147483647, %v6667_v19 }
 0x174   : > { %v3861_v60 = vpop.eup %3860  ;;  %3864 = vsinq.f32 %v638_v50  ;;  %v956_v53 = vand.u32 3, %v955_v39  ;;  %v1052_v14 = vsub.s32 4, %v6677_v44  ;;  %v1259_v4 = vsel %vm1176_vm5, %v1258_v33, %v1257_v10 }
 0x175   : > { %vm5005_vm7 = vcmp.le.f32.partialorder %v6671_v31, 0.7853982  ;;  %vm5011_vm8 = vcmp.le.f32.partialorder %v6674_v32, 0.7853982  ;;  %v734_v54 = vand.u32 2147483647, %v733_v58  ;;  %v736_v13 = vcvt.s32.f32 %v729_v26 }
 0x176   : > { %v1158_v8 = vsel %vm5011_vm8, %v6667_v19, %v1155_v46  ;;  %v1156_v5 = vsub.s32 4, %v4565_v38  ;;  %v747_v40 = vadd.s32 3, %v743_v11  ;;  %v856_v23 = vsel %vm854_vm6, %v4970_v36, %v855_v41 }
 0x177   : > { %v959_v16 = vxor.u32 2147483648, %v3859_v55  ;;  %v1054_v57 = vsel %vm5005_vm7, %v6665_v30, %v1051_v9  ;;  %v737_v61 = vmul.f32 %v736_v13, %v734_v54  ;;  %v962_v63 = vxor.u32 2147483648, %v3861_v60 }
 0x178   : > { %3866 = vcosq.f32 %v1158_v8  ;;  %v6678_v25 = vand.u32 2147483647, %v4547_v62  ;;  %vm958_vm10 = vcmp.eq.s32.totalorder %v956_v53, 0  ;;  %v1053_v29 = vsel %vm968_vm15, %v1052_v14, %v6677_v44 }
 0x179   : > { %3868 = vsinq.f32 %v1158_v8  ;;  %v738_v18 = vxor.u32 2147483648, %v737_v61  ;;  %vm850_vm11 = vweird.f32 %v6650_v21  ;;  %v1157_v3 = vsel %vm1072_vm1, %v1156_v5, %v4565_v38 }
 0x17a   : > { %vm5030_vm9 = vcmp.le.f32.partialorder %v6678_v25, 0.7853982  ;;  %3870 = vcosq.f32 %v1054_v57  ;;  %v1260_v9 = vsub.s32 4, %v4827_v20  ;;  %v859_v46 = vsel %vm857_vm13, %v858_v43, %v3857_v48 }
 0x17b   : > { %v1262_v36 = vsel %vm5030_vm9, %v4547_v62, %v1259_v4  ;;  %v960_v22 = vsel %vm958_vm10, %v3861_v60, %v959_v16  ;;  %vm961_vm12 = vcmp.eq.s32.totalorder %v956_v53, 2  ;;  %3872 = vsinq.f32 %v1054_v57 }
 0x17c   : > { %v739_v34 = vsel %vm656_vm0, %v738_v18, %v737_v61  ;;  %v963_v52 = vsel %vm961_vm12, %v962_v63, %v3859_v55  ;;  %v1055_v6 = vsel %vm5005_vm7, 0, %v1053_v29  ;;  %3874 = vcosq.f32 %v1262_v36 }
 0x17d   : > { %v742_v38 = vsel %vm4963_vm3, %v6666_v17, %v739_v34  ;;  %v1159_v1 = vsel %vm5011_vm8, 0, %v1157_v3  ;;  %3876 = vsinq.f32 %v1262_v36  ;;  %v1364_v48 = vsub.s32 4, %v4679_v28  ;;  %v3863_v39 = vpop.eup %3862 }
 0x17e   : > { %3878 = vcosq.f32 %v742_v38  ;;  %vm853_vm14 = vcmp.lt.s32.totalorder %v4972_v37, 2  ;;  %v1261_v33 = vsel %vm1176_vm5, %v1260_v9, %v4827_v20  ;;  %v6681_v45 = vand.u32 2147483647, %v4461_v12  ;;  %v3865_v59 = vpop.eup %3864 }
 0x17f   : > { %3880 = vsinq.f32 %v742_v38  ;;  %vm957_vm0 = vcmp.lt.s32.totalorder %v956_v53, 2  ;;  %v1059_v7 = vadd.s32 3, %v1055_v6  ;;  %vm645_vm1 = vcmp.lt.s32.totalorder %v4991_v24, 2 }
 0x180   : > { %vm5063_vm15 = vcmp.le.f32.partialorder %v6681_v45, 0.7853982  ;;  %vm646_vm3 = vcmp.eq.s32.totalorder %v4991_v24, 0  ;;  %v860_v20 = vsel %vm853_vm14, %v856_v23, %v859_v46  ;;  %v964_v37 = vsel %vm957_vm0, %v960_v22, %v963_v52 }
 0x181   : > { %v1366_v50 = vsel %vm5063_vm15, %v4461_v12, %v4989_v56  ;;  %v1163_v11 = vadd.s32 3, %v1159_v1  ;;  %vm649_vm4 = vcmp.eq.s32.totalorder %v4991_v24, 2  ;;  %v5074_v41 = vand.u32 3, %v747_v40  ;;  %v3846_v56 = vld [vmem:[%s6565_s3] sm:$0xff]  }
 0x182   : > { %v1263_v43 = vsel %vm5030_vm9, 0, %v1261_v33  ;;  %v1365_v55 = vsel %vm1280_vm2, %v1364_v48, %v4679_v28  ;;  %v3867_v58 = vpop.eup %3866  ;;  %v647_v31 = vxor.u32 2147483648, %v3865_v59  ;;  %v650_v49 = vxor.u32 2147483648, %v3863_v39 }
 0x183   : > { %vm954_vm5 = vweird.f32 %v6652_v27  ;;  %3882 = vcosq.f32 %v1366_v50  ;;  %v3869_v32 = vpop.eup %3868  ;;  %vm642_vm6 = vweird.f32 %v6653_v42  ;;  %v861_v15 = vsel %vm850_vm11, nan, %v860_v20 }
 0x184   : > { %v965_v60 = vsel %vm954_vm5, nan, %v964_v37  ;;  %v1060_v53 = vand.u32 3, %v1059_v7  ;;  %3884 = vsinq.f32 %v1366_v50  ;;  %v3871_v28 = vpop.eup %3870  ;;  %v1164_v44 = vand.u32 3, %v1163_v11 }
 0x185   : > { %v1267_v14 = vadd.s32 3, %v1263_v43  ;;  %v1367_v8 = vsel %vm5063_vm15, 0, %v1365_v55  ;;  %vm1462_vm2 = vcmask 523264   ;;  %v3873_v4 = vpop.eup %3872  ;;  %vm746_vm13 = vweird.f32 %v6666_v17 }
 0x186   : > { %vm749_vm7 = vcmp.lt.s32.totalorder %v5074_v41, 2  ;;  %vm750_vm8 = vcmp.eq.s32.totalorder %v5074_v41, 0  ;;  %vm753_vm9 = vcmp.eq.s32.totalorder %v5074_v41, 2  ;;  %v1170_v21 = vxor.u32 2147483648, %v3867_v58  ;;  %3644 = vmatprep.mubr.msk.bf16.mxu0 %vm1462_vm2, %v3846_v56  ;;  %v3875_v27 = vpop.eup %3874 }
 0x187   : > { %v648_v54 = vsel %vm646_vm3, %v3863_v39, %v647_v31  ;;  %v651_v13 = vsel %vm649_vm4, %v650_v49, %v3865_v59  ;;  %v1391_v5 = vpack.c.bf16 %v965_v60, %v861_v15  ;;  %v1167_v40 = vxor.u32 2147483648, %v3869_v32  ;;  %v3877_v23 = vpop.eup %3876 }
 0x188   : > { %vm1061_vm10 = vcmp.lt.s32.totalorder %v1060_v53, 2  ;;  %vm1062_vm11 = vcmp.eq.s32.totalorder %v1060_v53, 0  ;;  %v1066_v16 = vxor.u32 2147483648, %v3871_v28  ;;  %vm1162_vm12 = vweird.f32 %v6667_v19  ;;  %v3879_v61 = vpop.eup %3878 }
 0x189   : > { %v1371_v57 = vadd.s32 3, %v1367_v8  ;;  %v1063_v63 = vxor.u32 2147483648, %v3873_v4  ;;  %vm1065_vm14 = vcmp.eq.s32.totalorder %v1060_v53, 2  ;;  %vm1169_vm15 = vcmp.eq.s32.totalorder %v1164_v44, 2  ;;  %v3881_v10 = vpop.eup %3880 }
 0x18a   : > { %v1268_v25 = vand.u32 3, %v1267_v14  ;;  %v652_v29 = vsel %vm645_vm1, %v648_v54, %v651_v13  ;;  %v754_v36 = vxor.u32 2147483648, %v3879_v61  ;;  %vm1166_vm0 = vcmp.eq.s32.totalorder %v1164_v44, 0 }
 0x18b   : > { %v1171_v18 = vsel %vm1169_vm15, %v1170_v21, %v3869_v32  ;;  %v751_v3 = vxor.u32 2147483648, %v3881_v10  ;;  %v1168_v9 = vsel %vm1166_vm0, %v3867_v58, %v1167_v40  ;;  %v1271_v46 = vxor.u32 2147483648, %v3877_v23  ;;  %v3848_v32 = vld [vmem:[%s6565_s3 + $0x10] sm:$0xff]  }
 0x18c   : > { %v1274_v22 = vxor.u32 2147483648, %v3875_v27  ;;  %v755_v34 = vsel %vm753_vm9, %v754_v36, %v3881_v10  ;;  %v1067_v52 = vsel %vm1065_vm14, %v1066_v16, %v3873_v4  ;;  %vm1165_vm3 = vcmp.lt.s32.totalorder %v1164_v44, 2 }
 0x18d   : > { %v1372_v6 = vand.u32 3, %v1371_v57  ;;  %v3883_v38 = vpop.eup %3882  ;;  %v653_v1 = vsel %vm642_vm6, nan, %v652_v29  ;;  %v752_v24 = vsel %vm750_vm8, %v3879_v61, %v751_v3  ;;  %v1064_v48 = vsel %vm1062_vm11, %v3871_v28, %v1063_v63 }
 0x18e   : > { %vm1270_vm1 = vcmp.eq.s32.totalorder %v1268_v25, 0  ;;  %v3885_v39 = vpop.eup %3884  ;;  %v756_v33 = vsel %vm749_vm7, %v752_v24, %v755_v34  ;;  %v1172_v45 = vsel %vm1165_vm3, %v1168_v9, %v1171_v18  ;;  %vm1273_vm4 = vcmp.eq.s32.totalorder %v1268_v25, 2 }
 0x18f   : > { %v1378_v26 = vxor.u32 2147483648, %v3883_v38  ;;  %v757_v59 = vsel %vm746_vm13, nan, %v756_v33  ;;  %v1272_v7 = vsel %vm1270_vm1, %v3875_v27, %v1271_v46  ;;  %v1275_v50 = vsel %vm1273_vm4, %v1274_v22, %v3877_v23 }
 0x190   : > { %v1375_v42 = vxor.u32 2147483648, %v3885_v39  ;;  %v1390_v20 = vpack.c.bf16 %v757_v59, %v653_v1  ;;  %v1068_v37 = vsel %vm1061_vm10, %v1064_v48, %v1067_v52  ;;  %vm1374_vm5 = vcmp.eq.s32.totalorder %v1372_v6, 0 }
 0x191   : > { %vm1377_vm6 = vcmp.eq.s32.totalorder %v1372_v6, 2  ;;  %v1173_v11 = vsel %vm1162_vm12, nan, %v1172_v45  ;;  %vm1269_vm8 = vcmp.lt.s32.totalorder %v1268_v25, 2  ;;  %vm1058_vm7 = vweird.f32 %v6665_v30  ;;  %v3847_v30 = vld [vmem:[%s6565_s3 + $0x8] sm:$0xff]  }
 0x192   : > { %v1376_v41 = vsel %vm1374_vm5, %v3883_v38, %v1375_v42  ;;  %v1379_v43 = vsel %vm1377_vm6, %v1378_v26, %v3885_v39  ;;  %3636 = vmatprep.subr.bf16.mxu0 %v1390_v20  ;;  %v1276_v55 = vsel %vm1269_vm8, %v1272_v7, %v1275_v50  ;;  %v1069_v17 = vsel %vm1058_vm7, nan, %v1068_v37 }
 0x193   : > { %3637 = vmatpush3.bf16.msra.mxu0 %v1390_v20  ;;  %vm1373_vm13 = vcmp.lt.s32.totalorder %v1372_v6, 2  ;;  %v1392_v56 = vpack.c.bf16 %v1173_v11, %v1069_v17  ;;  %vm1266_vm9 = vweird.f32 %v4547_v62  ;;  %vm1370_vm10 = vweird.f32 %v4461_v12  ;;  %v3849_v12 = vld [vmem:[%s6565_s3 + $0x18] sm:$0xff]  }
 0x194   : > { %3638 = vmatprep.subr.bf16.mxu0 %v1391_v5  ;;  %v1380_v58 = vsel %vm1373_vm13, %v1376_v41, %v1379_v43  ;;  %v1277_v31 = vsel %vm1266_vm9, nan, %v1276_v55 }
 0x195   : > { %v1381_v19 = vsel %vm1370_vm10, nan, %v1380_v58 }
 0x196   : > { %v1393_v49 = vpack.c.bf16 %v1381_v19, %v1277_v31  ;;  %v6684_v31 = vmov 920167782  }
 0x197   : > { %3639 = vmatpush3.bf16.msra.mxu0 %v1391_v5 }
 0x198   : > { %3640 = vmatprep.subr.bf16.mxu0 %v1392_v56 }
 0x19b   : > { %3641 = vmatpush3.bf16.msra.mxu0 %v1392_v56 }
 0x19c   : > { %3642 = vmatprep.subr.bf16.mxu0 %v1393_v49 }
 0x19f   : > { %3643 = vmatpush3.bf16.msra.mxu0 %v1393_v49 }
 0x1a0   : > { %v1415_v60 = vpop.permute.xlu0 %1414 }
 0x1a2   : > { %3645 = vmatmul.mubr.msk.bf16.vlgmr.msra.gmra.mrb[0].mxu0 %vm1462_vm2, %v3847_v30 }
 0x1a3   : > { %3648 = vmatprep.mubr.msk.bf16.mxu0 %vm1462_vm2, %v3848_v32  ;;  %v1405_v62 = vpop.permute.xlu1 %1404 }
 0x1a7   : > { %v1410_v15 = vpop.permute.xlu1 %1409 }
 0x1aa   : > { %3649 = vmatmul.mubr.msk.bf16.gmra.mrb[4].mxu0 %vm1462_vm2, %v3849_v12 }
 0x1ab   : > { %v1420_v14 = vpop.permute.xlu1 %1419 }
 0x275   : > { %v3646_v53 = vpop.f32.mrb[0].mxu0 }
 0x276   : > { %v5131_v28 = vadd.f32 %v3646_v53, %v1415_v60  ;;  %v1509_v44 = vpop.f32.mrb[1].mxu0 }
 0x277   : > { %v5133_v8 = vadd.f32 %v1509_v44, %v1405_v62  ;;  %v3647_v4 = vpop.f32.mrb[2].mxu0 }
 0x278   : > { %v1748_v21 = vand.u32 2147483647, %v5131_v28  ;;  %v1751_v27 = vand.u32 2139095040, %v5131_v28  ;;  %v5137_v54 = vadd.f32 %v3647_v4, %v1420_v14  ;;  %v1512_v13 = vpop.f32.mrb[3].mxu0 }
 0x279   : > { %v1540_v5 = vand.u32 2147483647, %v5133_v8  ;;  %v1543_v40 = vand.u32 2139095040, %v5133_v8  ;;  %v5143_v57 = vadd.f32 %v1512_v13, %v1410_v15 }
 0x27a   : > { %v1752_v23 = vshrl.u32 %v1751_v27, 23  ;;  %v1755_v16 = vand.u32 8388607, %v1748_v21  ;;  %v1852_v25 = vand.u32 2147483647, %v5137_v54  ;;  %v1855_v10 = vand.u32 2139095040, %v5137_v54 }
 0x27b   : > { %v1544_v61 = vshrl.u32 %v1543_v40, 23  ;;  %v1547_v63 = vand.u32 8388607, %v1540_v5  ;;  %v1647_v34 = vand.u32 2139095040, %v5143_v57 }
 0x27c   : > { %v3545_v29 = vadd.s32 4294967169, %v1752_v23  ;;  %v1756_v36 = vor.u32 8388608, %v1755_v16  ;;  %v1856_v3 = vshrl.u32 %v1855_v10, 23  ;;  %v5156_v1 = vand.u32 8388607, %v1852_v25 }
 0x27d   : > { %v3537_v18 = vadd.s32 4294967169, %v1544_v61  ;;  %v5149_v9 = vpop.f32.mrb[4].mxu0  ;;  %v1548_v22 = vor.u32 8388608, %v1547_v63  ;;  %v1648_v48 = vshrl.u32 %v1647_v34, 23 }
 0x27e   : > { %v1758_v46 = vadd.s32 1, %v3545_v29  ;;  %v5152_v52 = vpop.f32.mrb[5].mxu0  ;;  %v3549_v38 = vadd.s32 4294967169, %v1856_v3  ;;  %v5162_v45 = vshll.u32 %v1756_v36, 8  ;;  %v1860_v37 = vor.u32 8388608, %v5156_v1 }
 0x27f   : > { %v1550_v6 = vadd.s32 1, %v3537_v18  ;;  %v5158_v24 = vpop.f32.mrb[6].mxu0  ;;  %v5164_v50 = vshll.u32 %v1548_v22, 8  ;;  %v5173_v17 = vadd.s32 4294967169, %v1648_v48 }
 0x280   : > { %vm1759_vm11 = vcmp.gt.s32.totalorder %v1758_v46, 0  ;;  %v5160_v39 = vpop.f32.mrb[7].mxu0  ;;  %v5169_v11 = vadd.s32 1, %v3549_v38 }
 0x281   : > { %v1760_v33 = vsel %vm1759_vm11, %v1758_v46, 0  ;;  %vm1551_vm12 = vcmp.gt.s32.totalorder %v1550_v6, 0 }
 0x282   : > { %v1761_v26 = vshrl.u32 %v1760_v33, 5  ;;  %v1762_v59 = vand.u32 31, %v1760_v33  ;;  %v1552_v7 = vsel %vm1551_vm12, %v1550_v6, 0  ;;  %vm1863_vm1 = vcmp.gt.s32.totalorder %v5169_v11, 0 }
 0x283   : > { %v5166_v42 = vshrl.u32 %v1552_v7, 5  ;;  %v1554_v20 = vand.u32 31, %v1552_v7 }
 0x284   : > { %v1763_v41 = vsub.s32 32, %v1762_v59  ;;  %v1765_v43 = vshll.u32 %v6639_v47, %v1762_v59  ;;  %v1768_v55 = vshll.u32 %v6640_v35, %v1762_v59  ;;  %v1771_v56 = vshll.u32 %v6641_v51, %v1762_v59 }
 0x285   : > { %v1774_v58 = vshll.u32 %v6642_v0, %v1762_v59  ;;  %v1777_v19 = vshll.u32 %v6684_v31, %v1762_v59  ;;  %vm1780_vm14 = vcmp.lt.s32.totalorder %v1761_v26, 1  ;;  %vm1781_vm15 = vcmp.lt.s32.totalorder %v1761_v26, 2 }
 0x286   : > { %v1766_v49 = vshrl.u32 %v6640_v35, %v1763_v41  ;;  %v1769_v30 = vshrl.u32 %v6641_v51, %v1763_v41  ;;  %v1772_v32 = vshrl.u32 %v6642_v0, %v1763_v41  ;;  %v1764_v12 = vshrl.u32 %v6639_v47, %v1763_v41 }
 0x287   : > { %v1775_v62 = vshrl.u32 %v6684_v31, %v1763_v41  ;;  %v1778_v15 = vshrl.u32 %v6643_v2, %v1763_v41  ;;  %vm1782_vm0 = vcmp.lt.s32.totalorder %v1761_v26, 3  ;;  %v1555_v14 = vsub.s32 32, %v1554_v20 }
 0x288   : > { %v1767_v60 = vor.u32 %v1766_v49, %v1765_v43  ;;  %v1770_v53 = vor.u32 %v1769_v30, %v1768_v55  ;;  %v1773_v44 = vor.u32 %v1772_v32, %v1771_v56  ;;  %vm1783_vm3 = vcmp.lt.s32.totalorder %v1761_v26, 4 }
 0x289   : > { %v1776_v4 = vor.u32 %v1775_v62, %v1774_v58  ;;  %v1779_v27 = vor.u32 %v1778_v15, %v1777_v19  ;;  %v1557_v13 = vshll.u32 %v6639_v47, %v1554_v20  ;;  %v1560_v36 = vshll.u32 %v6640_v35, %v1554_v20 }
 0x28a   : > { %v1784_v40 = vsel %vm1780_vm14, %v1764_v12, %v1767_v60  ;;  %v1785_v23 = vsel %vm1783_vm3, %v1773_v44, 2102212464  ;;  %v1788_v16 = vsel %vm1780_vm14, %v1767_v60, %v1770_v53  ;;  %v1792_v61 = vsel %vm1780_vm14, %v1770_v53, %v1773_v44 }
 0x28b   : > { %v1786_v63 = vsel %vm1782_vm0, %v1770_v53, %v1785_v23  ;;  %v1789_v10 = vsel %vm1783_vm3, %v1776_v4, 920167782  ;;  %v1793_v29 = vsel %vm1783_vm3, %v1779_v27, 1326507024  ;;  %v1556_v46 = vshrl.u32 %v6639_v47, %v1555_v14 }
 0x28c   : > { %v1790_v18 = vsel %vm1782_vm0, %v1773_v44, %v1789_v10  ;;  %v1794_v3 = vsel %vm1782_vm0, %v1776_v4, %v1793_v29  ;;  %v1558_v22 = vshrl.u32 %v6640_v35, %v1555_v14  ;;  %v1787_v34 = vsel %vm1781_vm15, %v1784_v40, %v1786_v63 }
 0x28d   : > { %v1791_v6 = vsel %vm1781_vm15, %v1788_v16, %v1790_v18  ;;  %v1795_v38 = vsel %vm1781_vm15, %v1792_v61, %v1794_v3  ;;  %v1561_v48 = vshrl.u32 %v6641_v51, %v1555_v14  ;;  %v1563_v56 = vshll.u32 %v6641_v51, %v1554_v20 }
 0x28e   : > { %v5200_v33 = vmul.u32.u64.low %v5162_v45, %v1795_v38  ;;  %v5201_v59 = vmul.u32.u64.high %v5162_v45, %v1795_v38, %v5200_v33  ;;  %v5204_v7 = vmul.u32.u64.low %v5162_v45, %v1791_v6  ;;  %v5205_v41 = vmul.u32.u64.high %v5162_v45, %v1791_v6, %v5204_v7 }
 0x28f   : > { %v1559_v43 = vor.u32 %v1558_v22, %v1557_v13  ;;  %v1562_v55 = vor.u32 %v1561_v48, %v1560_v36  ;;  %v1564_v58 = vshrl.u32 %v6642_v0, %v1555_v14  ;;  %v1803_v26 = vmul.u32 %v5162_v45, %v1787_v34 }
 0x290   : > { %v1566_v19 = vshll.u32 %v6642_v0, %v1554_v20  ;;  %v1567_v49 = vshrl.u32 %v6684_v31, %v1555_v14  ;;  %v1570_v30 = vshrl.u32 %v6643_v2, %v1555_v14  ;;  %v1569_v12 = vshll.u32 %v6684_v31, %v1554_v20 }
 0x291   : > { %v1565_v32 = vor.u32 %v1564_v58, %v1563_v56  ;;  %vm1572_vm4 = vcmp.lt.s32.totalorder %v5166_v42, 1  ;;  %vm1573_vm5 = vcmp.lt.s32.totalorder %v5166_v42, 2  ;;  %vm1805_vm6 = vc.u32 %v5201_v59, %v5204_v7 }
 0x292   : > { %v1806_v62 = vadd.s32 1, %v5205_v41  ;;  %v1568_v15 = vor.u32 %v1567_v49, %v1566_v19  ;;  %vm1574_vm8 = vcmp.lt.s32.totalorder %v5166_v42, 3  ;;  %v1571_v45 = vor.u32 %v1570_v30, %v1569_v12 }
 0x293   : > { %vm1575_vm7 = vcmp.lt.s32.totalorder %v5166_v42, 4  ;;  %v1576_v60 = vsel %vm1572_vm4, %v1556_v46, %v1559_v43  ;;  %v1580_v53 = vsel %vm1572_vm4, %v1559_v43, %v1562_v55  ;;  %v1584_v4 = vsel %vm1572_vm4, %v1562_v55, %v1565_v32 }
 0x294   : > { %v1807_v44 = vsel %vm1805_vm6, %v1806_v62, %v5205_v41  ;;  %v1577_v20 = vsel %vm1575_vm7, %v1565_v32, 2102212464  ;;  %v1581_v14 = vsel %vm1575_vm7, %v1568_v15, 920167782  ;;  %v1585_v23 = vsel %vm1575_vm7, %v1571_v45, 1326507024 }
 0x295   : > { %v1808_v27 = vadd.s32 %v1807_v44, %v1803_v26  ;;  %v1578_v13 = vsel %vm1574_vm8, %v1562_v55, %v1577_v20  ;;  %v1582_v40 = vsel %vm1574_vm8, %v1565_v32, %v1581_v14  ;;  %v1586_v63 = vsel %vm1574_vm8, %v1568_v15, %v1585_v23 }
 0x296   : > { %v1579_v16 = vsel %vm1573_vm5, %v1576_v60, %v1578_v13  ;;  %v1583_v61 = vsel %vm1573_vm5, %v1580_v53, %v1582_v40  ;;  %v1864_v10 = vsel %vm1863_vm1, %v5169_v11, 0  ;;  %v1587_v36 = vsel %vm1573_vm5, %v1584_v4, %v1586_v63 }
 0x297   : > { %v1809_v29 = vadd.s32 536870912, %v1808_v27  ;;  %v5233_v18 = vmul.u32.u64.low %v5164_v50, %v1583_v61  ;;  %v5234_v3 = vmul.u32.u64.high %v5164_v50, %v1583_v61, %v5233_v18  ;;  %v5241_v34 = vshrl.u32 %v1864_v10, 5 }
 0x298   : > { %v5238_v46 = vmul.u32.u64.low %v5164_v50, %v1587_v36  ;;  %v5239_v22 = vmul.u32.u64.high %v5164_v50, %v1587_v36, %v5238_v46  ;;  %v1866_v38 = vand.u32 31, %v1864_v10  ;;  %v1595_v11 = vmul.u32 %v5164_v50, %v1579_v16 }
 0x299   : > { %v5243_v6 = vshrl.u32 %v1809_v29, 30  ;;  %v5248_v42 = vshll.u32 %v1860_v37, 8  ;;  %v6615_v48 = vand.u32 2147483647, %v5143_v57  ;;  %v1654_v33 = vadd.s32 1, %v5173_v17 }
 0x29a   : > { %v1598_v43 = vadd.s32 1, %v5234_v3  ;;  %v1867_v55 = vsub.s32 32, %v1866_v38  ;;  %vm1884_vm13 = vcmp.lt.s32.totalorder %v5241_v34, 1  ;;  %vm1597_vm9 = vc.u32 %v5239_v22, %v5233_v18 }
 0x29b   : > { %v1811_v41 = vshll.u32 %v5243_v6, 30  ;;  %v1869_v50 = vshll.u32 %v6639_v47, %v1866_v38  ;;  %v1872_v1 = vshll.u32 %v6640_v35, %v1866_v38  ;;  %vm1885_vm10 = vcmp.lt.s32.totalorder %v5241_v34, 2 }
 0x29c   : > { %vm1886_vm11 = vcmp.lt.s32.totalorder %v5241_v34, 3  ;;  %v1599_v17 = vsel %vm1597_vm9, %v1598_v43, %v5234_v3  ;;  %v1870_v56 = vshrl.u32 %v6640_v35, %v1867_v55  ;;  %v1875_v58 = vshll.u32 %v6641_v51, %v1866_v38 }
 0x29d   : > { %v5261_v37 = vsub.s32 %v1808_v27, %v1811_v41  ;;  %v1600_v26 = vadd.s32 %v1599_v17, %v1595_v11  ;;  %v1873_v19 = vshrl.u32 %v6641_v51, %v1867_v55  ;;  %v1876_v49 = vshrl.u32 %v6642_v0, %v1867_v55 }
 0x29e   : > { %v1878_v30 = vshll.u32 %v6642_v0, %v1866_v38  ;;  %v1871_v12 = vor.u32 %v1870_v56, %v1869_v50  ;;  %v1879_v62 = vshrl.u32 %v6684_v31, %v1867_v55  ;;  %v1881_v15 = vshll.u32 %v6684_v31, %v1866_v38 }
 0x29f   : > { %v1814_v32 = vsub.s32 0, %v5261_v37  ;;  %v1601_v45 = vadd.s32 536870912, %v1600_v26  ;;  %v1874_v60 = vor.u32 %v1873_v19, %v1872_v1  ;;  %v1877_v53 = vor.u32 %v1876_v49, %v1875_v58 }
 0x2a0   : > { %v1882_v44 = vshrl.u32 %v6643_v2, %v1867_v55  ;;  %v1868_v14 = vshrl.u32 %v6639_v47, %v1867_v55  ;;  %v1880_v4 = vor.u32 %v1879_v62, %v1878_v30  ;;  %vm1887_vm12 = vcmp.lt.s32.totalorder %v5241_v34, 4 }
 0x2a1   : > { %v3546_v20 = vmin.u32 %v1814_v32, %v5261_v37  ;;  %v5276_v27 = vshrl.u32 %v1601_v45, 30  ;;  %v1889_v40 = vsel %vm1887_vm12, %v1877_v53, 2102212464  ;;  %v1892_v23 = vsel %vm1884_vm13, %v1871_v12, %v1874_v60 }
 0x2a2   : > { %v1883_v13 = vor.u32 %v1882_v44, %v1881_v15  ;;  %v1888_v61 = vsel %vm1884_vm13, %v1868_v14, %v1871_v12  ;;  %v1893_v63 = vsel %vm1887_vm12, %v1880_v4, 920167782  ;;  %v1896_v10 = vsel %vm1884_vm13, %v1874_v60, %v1877_v53 }
 0x2a3   : > { %v1816_v16 = vclz %v3546_v20  ;;  %v1603_v29 = vshll.u32 %v5276_v27, 30  ;;  %v1894_v36 = vsel %vm1886_vm11, %v1877_v53, %v1893_v63  ;;  %vm1655_vm14 = vcmp.gt.s32.totalorder %v1654_v33, 0 }
 0x2a4   : > { %v1897_v3 = vsel %vm1887_vm12, %v1883_v13, 1326507024  ;;  %v1890_v38 = vsel %vm1886_vm11, %v1874_v60, %v1889_v40  ;;  %v1895_v11 = vsel %vm1885_vm10, %v1892_v23, %v1894_v36  ;;  %v1656_v58 = vsel %vm1655_vm14, %v1654_v33, 0 }
 0x2a5   : > { %v3547_v46 = vadd.s32 4294967294, %v1816_v16  ;;  %v1898_v41 = vsel %vm1886_vm11, %v1880_v4, %v1897_v3  ;;  %v5293_v43 = vsub.s32 %v1600_v26, %v1603_v29  ;;  %v1891_v26 = vsel %vm1885_vm10, %v1888_v61, %v1890_v38  ;;  %v5317_v4 = vpop.permute.xlu1 %1424 }
 0x2a6   : > { %v1899_v55 = vsel %vm1885_vm10, %v1896_v10, %v1898_v41  ;;  %v5298_v50 = vmul.u32.u64.low %v5248_v42, %v1895_v11  ;;  %v5299_v1 = vmul.u32.u64.high %v5248_v42, %v1895_v11, %v5298_v50  ;;  %v1658_v30 = vand.u32 31, %v1656_v58 }
 0x2a7   : > { %vm3548_vm15 = vcmp.lt.s32.totalorder %v3547_v46, 0  ;;  %v5303_v17 = vmul.u32.u64.low %v5248_v42, %v1899_v55  ;;  %v5304_v56 = vmul.u32.u64.high %v5248_v42, %v1899_v55, %v5303_v17  ;;  %v1606_v49 = vsub.s32 0, %v5293_v43 }
 0x2a8   : > { %v1819_v19 = vsel %vm3548_vm15, 0, %v3547_v46  ;;  %v1910_v62 = vadd.s32 1, %v5299_v1  ;;  %v1907_v15 = vmul.u32 %v5248_v42, %v1891_v26  ;;  %v1651_v33 = vand.u32 8388607, %v6615_v48 }
 0x2a9   : > { %v1824_v32 = vsub.s32 4294967266, %v1819_v19  ;;  %v3538_v12 = vmin.u32 %v1606_v49, %v5293_v43  ;;  %vm1909_vm0 = vc.u32 %v5304_v56, %v5298_v50  ;;  %v1659_v34 = vsub.s32 32, %v1658_v30  ;;  %v1435_v26 = vpop.permute.xlu1 %1434 }
 0x2aa   : > { %v1911_v53 = vsel %vm1909_vm0, %v1910_v62, %v5299_v1  ;;  %v1820_v20 = vsub.s32 32, %v1819_v19  ;;  %v1804_v13 = vadd.s32 %v5204_v7, %v5201_v59  ;;  %v1652_v40 = vor.u32 8388608, %v1651_v33 }
 0x2ab   : > { %v1825_v45 = vadd.s32 127, %v1824_v32  ;;  %v1608_v60 = vclz %v3538_v12  ;;  %v1912_v44 = vadd.s32 %v1911_v53, %v1907_v15  ;;  %v1662_v16 = vshrl.u32 %v6640_v35, %v1659_v34 }
 0x2ac   : > { %v1665_v61 = vshrl.u32 %v6641_v51, %v1659_v34  ;;  %v1668_v63 = vshrl.u32 %v6642_v0, %v1659_v34  ;;  %v1657_v29 = vshrl.u32 %v1656_v58, 5  ;;  %v1661_v36 = vshll.u32 %v6639_v47, %v1658_v30 }
 0x2ad   : > { %v3539_v14 = vadd.s32 4294967294, %v1608_v60  ;;  %v1913_v42 = vadd.s32 536870912, %v1912_v44  ;;  %v1826_v23 = vshll.u32 %v1825_v45, 23  ;;  %v1671_v3 = vshrl.u32 %v6684_v31, %v1659_v34 }
 0x2ae   : > { %v1822_v46 = vshrl.u32 %v1804_v13, %v1820_v20  ;;  %v1664_v59 = vshll.u32 %v6640_v35, %v1658_v30  ;;  %v1667_v7 = vshll.u32 %v6641_v51, %v1658_v30  ;;  %v1821_v38 = vshll.u32 %v5261_v37, %v1819_v19 }
 0x2af   : > { %v5324_v10 = vshrl.u32 %v1913_v42, 30  ;;  %vm3540_vm3 = vcmp.lt.s32.totalorder %v3539_v14, 0  ;;  %v1670_v41 = vshll.u32 %v6642_v0, %v1658_v30  ;;  %v1674_v55 = vshrl.u32 %v6643_v2, %v1659_v34 }
 0x2b0   : > { %v1827_v1 = vor.u32 4788187, %v1826_v23  ;;  %v1663_v17 = vor.u32 %v1662_v16, %v1661_v36  ;;  %v1666_v58 = vor.u32 %v1665_v61, %v1664_v59  ;;  %v1669_v49 = vor.u32 %v1668_v63, %v1667_v7 }
 0x2b1   : > { %v1915_v11 = vshll.u32 %v5324_v10, 30  ;;  %v1611_v32 = vsel %vm3540_vm3, 0, %v3539_v14  ;;  %v1672_v62 = vor.u32 %v1671_v3, %v1670_v41  ;;  %v1673_v15 = vshll.u32 %v6684_v31, %v1658_v30 }
 0x2b2   : > { %v1823_v33 = vor.u32 %v1822_v46, %v1821_v38  ;;  %v1660_v37 = vshrl.u32 %v6639_v47, %v1659_v34  ;;  %v1692_v19 = vshll.u32 %v1652_v40, 8  ;;  %v5339_v45 = vadd.f32 %v5149_v9, %v1435_v26 }
 0x2b3   : > { %v5334_v12 = vsub.s32 %v1912_v44, %v1915_v11  ;;  %v1675_v53 = vor.u32 %v1674_v55, %v1673_v15  ;;  %vm1676_vm1 = vcmp.lt.s32.totalorder %v1657_v29, 1  ;;  %vm1679_vm4 = vcmp.lt.s32.totalorder %v1657_v29, 4 }
 0x2b4   : > { %v1828_v20 = vand.u32 2147483647, %v1827_v1  ;;  %v1616_v13 = vsub.s32 4294967266, %v1611_v32  ;;  %v1681_v44 = vsel %vm1679_vm4, %v1669_v49, 2102212464  ;;  %v1684_v14 = vsel %vm1676_vm1, %v1663_v17, %v1666_v58 }
 0x2b5   : > { %v1918_v60 = vsub.s32 0, %v5334_v12  ;;  %v1612_v42 = vsub.s32 32, %v1611_v32  ;;  %vm1678_vm5 = vcmp.lt.s32.totalorder %v1657_v29, 3  ;;  %v1685_v34 = vsel %vm1679_vm4, %v1672_v62, 920167782 }
 0x2b6   : > { %vm1677_vm6 = vcmp.lt.s32.totalorder %v1657_v29, 2  ;;  %v1680_v40 = vsel %vm1676_vm1, %v1660_v37, %v1663_v17  ;;  %v1686_v9 = vsel %vm1678_vm5, %v1669_v49, %v1685_v34  ;;  %v1688_v23 = vsel %vm1676_vm1, %v1666_v58, %v1669_v49 }
 0x2b7   : > { %v3550_v30 = vmin.u32 %v1918_v60, %v5334_v12  ;;  %v1682_v61 = vsel %vm1678_vm5, %v1666_v58, %v1681_v44  ;;  %v1687_v63 = vsel %vm1677_vm6, %v1684_v14, %v1686_v9  ;;  %v1689_v36 = vsel %vm1679_vm4, %v1675_v53, 1326507024 }
 0x2b8   : > { %v1617_v3 = vadd.s32 127, %v1616_v13  ;;  %v1690_v46 = vsel %vm1678_vm5, %v1672_v62, %v1689_v36  ;;  %v5346_v59 = vmul.u32.u64.low %v1692_v19, %v1687_v63  ;;  %v5347_v7 = vmul.u32.u64.high %v1692_v19, %v1687_v63, %v5346_v59 }
 0x2b9   : > { %v1920_v16 = vclz %v3550_v30  ;;  %v1830_v38 = vcvt.s32.f32 %v1823_v33  ;;  %v1596_v11 = vadd.s32 %v5233_v18, %v5239_v22  ;;  %v1691_v55 = vsel %vm1677_vm6, %v1688_v23, %v1690_v46  ;;  %v5357_v33 = vpop.permute.xlu0 %1429 }
 0x2ba   : > { %v1683_v1 = vsel %vm1677_vm6, %v1680_v40, %v1682_v61  ;;  %v5352_v17 = vmul.u32.u64.low %v1692_v19, %v1691_v55  ;;  %v5353_v49 = vmul.u32.u64.high %v1692_v19, %v1691_v55, %v5352_v17  ;;  %v2167_v58 = vand.u32 2139095040, %v5339_v45 }
 0x2bb   : > { %v3551_v41 = vadd.s32 4294967294, %v1920_v16  ;;  %v1831_v29 = vmul.f32 %v1830_v38, %v1828_v20  ;;  %v1614_v26 = vshrl.u32 %v1596_v11, %v1612_v42  ;;  %v1618_v62 = vshll.u32 %v1617_v3, 23 }
 0x2bc   : > { %v1702_v37 = vadd.s32 1, %v5347_v7  ;;  %v2168_v60 = vshrl.u32 %v2167_v58, 23  ;;  %v1613_v18 = vshll.u32 %v5293_v43, %v1611_v32  ;;  %v1699_v22 = vmul.u32 %v1692_v19, %v1683_v1 }
 0x2bd   : > { %vm3552_vm8 = vcmp.lt.s32.totalorder %v3551_v41, 0  ;;  %v6611_v53 = vand.u32 2147483647, %v5339_v45  ;;  %vm1701_vm7 = vc.u32 %v5353_v49, %v5346_v59  ;;  %v5365_v20 = vadd.f32 %v5152_v52, %v5317_v4  ;;  %v1440_v4 = vpop.permute.xlu0 %1439 }
 0x2be   : > { %v1923_v15 = vsel %vm3552_vm8, 0, %v3551_v41  ;;  %v3561_v44 = vadd.s32 4294967169, %v2168_v60  ;;  %v1832_v14 = vxor.u32 2147483648, %v1831_v29  ;;  %v5367_v42 = vor.u32 %v1614_v26, %v1613_v18 }
 0x2bf   : > { %v1928_v13 = vsub.s32 4294967266, %v1923_v15  ;;  %v1703_v30 = vsel %vm1701_vm7, %v1702_v37, %v5347_v7  ;;  %v5370_v34 = vor.u32 4788187, %v1618_v62  ;;  %vm1750_vm13 = vcmp.lt.s32.totalorder %v5131_v28, 0 }
 0x2c0   : > { %v1704_v43 = vadd.s32 %v1703_v30, %v1699_v22  ;;  %v2174_v32 = vadd.s32 1, %v3561_v44  ;;  %v1924_v19 = vsub.s32 32, %v1923_v15  ;;  %v2171_v40 = vand.u32 8388607, %v6611_v53 }
 0x2c1   : > { %v1929_v9 = vadd.s32 127, %v1928_v13  ;;  %v1959_v52 = vand.u32 2139095040, %v5365_v20  ;;  %v5378_v16 = vsel %vm1750_vm13, %v1832_v14, %v1831_v29  ;;  %v1622_v61 = vcvt.s32.f32 %v5367_v42 }
 0x2c2   : > { %v1705_v23 = vadd.s32 536870912, %v1704_v43  ;;  %vm2175_vm9 = vcmp.gt.s32.totalorder %v2174_v32, 0  ;;  %v1908_v63 = vadd.s32 %v5298_v50, %v5304_v56  ;;  %v1620_v3 = vand.u32 2147483647, %v5370_v34 }
 0x2c3   : > { %v2176_v36 = vsel %vm2175_vm9, %v2174_v32, 0  ;;  %v5387_v38 = vadd.f32 %v5158_v24, %v1440_v4  ;;  %v1925_v11 = vshll.u32 %v5334_v12, %v1923_v15  ;;  %v2172_v55 = vor.u32 8388608, %v2171_v40 }
 0x2c4   : > { %v5384_v46 = vshrl.u32 %v1705_v23, 30  ;;  %v2178_v7 = vand.u32 31, %v2176_v36  ;;  %v1926_v41 = vshrl.u32 %v1908_v63, %v1924_v19  ;;  %v6614_v1 = vand.u32 2147483647, %v5365_v20 }
 0x2c5   : > { %v1930_v17 = vshll.u32 %v1929_v9, 23  ;;  %v1960_v50 = vshrl.u32 %v1959_v52, 23  ;;  %v2177_v56 = vshrl.u32 %v2176_v36, 5  ;;  %vm5406_vm10 = vcmp.le.f32.partialorder %v1748_v21, 0.7853982 }
 0x2c6   : > { %v1707_v58 = vshll.u32 %v5384_v46, 30  ;;  %v2179_v29 = vsub.s32 32, %v2178_v7  ;;  %v2181_v26 = vshll.u32 %v6639_v47, %v2178_v7  ;;  %v2184_v62 = vshll.u32 %v6640_v35, %v2178_v7 }
 0x2c7   : > { %v2187_v37 = vshll.u32 %v6641_v51, %v2178_v7  ;;  %v2190_v60 = vshll.u32 %v6642_v0, %v2178_v7  ;;  %v2193_v13 = vshll.u32 %v6684_v31, %v2178_v7  ;;  %v2212_v32 = vshll.u32 %v2172_v55, 8 }
 0x2c8   : > { %v5395_v24 = vsub.s32 %v1704_v43, %v1707_v58  ;;  %v2182_v12 = vshrl.u32 %v6640_v35, %v2179_v29  ;;  %v2185_v15 = vshrl.u32 %v6641_v51, %v2179_v29  ;;  %v2188_v18 = vshrl.u32 %v6642_v0, %v2179_v29 }
 0x2c9   : > { %v2191_v22 = vshrl.u32 %v6684_v31, %v2179_v29  ;;  %v2194_v44 = vshrl.u32 %v6643_v2, %v2179_v29  ;;  %v1927_v19 = vor.u32 %v1926_v41, %v1925_v11  ;;  %v1931_v52 = vor.u32 4788187, %v1930_v17 }
 0x2ca   : > { %v1710_v30 = vsub.s32 0, %v5395_v24  ;;  %v2183_v34 = vor.u32 %v2182_v12, %v2181_v26  ;;  %v2186_v43 = vor.u32 %v2185_v15, %v2184_v62  ;;  %v2189_v40 = vor.u32 %v2188_v18, %v2187_v37 }
 0x2cb   : > { %v2192_v9 = vor.u32 %v2191_v22, %v2190_v60  ;;  %v2195_v23 = vor.u32 %v2194_v44, %v2193_v13  ;;  %vm2196_vm11 = vcmp.lt.s32.totalorder %v2177_v56, 1  ;;  %v3553_v63 = vadd.s32 4294967169, %v1960_v50  ;;  %v3850_v22 = vld [vmem:[%s6567_s5] sm:$0xff]  }
 0x2cc   : > { %v3542_v4 = vmin.u32 %v1710_v30, %v5395_v24  ;;  %v2180_v36 = vshrl.u32 %v6639_v47, %v2179_v29  ;;  %vm2197_vm12 = vcmp.lt.s32.totalorder %v2177_v56, 2  ;;  %vm2199_vm14 = vcmp.lt.s32.totalorder %v2177_v56, 4  ;;  %3660 = vmatprep.mubr.msk.bf16.mxu1 %vm1462_vm2, %v3850_v22 }
 0x2cd   : > { %v2204_v21 = vsel %vm2196_vm11, %v2183_v34, %v2186_v43  ;;  %vm2198_vm15 = vcmp.lt.s32.totalorder %v2177_v56, 3  ;;  %v2201_v58 = vsel %vm2199_vm14, %v2189_v40, 2102212464  ;;  %v2205_v26 = vsel %vm2199_vm14, %v2192_v9, 920167782 }
 0x2ce   : > { %v1712_v7 = vclz %v3542_v4  ;;  %v2200_v62 = vsel %vm2196_vm11, %v2180_v36, %v2183_v34  ;;  %v2206_v55 = vsel %vm2198_vm15, %v2189_v40, %v2205_v26  ;;  %v2208_v11 = vsel %vm2196_vm11, %v2186_v43, %v2189_v40 }
 0x2cf   : > { %v2209_v41 = vsel %vm2199_vm14, %v2195_v23, 1326507024  ;;  %v2202_v12 = vsel %vm2198_vm15, %v2186_v43, %v2201_v58  ;;  %v2207_v17 = vsel %vm2197_vm12, %v2204_v21, %v2206_v55  ;;  %v2271_v18 = vand.u32 2139095040, %v5387_v38 }
 0x2d0   : > { %v3543_v37 = vadd.s32 4294967294, %v1712_v7  ;;  %v2210_v15 = vsel %vm2198_vm15, %v2192_v9, %v2209_v41  ;;  %v5415_v60 = vmul.u32.u64.low %v2212_v32, %v2207_v17  ;;  %v5416_v29 = vmul.u32.u64.high %v2212_v32, %v2207_v17, %v5415_v60 }
 0x2d1   : > { %v2211_v50 = vsel %vm2197_vm12, %v2208_v11, %v2210_v15  ;;  %v1966_v30 = vadd.s32 1, %v3553_v63  ;;  %v5430_v34 = vsel %vm5406_vm10, %v5131_v28, %v5378_v16  ;;  %v5434_v43 = vmul.f32 %v1622_v61, %v1620_v3 }
 0x2d2   : > { %vm3544_vm0 = vcmp.lt.s32.totalorder %v3543_v37, 0  ;;  %v5423_v13 = vmul.u32.u64.low %v2212_v32, %v2211_v50  ;;  %v5424_v44 = vmul.u32.u64.high %v2212_v32, %v2211_v50, %v5423_v13  ;;  %v2203_v9 = vsel %vm2197_vm12, %v2200_v62, %v2202_v12 }
 0x2d3   : > { %v1715_v40 = vsel %vm3544_vm0, 0, %v3543_v37  ;;  %v1932_v23 = vand.u32 2147483647, %v1931_v52  ;;  %v1963_v63 = vand.u32 8388607, %v6614_v1  ;;  %vm1967_vm3 = vcmp.gt.s32.totalorder %v1966_v30, 0 }
 0x2d4   : > { %v1720_v4 = vsub.s32 4294967266, %v1715_v40  ;;  %v1716_v36 = vsub.s32 32, %v1715_v40  ;;  %v2222_v21 = vadd.s32 1, %v5416_v29  ;;  %v1968_v16 = vsel %vm1967_vm3, %v1966_v30, 0 }
 0x2d5   : > { %v2272_v7 = vshrl.u32 %v2271_v18, 23  ;;  %v1934_v58 = vcvt.s32.f32 %v1927_v19  ;;  %v2219_v61 = vmul.u32 %v2212_v32, %v2203_v9  ;;  %vm2221_vm1 = vc.u32 %v5424_v44, %v5415_v60 }
 0x2d6   : > { %v1721_v42 = vadd.s32 127, %v1720_v4  ;;  %v1700_v3 = vadd.s32 %v5346_v59, %v5353_v49  ;;  %v2223_v56 = vsel %vm2221_vm1, %v2222_v21, %v5416_v29  ;;  %v1970_v52 = vand.u32 31, %v1968_v16 }
 0x2d7   : > { %v6612_v26 = vand.u32 2147483647, %v5387_v38  ;;  %v5447_v62 = vmul.f32 %v1934_v58, %v1932_v23  ;;  %v1717_v55 = vshll.u32 %v5395_v24, %v1715_v40  ;;  %v2224_v11 = vadd.s32 %v2223_v56, %v2219_v61 }
 0x2d8   : > { %v1964_v41 = vor.u32 8388608, %v1963_v63  ;;  %v1718_v19 = vshrl.u32 %v1700_v3, %v1716_v36  ;;  %v1969_v37 = vshrl.u32 %v1968_v16, 5  ;;  %v1971_v32 = vsub.s32 32, %v1970_v52 }
 0x2d9   : > { %v3565_v12 = vadd.s32 4294967169, %v2272_v7  ;;  %v1722_v17 = vshll.u32 %v1721_v42, 23  ;;  %v2225_v15 = vadd.s32 536870912, %v2224_v11  ;;  %v1973_v50 = vshll.u32 %v6639_v47, %v1970_v52 }
 0x2da   : > { %v1976_v59 = vshll.u32 %v6640_v35, %v1970_v52  ;;  %v1974_v49 = vshrl.u32 %v6640_v35, %v1971_v32  ;;  %v1977_v29 = vshrl.u32 %v6641_v51, %v1971_v32  ;;  %v1979_v18 = vshll.u32 %v6641_v51, %v1970_v52 }
 0x2db   : > { %v1980_v24 = vshrl.u32 %v6642_v0, %v1971_v32  ;;  %v5456_v22 = vshrl.u32 %v2225_v15, 30  ;;  %v1982_v13 = vshll.u32 %v6642_v0, %v1970_v52  ;;  %v1983_v30 = vshrl.u32 %v6684_v31, %v1971_v32 }
 0x2dc   : > { %v1985_v40 = vshll.u32 %v6684_v31, %v1970_v52  ;;  %v1975_v9 = vor.u32 %v1974_v49, %v1973_v50  ;;  %v1978_v23 = vor.u32 %v1977_v29, %v1976_v59  ;;  %v1986_v63 = vshrl.u32 %v6643_v2, %v1971_v32 }
 0x2dd   : > { %v1981_v4 = vor.u32 %v1980_v24, %v1979_v18  ;;  %v2227_v36 = vshll.u32 %v5456_v22, 30  ;;  %v1984_v21 = vor.u32 %v1983_v30, %v1982_v13  ;;  %v2004_v16 = vshll.u32 %v1964_v41, 8 }
 0x2de   : > { %v2278_v7 = vadd.s32 1, %v3565_v12  ;;  %v1719_v58 = vor.u32 %v1718_v19, %v1717_v55  ;;  %v1723_v42 = vor.u32 4788187, %v1722_v17  ;;  %v1987_v61 = vor.u32 %v1986_v63, %v1985_v40 }
 0x2df   : > { %vm1991_vm4 = vcmp.lt.s32.totalorder %v1969_v37, 4  ;;  %v5463_v3 = vsub.s32 %v2224_v11, %v2227_v36  ;;  %v1972_v56 = vshrl.u32 %v6639_v47, %v1971_v32  ;;  %vm1988_vm5 = vcmp.lt.s32.totalorder %v1969_v37, 1 }
 0x2e0   : > { %v1993_v52 = vsel %vm1991_vm4, %v1981_v4, 2102212464  ;;  %vm1989_vm6 = vcmp.lt.s32.totalorder %v1969_v37, 2  ;;  %vm1990_vm8 = vcmp.lt.s32.totalorder %v1969_v37, 3  ;;  %v1996_v15 = vsel %vm1988_vm5, %v1975_v9, %v1978_v23 }
 0x2e1   : > { %v1997_v50 = vsel %vm1991_vm4, %v1984_v21, 920167782  ;;  %v2230_v59 = vsub.s32 0, %v5463_v3  ;;  %v1992_v49 = vsel %vm1988_vm5, %v1972_v56, %v1975_v9  ;;  %v2000_v41 = vsel %vm1988_vm5, %v1978_v23, %v1981_v4 }
 0x2e2   : > { %v1998_v29 = vsel %vm1990_vm8, %v1981_v4, %v1997_v50  ;;  %v1994_v12 = vsel %vm1990_vm8, %v1978_v23, %v1993_v52  ;;  %v2001_v19 = vsel %vm1991_vm4, %v1987_v61, 1326507024  ;;  %vm2279_vm7 = vcmp.gt.s32.totalorder %v2278_v7, 0 }
 0x2e3   : > { %v1999_v55 = vsel %vm1989_vm6, %v1996_v15, %v1998_v29  ;;  %v3562_v11 = vmin.u32 %v2230_v59, %v5463_v3  ;;  %v2002_v17 = vsel %vm1990_vm8, %v1984_v21, %v2001_v19  ;;  %v1936_v24 = vxor.u32 2147483648, %v5447_v62 }
 0x2e4   : > { %v5469_v32 = vmul.u32.u64.low %v2004_v16, %v1999_v55  ;;  %v5470_v18 = vmul.u32.u64.high %v2004_v16, %v1999_v55, %v5469_v32  ;;  %v2003_v13 = vsel %vm1989_vm6, %v2000_v41, %v2002_v17  ;;  %v2275_v30 = vand.u32 8388607, %v6612_v26 }
 0x2e5   : > { %v2280_v40 = vsel %vm2279_vm7, %v2278_v7, 0  ;;  %v1724_v9 = vand.u32 2147483647, %v1723_v42  ;;  %v2232_v23 = vclz %v3562_v11  ;;  %v1995_v36 = vsel %vm1989_vm6, %v1992_v49, %v1994_v12 }
 0x2e6   : > { %v5477_v4 = vmul.u32.u64.low %v2004_v16, %v2003_v13  ;;  %v5478_v63 = vmul.u32.u64.high %v2004_v16, %v2003_v13, %v5477_v4  ;;  %v2282_v21 = vand.u32 31, %v2280_v40  ;;  %3886 = vcosq.f32 %v5430_v34 }
 0x2e7   : > { %vm1854_vm9 = vcmp.lt.s32.totalorder %v5137_v54, 0  ;;  %v1726_v61 = vcvt.s32.f32 %v1719_v58  ;;  %v2014_v56 = vadd.s32 1, %v5470_v18  ;;  %v1624_v52 = vxor.u32 2147483648, %v5434_v43 }
 0x2e8   : > { %v5488_v7 = vsel %vm1854_vm9, %v1936_v24, %v5447_v62  ;;  %v2276_v42 = vor.u32 8388608, %v2275_v30  ;;  %v2283_v15 = vsub.s32 32, %v2282_v21  ;;  %v3563_v37 = vadd.s32 4294967294, %v2232_v23 }
 0x2e9   : > { %v5490_v50 = vmul.f32 %v1726_v61, %v1724_v9  ;;  %v2011_v59 = vmul.u32 %v2004_v16, %v1995_v36  ;;  %vm2013_vm11 = vc.u32 %v5478_v63, %v5469_v32  ;;  %v2281_v49 = vshrl.u32 %v2280_v40, 5 }
 0x2ea   : > { %v2015_v58 = vsel %vm2013_vm11, %v2014_v56, %v5470_v18  ;;  %v2286_v29 = vshrl.u32 %v6640_v35, %v2283_v15  ;;  %v5498_v41 = vadd.f32 %v5160_v39, %v5357_v33  ;;  %v2285_v12 = vshll.u32 %v6639_v47, %v2282_v21 }
 0x2eb   : > { %v2016_v62 = vadd.s32 %v2015_v58, %v2011_v59  ;;  %v2288_v55 = vshll.u32 %v6640_v35, %v2282_v21  ;;  %v2291_v19 = vshll.u32 %v6641_v51, %v2282_v21  ;;  %v2289_v16 = vshrl.u32 %v6641_v51, %v2283_v15 }
 0x2ec   : > { %v2292_v11 = vshrl.u32 %v6642_v0, %v2283_v15  ;;  %v2294_v17 = vshll.u32 %v6642_v0, %v2282_v21  ;;  %v2295_v18 = vshrl.u32 %v6684_v31, %v2283_v15  ;;  %vm3564_vm12 = vcmp.lt.s32.totalorder %v3563_v37, 0 }
 0x2ed   : > { %v2017_v24 = vadd.s32 536870912, %v2016_v62  ;;  %v2287_v13 = vor.u32 %v2286_v29, %v2285_v12  ;;  %v2297_v39 = vshll.u32 %v6684_v31, %v2282_v21  ;;  %v2290_v33 = vor.u32 %v2289_v16, %v2288_v55 }
 0x2ee   : > { %v2293_v30 = vor.u32 %v2292_v11, %v2291_v19  ;;  %v2296_v40 = vor.u32 %v2295_v18, %v2294_v17  ;;  %v2298_v9 = vshrl.u32 %v6643_v2, %v2283_v15  ;;  %vm1542_vm14 = vcmp.lt.s32.totalorder %v5133_v8, 0 }
 0x2ef   : > { %vm5512_vm15 = vcmp.le.f32.partialorder %v1852_v25, 0.7853982  ;;  %v1728_v4 = vxor.u32 2147483648, %v5490_v50  ;;  %v5517_v36 = vshrl.u32 %v2017_v24, 30  ;;  %v2316_v61 = vshll.u32 %v2276_v42, 8 }
 0x2f0   : > { %v2063_v21 = vand.u32 2139095040, %v5498_v41  ;;  %vm1646_vm0 = vcmp.lt.s32.totalorder %v5143_v57, 0  ;;  %v5521_v56 = vsel %vm3564_vm12, 0, %v3563_v37  ;;  %v2284_v59 = vshrl.u32 %v6639_v47, %v2283_v15  ;;  %v5524_v29 = vpop.eup %3886 }
 0x2f1   : > { %v2299_v58 = vor.u32 %v2298_v9, %v2297_v39  ;;  %vm2300_vm3 = vcmp.lt.s32.totalorder %v2281_v49, 1  ;;  %v2019_v25 = vshll.u32 %v5517_v36, 30  ;;  %vm2302_vm1 = vcmp.lt.s32.totalorder %v2281_v49, 3 }
 0x2f2   : > { %vm2303_vm4 = vcmp.lt.s32.totalorder %v2281_v49, 4  ;;  %v2308_v12 = vsel %vm2300_vm3, %v2287_v13, %v2290_v33  ;;  %v2312_v42 = vsel %vm2300_vm3, %v2290_v33, %v2293_v30  ;;  %vm2301_vm5 = vcmp.lt.s32.totalorder %v2281_v49, 2 }
 0x2f3   : > { %v2305_v55 = vsel %vm2303_vm4, %v2293_v30, 2102212464  ;;  %v2309_v19 = vsel %vm2303_vm4, %v2296_v40, 920167782  ;;  %v2313_v16 = vsel %vm2303_vm4, %v2299_v58, 1326507024  ;;  %v5527_v11 = vsub.s32 %v2016_v62, %v2019_v25 }
 0x2f4   : > { %v2310_v37 = vsel %vm2302_vm1, %v2293_v30, %v2309_v19  ;;  %v6613_v15 = vand.u32 2147483647, %v5498_v41  ;;  %v2240_v17 = vsub.s32 4294967266, %v5521_v56  ;;  %v2304_v18 = vsel %vm2300_vm3, %v2284_v59, %v2287_v13 }
 0x2f5   : > { %v2311_v24 = vsel %vm2301_vm5, %v2308_v12, %v2310_v37  ;;  %v2314_v39 = vsel %vm2302_vm1, %v2296_v40, %v2313_v16  ;;  %v2022_v9 = vsub.s32 0, %v5527_v11  ;;  %v2306_v53 = vsel %vm2302_vm1, %v2290_v33, %v2305_v55 }
 0x2f6   : > { %v2315_v58 = vsel %vm2301_vm5, %v2312_v42, %v2314_v39  ;;  %v2064_v62 = vshrl.u32 %v2063_v21, 23  ;;  %v5540_v30 = vmul.u32.u64.low %v2316_v61, %v2311_v24  ;;  %v5541_v19 = vmul.u32.u64.high %v2316_v61, %v2311_v24, %v5540_v30 }
 0x2f7   : > { %v5537_v25 = vmul.u32.u64.low %v2316_v61, %v2315_v58  ;;  %v5538_v26 = vmul.u32.u64.high %v2316_v61, %v2315_v58, %v5537_v25  ;;  %3888 = vsinq.f32 %v5430_v34  ;;  %v3554_v13 = vmin.u32 %v2022_v9, %v5527_v11 }
 0x2f8   : > { %v3557_v59 = vadd.s32 4294967169, %v2064_v62  ;;  %v2067_v40 = vand.u32 8388607, %v6613_v15  ;;  %v1625_v33 = vsel %vm1542_vm14, %v1624_v52, %v5434_v43  ;;  %v5557_v21 = vsel %vm5512_vm15, %v5137_v54, %v5488_v7 }
 0x2f9   : > { %v2220_v34 = vadd.s32 %v5415_v60, %v5424_v44  ;;  %v2307_v12 = vsel %vm2301_vm5, %v2304_v18, %v2306_v53  ;;  %v5565_v55 = vsel %vm1646_vm0, %v1728_v4, %v5490_v50  ;;  %v2024_v42 = vclz %v3554_v13 }
 0x2fa   : > { %v2070_v16 = vadd.s32 1, %v3557_v59  ;;  %v1626_v43 = vsub.s32 4, %v5276_v27  ;;  %v2236_v52 = vsub.s32 32, %v5521_v56  ;;  %v5569_v37 = vadd.s32 127, %v2240_v17 }
 0x2fb   : > { %vm2325_vm6 = vc.u32 %v5538_v26, %v5540_v30  ;;  %v2326_v60 = vadd.s32 1, %v5541_v19  ;;  %v3555_v44 = vadd.s32 4294967294, %v2024_v42  ;;  %v2323_v53 = vmul.u32 %v2316_v61, %v2307_v12 }
 0x2fc   : > { %v2068_v7 = vor.u32 8388608, %v2067_v40  ;;  %vm2071_vm8 = vcmp.gt.s32.totalorder %v2070_v16, 0  ;;  %v2012_v50 = vadd.s32 %v5469_v32, %v5478_v63  ;;  %vm5579_vm7 = vcmp.le.f32.partialorder %v1540_v5, 0.7853982 }
 0x2fd   : > { %v2327_v49 = vsel %vm2325_vm6, %v2326_v60, %v5541_v19  ;;  %v2072_v4 = vsel %vm2071_vm8, %v2070_v16, 0  ;;  %vm3556_vm11 = vcmp.lt.s32.totalorder %v3555_v44, 0  ;;  %v5586_v61 = vsel %vm1542_vm14, %v1626_v43, %v5276_v27 }
 0x2fe   : > { %v2328_v18 = vadd.s32 %v2327_v49, %v2323_v53  ;;  %v2074_v24 = vand.u32 31, %v2072_v4  ;;  %v5590_v63 = vshrl.u32 %v2220_v34, %v2236_v52  ;;  %v2242_v39 = vshll.u32 %v5569_v37, 23 }
 0x2ff   : > { %v2027_v9 = vsel %vm3556_vm11, 0, %v3555_v44  ;;  %v5593_v62 = vshll.u32 %v2068_v7, 8  ;;  %v1628_v25 = vsel %vm5579_vm7, %v5133_v8, %v1625_v33  ;;  %v5598_v13 = vshrl.u32 %v2072_v4, 5 }
 0x300   : > { %v2032_v5 = vsub.s32 4294967266, %v2027_v9  ;;  %v2329_v58 = vadd.s32 536870912, %v2328_v18  ;;  %v2028_v19 = vsub.s32 32, %v2027_v9  ;;  %v2075_v27 = vsub.s32 32, %v2074_v24 }
 0x301   : > { %v5603_v40 = vpop.eup %3888  ;;  %v2077_v12 = vshll.u32 %v6639_v47, %v2074_v24  ;;  %v2080_v42 = vshll.u32 %v6640_v35, %v2074_v24  ;;  %v2083_v16 = vshll.u32 %v6641_v51, %v2074_v24  ;;  %v2086_v44 = vshll.u32 %v6642_v0, %v2074_v24 }
 0x302   : > { %v5605_v34 = vshrl.u32 %v2329_v58, 30  ;;  %v2033_v43 = vadd.s32 127, %v2032_v5  ;;  %v2078_v33 = vshrl.u32 %v6640_v35, %v2075_v27  ;;  %v2081_v52 = vshrl.u32 %v6641_v51, %v2075_v27 }
 0x303   : > { %v2084_v37 = vshrl.u32 %v6642_v0, %v2075_v27  ;;  %v2087_v53 = vshrl.u32 %v6684_v31, %v2075_v27  ;;  %3890 = vcosq.f32 %v1628_v25  ;;  %v1730_v58 = vsub.s32 4, %v5384_v46 }
 0x304   : > { %v2331_v60 = vshll.u32 %v5605_v34, 30  ;;  %v2079_v7 = vor.u32 %v2078_v33, %v2077_v12  ;;  %v2082_v49 = vor.u32 %v2081_v52, %v2080_v42  ;;  %v2029_v5 = vshll.u32 %v5527_v11, %v2027_v9 }
 0x305   : > { %v2085_v4 = vor.u32 %v2084_v37, %v2083_v16  ;;  %v2030_v15 = vshrl.u32 %v2012_v50, %v2028_v19  ;;  %v2088_v59 = vor.u32 %v2087_v53, %v2086_v44  ;;  %v2034_v48 = vshll.u32 %v2033_v43, 23 }
 0x306   : > { %v5618_v1 = vsub.s32 %v2328_v18, %v2331_v60  ;;  %v2076_v32 = vshrl.u32 %v6639_v47, %v2075_v27  ;;  %v2089_v51 = vshll.u32 %v6684_v31, %v2074_v24  ;;  %v2090_v0 = vshrl.u32 %v6643_v2, %v2075_v27 }
 0x307   : > { %vm2092_vm12 = vcmp.lt.s32.totalorder %v5598_v13, 1  ;;  %vm2094_vm14 = vcmp.lt.s32.totalorder %v5598_v13, 3  ;;  %vm2095_vm3 = vcmp.lt.s32.totalorder %v5598_v13, 4  ;;  %v2031_v19 = vor.u32 %v2030_v15, %v2029_v5 }
 0x308   : > { %v2334_v35 = vsub.s32 0, %v5618_v1  ;;  %v2091_v11 = vor.u32 %v2090_v0, %v2089_v51  ;;  %v2097_v50 = vsel %vm2095_vm3, %v2085_v4, 2102212464  ;;  %v2100_v18 = vsel %vm2092_vm12, %v2079_v7, %v2082_v49 }
 0x309   : > { %v2101_v9 = vsel %vm2095_vm3, %v2088_v59, 920167782  ;;  %vm2093_vm1 = vcmp.lt.s32.totalorder %v5598_v13, 2  ;;  %v2035_v27 = vor.u32 4788187, %v2034_v48  ;;  %v2104_v51 = vsel %vm2092_vm12, %v2082_v49, %v2085_v4 }
 0x30a   : > { %v3566_v12 = vmin.u32 %v2334_v35, %v5618_v1  ;;  %v2102_v24 = vsel %vm2094_vm14, %v2085_v4, %v2101_v9  ;;  %v2105_v0 = vsel %vm2095_vm3, %v2091_v11, 1326507024  ;;  %v2096_v43 = vsel %vm2092_vm12, %v2076_v32, %v2079_v7 }
 0x30b   : > { %v2103_v42 = vsel %vm2093_vm1, %v2100_v18, %v2102_v24  ;;  %v2098_v35 = vsel %vm2094_vm14, %v2082_v49, %v2097_v50  ;;  %v2106_v15 = vsel %vm2094_vm14, %v2088_v59, %v2105_v0  ;;  %3892 = vsinq.f32 %v1628_v25 }
 0x30c   : > { %v2336_v16 = vclz %v3566_v12  ;;  %v2107_v48 = vsel %vm2093_vm1, %v2104_v51, %v2106_v15  ;;  %v5646_v33 = vmul.u32.u64.low %v5593_v62, %v2103_v42  ;;  %v5647_v52 = vmul.u32.u64.high %v5593_v62, %v2103_v42, %v5646_v33 }
 0x30d   : > { %v5650_v37 = vpop.eup %3890  ;;  %v2243_v60 = vor.u32 4788187, %v2242_v39  ;;  %v5653_v32 = vmul.u32.u64.low %v5593_v62, %v2107_v48  ;;  %v5654_v53 = vmul.u32.u64.high %v5593_v62, %v2107_v48, %v5653_v32  ;;  %3894 = vcosq.f32 %v5557_v21 }
 0x30e   : > { %v3567_v44 = vadd.s32 4294967294, %v2336_v16  ;;  %v6691_v59 = vshll.u32 %v5463_v3, %v5521_v56  ;;  %v2036_v49 = vand.u32 2147483647, %v2035_v27  ;;  %v6692_v4 = vand.u32 2147483647, %v5143_v57 }
 0x30f   : > { %v2038_v39 = vcvt.s32.f32 %v2031_v19  ;;  %v2099_v5 = vsel %vm2093_vm1, %v2096_v43, %v2098_v35  ;;  %v6695_v11 = vsel %vm5579_vm7, 0, %v5586_v61  ;;  %v2118_v56 = vadd.s32 1, %v5647_v52 }
 0x310   : > { %v2239_v7 = vor.u32 %v5590_v63, %v6691_v59  ;;  %vm5663_vm4 = vcmp.le.f32.partialorder %v6692_v4, 0.7853982  ;;  %vm3568_vm5 = vcmp.lt.s32.totalorder %v3567_v44, 0  ;;  %v1633_v50 = vadd.s32 3, %v6695_v11 }
 0x311   : > { %v2339_v3 = vsel %vm3568_vm5, 0, %v3567_v44  ;;  %v1731_v63 = vsel %vm1646_vm0, %v1730_v58, %v5384_v46  ;;  %v1732_v18 = vsel %vm5663_vm4, %v5143_v57, %v5565_v55  ;;  %3896 = vsinq.f32 %v5557_v21 }
 0x312   : > { %v2244_v13 = vand.u32 2147483647, %v2243_v60  ;;  %v2340_v9 = vsub.s32 32, %v2339_v3  ;;  %v2344_v17 = vsub.s32 4294967266, %v2339_v3  ;;  %v5682_v19 = vmul.f32 %v2038_v39, %v2036_v49 }
 0x313   : > { %v2324_v61 = vadd.s32 %v5540_v30, %v5538_v26  ;;  %v2115_v12 = vmul.u32 %v5593_v62, %v2099_v5  ;;  %vm2117_vm0 = vc.u32 %v5654_v53, %v5646_v33  ;;  %v1733_v55 = vsel %vm5663_vm4, 0, %v1731_v63 }
 0x314   : > { %v2345_v46 = vadd.s32 127, %v2344_v17  ;;  %v2119_v58 = vsel %vm2117_vm0, %v2118_v56, %v5647_v52  ;;  %3898 = vcosq.f32 %v1732_v18  ;;  %v2246_v21 = vcvt.s32.f32 %v2239_v7 }
 0x315   : > { %v2120_v24 = vadd.s32 %v2119_v58, %v2115_v12  ;;  %v1634_v27 = vand.u32 3, %v1633_v50  ;;  %3900 = vsinq.f32 %v1732_v18  ;;  %v2342_v42 = vshrl.u32 %v2324_v61, %v2340_v9  ;;  %v3893_v30 = vpop.eup %3892 }
 0x316   : > { %v2346_v51 = vshll.u32 %v2345_v46, 23  ;;  %v1834_v26 = vsub.s32 4, %v5243_v6  ;;  %v5693_v62 = vmul.f32 %v2246_v21, %v2244_v13  ;;  %v1737_v16 = vadd.s32 3, %v1733_v55 }
 0x317   : > { %v2121_v0 = vadd.s32 536870912, %v2120_v24  ;;  %v2040_v43 = vxor.u32 2147483648, %v5682_v19  ;;  %v2341_v35 = vshll.u32 %v5618_v1, %v2339_v3  ;;  %v1640_v48 = vxor.u32 2147483648, %v5650_v37  ;;  %v5698_v52 = vpop.eup %3894 }
 0x318   : > { %v2347_v15 = vor.u32 4788187, %v2346_v51  ;;  %vm1635_vm6 = vcmp.lt.s32.totalorder %v1634_v27, 2  ;;  %vm1636_vm8 = vcmp.eq.s32.totalorder %v1634_v27, 0  ;;  %v1637_v44 = vxor.u32 2147483648, %v3893_v30 }
 0x319   : > { %v5700_v60 = vshrl.u32 %v2121_v0, 30  ;;  %v2343_v32 = vor.u32 %v2342_v42, %v2341_v35  ;;  %vm1639_vm7 = vcmp.eq.s32.totalorder %v1634_v27, 2  ;;  %v1835_v59 = vsel %vm1750_vm13, %v1834_v26, %v5243_v6 }
 0x31a   : > { %v1938_v7 = vsub.s32 4, %v5324_v10  ;;  %vm1632_vm11 = vweird.f32 %v5133_v8  ;;  %vm1736_vm12 = vweird.f32 %v5143_v57  ;;  %v1738_v49 = vand.u32 3, %v1737_v16 }
 0x31b   : > { %v2123_v1 = vshll.u32 %v5700_v60, 30  ;;  %v1837_v4 = vsel %vm5406_vm10, 0, %v1835_v59  ;;  %v3897_v25 = vpop.eup %3896  ;;  %v2348_v39 = vand.u32 2147483647, %v2347_v15  ;;  %v1845_v11 = vxor.u32 2147483648, %v5603_v40 }
 0x31c   : > { %v1841_v5 = vadd.s32 3, %v1837_v4  ;;  %v1939_v6 = vsel %vm1854_vm9, %v1938_v7, %v5324_v10  ;;  %vm1958_vm13 = vcmp.lt.s32.totalorder %v5365_v20, 0  ;;  %v1638_v3 = vsel %vm1636_vm8, %v5650_v37, %v1637_v44 }
 0x31d   : > { %v5716_v50 = vsub.s32 %v2120_v24, %v2123_v1  ;;  %v1641_v56 = vsel %vm1639_vm7, %v1640_v48, %v3893_v30  ;;  %v1941_v14 = vsel %vm5512_vm15, 0, %v1939_v6  ;;  %v2350_v18 = vcvt.s32.f32 %v2343_v32 }
 0x31e   : > { %v3899_v63 = vpop.eup %3898  ;;  %v1842_v13 = vand.u32 3, %v1841_v5  ;;  %v1848_v9 = vxor.u32 2147483648, %v5524_v29  ;;  %v1945_v17 = vadd.s32 3, %v1941_v14  ;;  %vm1739_vm10 = vcmp.lt.s32.totalorder %v1738_v49, 2 }
 0x31f   : > { %v3901_v61 = vpop.eup %3900  ;;  %v2126_v10 = vsub.s32 0, %v5716_v50  ;;  %vm1740_vm9 = vcmp.eq.s32.totalorder %v1738_v49, 0  ;;  %v1744_v12 = vxor.u32 2147483648, %v3899_v63  ;;  %v2351_v46 = vmul.f32 %v2350_v18, %v2348_v39 }
 0x320   : > { %v1642_v37 = vsel %vm1635_vm6, %v1638_v3, %v1641_v56  ;;  %v1741_v58 = vxor.u32 2147483648, %v3901_v61  ;;  %vm1743_vm14 = vcmp.eq.s32.totalorder %v1738_v49, 2  ;;  %v1949_v21 = vxor.u32 2147483648, %v3897_v25 }
 0x321   : > { %v3558_v23 = vmin.u32 %v2126_v10, %v5716_v50  ;;  %v1745_v55 = vsel %vm1743_vm14, %v1744_v12, %v3901_v61  ;;  %v1952_v24 = vxor.u32 2147483648, %v5698_v52  ;;  %vm1844_vm15 = vcmp.eq.s32.totalorder %v1842_v13, 0 }
 0x322   : > { %v1742_v42 = vsel %vm1740_vm9, %v3899_v63, %v1741_v58  ;;  %vm1847_vm3 = vcmp.eq.s32.totalorder %v1842_v13, 2  ;;  %v1946_v51 = vand.u32 3, %v1945_v17  ;;  %v1846_v0 = vsel %vm1844_vm15, %v5524_v29, %v1845_v11 }
 0x323   : > { %v2128_v26 = vclz %v3558_v23  ;;  %v1746_v30 = vsel %vm1739_vm10, %v1742_v42, %v1745_v55  ;;  %v1849_v27 = vsel %vm1847_vm3, %v1848_v9, %v5603_v40  ;;  %v2248_v16 = vxor.u32 2147483648, %v5693_v62 }
 0x324   : > { %v1643_v35 = vsel %vm1632_vm11, nan, %v1642_v37  ;;  %v1747_v15 = vsel %vm1736_vm12, nan, %v1746_v30  ;;  %vm1948_vm1 = vcmp.eq.s32.totalorder %v1946_v51, 0  ;;  %vm1843_vm4 = vcmp.lt.s32.totalorder %v1842_v13, 2 }
 0x325   : > { %v3559_v48 = vadd.s32 4294967294, %v2128_v26  ;;  %v2380_v44 = vpack.c.bf16 %v1747_v15, %v1643_v35  ;;  %v1950_v32 = vsel %vm1948_vm1, %v5698_v52, %v1949_v21  ;;  %v2041_v29 = vsel %vm1958_vm13, %v2040_v43, %v5682_v19 }
 0x326   : > { %v2116_v40 = vadd.s32 %v5646_v33, %v5654_v53  ;;  %v1850_v8 = vsel %vm1843_vm4, %v1846_v0, %v1849_v27  ;;  %vm1951_vm5 = vcmp.eq.s32.totalorder %v1946_v51, 2  ;;  %v2352_v59 = vxor.u32 2147483648, %v2351_v46 }
 0x327   : > { %vm3560_vm0 = vcmp.lt.s32.totalorder %v3559_v48, 0  ;;  %3652 = vmatprep.subr.bf16.mxu1 %v2380_v44  ;;  %vm1947_vm6 = vcmp.lt.s32.totalorder %v1946_v51, 2  ;;  %v1953_v57 = vsel %vm1951_vm5, %v1952_v24, %v3897_v25  ;;  %vm1840_vm8 = vweird.f32 %v5131_v28 }
 0x328   : > { %v2131_v7 = vsel %vm3560_vm0, 0, %v3559_v48  ;;  %3653 = vmatpush3.bf16.msra.mxu1 %v2380_v44  ;;  %vm1944_vm7 = vweird.f32 %v5137_v54  ;;  %v1954_v52 = vsel %vm1947_vm6, %v1950_v32, %v1953_v57  ;;  %v1851_v19 = vsel %vm1840_vm8, nan, %v1850_v8 }
 0x329   : > { %v2132_v1 = vsub.s32 32, %v2131_v7  ;;  %v2136_v49 = vsub.s32 4294967266, %v2131_v7  ;;  %v1955_v43 = vsel %vm1944_vm7, nan, %v1954_v52  ;;  %v6696_v33 = vand.u32 2147483647, %v5365_v20 }
 0x32a   : > { %vm2270_vm12 = vcmp.lt.s32.totalorder %v5387_v38, 0  ;;  %v2381_v4 = vpack.c.bf16 %v1955_v43, %v1851_v19  ;;  %v2133_v28 = vshll.u32 %v5716_v50, %v2131_v7  ;;  %vm2166_vm10 = vcmp.lt.s32.totalorder %v5339_v45, 0 }
 0x32b   : > { %vm5748_vm11 = vcmp.le.f32.partialorder %v6696_v33, 0.7853982  ;;  %v2353_v25 = vsel %vm2270_vm12, %v2352_v59, %v2351_v46  ;;  %v2134_v54 = vshrl.u32 %v2116_v40, %v2132_v1  ;;  %v2137_v39 = vadd.s32 127, %v2136_v49 }
 0x32c   : > { %v2044_v5 = vsel %vm5748_vm11, %v5365_v20, %v2041_v29  ;;  %3654 = vmatprep.subr.bf16.mxu1 %v2381_v4  ;;  %v2249_v11 = vsel %vm2166_vm10, %v2248_v16, %v5693_v62  ;;  %v6699_v6 = vand.u32 2147483647, %v5387_v38  ;;  %v6702_v63 = vand.u32 2147483647, %v5339_v45 }
 0x32d   : > { %v2135_v50 = vor.u32 %v2134_v54, %v2133_v28  ;;  %v2138_v56 = vshll.u32 %v2137_v39, 23  ;;  %3655 = vmatpush3.bf16.msra.mxu1 %v2381_v4  ;;  %3902 = vcosq.f32 %v2044_v5  ;;  %v2042_v13 = vsub.s32 4, %v5517_v36 }
 0x32e   : > { %vm5765_vm9 = vcmp.le.f32.partialorder %v6699_v6, 0.7853982  ;;  %vm5774_vm14 = vcmp.le.f32.partialorder %v6702_v63, 0.7853982  ;;  %3904 = vsinq.f32 %v2044_v5  ;;  %v2354_v10 = vsub.s32 4, %v5605_v34 }
 0x32f   : > { %v2356_v14 = vsel %vm5765_vm9, %v5387_v38, %v2353_v25  ;;  %v2139_v62 = vor.u32 4788187, %v2138_v56  ;;  %v2252_v9 = vsel %vm5774_vm14, %v5339_v45, %v2249_v11  ;;  %v2142_v61 = vcvt.s32.f32 %v2135_v50 }
 0x330   : > { %3906 = vcosq.f32 %v2356_v14  ;;  %v2146_v12 = vsub.s32 4, %v5700_v60  ;;  %v2250_v46 = vsub.s32 4, %v5456_v22  ;;  %v2043_v58 = vsel %vm1958_vm13, %v2042_v13, %v5517_v36 }
 0x331   : > { %v2140_v17 = vand.u32 2147483647, %v2139_v62  ;;  %3908 = vsinq.f32 %v2356_v14  ;;  %v2355_v23 = vsel %vm2270_vm12, %v2354_v10, %v5605_v34  ;;  %vm2062_vm15 = vcmp.lt.s32.totalorder %v5498_v41, 0 }
 0x332   : > { %3910 = vcosq.f32 %v2252_v9  ;;  %v2045_v21 = vsel %vm5748_vm11, 0, %v2043_v58  ;;  %v2147_v24 = vsel %vm2062_vm15, %v2146_v12, %v5700_v60  ;;  %v2251_v42 = vsel %vm2166_vm10, %v2250_v46, %v5456_v22  ;;  %v2400_v12 = vpop.permute.xlu0 %2399 }
 0x333   : > { %v2143_v37 = vmul.f32 %v2142_v61, %v2140_v17  ;;  %3912 = vsinq.f32 %v2252_v9  ;;  %v6705_v51 = vand.u32 2147483647, %v5498_v41  ;;  %v2357_v26 = vsel %vm5765_vm9, 0, %v2355_v23 }
 0x334   : > { %v2049_v0 = vadd.s32 3, %v2045_v21  ;;  %v2253_v60 = vsel %vm5774_vm14, 0, %v2251_v42  ;;  %v2361_v35 = vadd.s32 3, %v2357_v26  ;;  %vm2048_vm10 = vweird.f32 %v5365_v20  ;;  %v3851_v20 = vld [vmem:[%s6567_s5 + $0x8] sm:$0xff]  }
 0x335   : > { %v2144_v55 = vxor.u32 2147483648, %v2143_v37  ;;  %vm2061_vm13 = vcmp.le.f32.partialorder %v6705_v51, 0.7853982  ;;  %v2257_v44 = vadd.s32 3, %v2253_v60 }
 0x336   : > { %v2149_v27 = vsel %vm2061_vm13, 0, %v2147_v24  ;;  %v2050_v29 = vand.u32 3, %v2049_v0  ;;  %v2362_v8 = vand.u32 3, %v2361_v35 }
 0x337   : > { %v2145_v36 = vsel %vm2062_vm15, %v2144_v55, %v2143_v37  ;;  %v3903_v30 = vpop.eup %3902  ;;  %v2153_v48 = vadd.s32 3, %v2149_v27  ;;  %v2258_v49 = vand.u32 3, %v2257_v44  ;;  %vm2152_vm15 = vweird.f32 %v5498_v41  ;;  %v2410_v55 = vpop.permute.xlu0 %2409 }
 0x338   : > { %v2148_v34 = vsel %vm2061_vm13, %v5498_v41, %v2145_v36  ;;  %v3905_v16 = vpop.eup %3904  ;;  %v2056_v57 = vxor.u32 2147483648, %v3903_v30  ;;  %vm2051_vm3 = vcmp.lt.s32.totalorder %v2050_v29, 2  ;;  %vm2052_vm1 = vcmp.eq.s32.totalorder %v2050_v29, 0  ;;  %v2395_v41 = vpop.permute.xlu1 %2394 }
 0x339   : > { %3914 = vcosq.f32 %v2148_v34  ;;  %v2053_v59 = vxor.u32 2147483648, %v3905_v16  ;;  %v2154_v1 = vand.u32 3, %v2153_v48  ;;  %vm2055_vm4 = vcmp.eq.s32.totalorder %v2050_v29, 2 }
 0x33a   : > { %3916 = vsinq.f32 %v2148_v34  ;;  %v3907_v22 = vpop.eup %3906  ;;  %vm2364_vm5 = vcmp.eq.s32.totalorder %v2362_v8, 0  ;;  %vm2367_vm0 = vcmp.eq.s32.totalorder %v2362_v8, 2  ;;  %v2057_v4 = vsel %vm2055_vm4, %v2056_v57, %v3905_v16 }
 0x33b   : > { %v3909_v15 = vpop.eup %3908  ;;  %v2368_v52 = vxor.u32 2147483648, %v3907_v22  ;;  %v2054_v53 = vsel %vm2052_vm1, %v3903_v30, %v2053_v59  ;;  %vm2159_vm6 = vcmp.eq.s32.totalorder %v2154_v1, 2  ;;  %vm2260_vm8 = vcmp.eq.s32.totalorder %v2258_v49, 0 }
 0x33c   : > { %v3911_v32 = vpop.eup %3910  ;;  %v2365_v7 = vxor.u32 2147483648, %v3909_v15  ;;  %vm2263_vm7 = vcmp.eq.s32.totalorder %v2258_v49, 2  ;;  %vm2363_vm11 = vcmp.lt.s32.totalorder %v2362_v8, 2  ;;  %v2058_v3 = vsel %vm2051_vm3, %v2054_v53, %v2057_v4  ;;  %v2405_v46 = vpop.permute.xlu1 %2404 }
 0x33d   : > { %v3913_v40 = vpop.eup %3912  ;;  %v2264_v43 = vxor.u32 2147483648, %v3911_v32  ;;  %v2369_v28 = vsel %vm2367_vm0, %v2368_v52, %v3909_v15  ;;  %vm2156_vm12 = vcmp.eq.s32.totalorder %v2154_v1, 0  ;;  %vm2155_vm9 = vcmp.lt.s32.totalorder %v2154_v1, 2 }
 0x33e   : > { %v2261_v19 = vxor.u32 2147483648, %v3913_v40  ;;  %v2366_v25 = vsel %vm2364_vm5, %v3907_v22, %v2365_v7  ;;  %vm2259_vm14 = vcmp.lt.s32.totalorder %v2258_v49, 2  ;;  %vm2360_vm13 = vweird.f32 %v5387_v38  ;;  %v3852_v38 = vld [vmem:[%s6567_s5 + $0x10] sm:$0xff]  }
 0x33f   : > { %v2265_v6 = vsel %vm2263_vm7, %v2264_v43, %v3913_v40  ;;  %v2370_v56 = vsel %vm2363_vm11, %v2366_v25, %v2369_v28  ;;  %v2059_v62 = vsel %vm2048_vm10, nan, %v2058_v3  ;;  %vm2256_vm3 = vweird.f32 %v5339_v45  ;;  %v3853_v45 = vld [vmem:[%s6567_s5 + $0x18] sm:$0xff]  }
 0x340   : > { %v2262_v11 = vsel %vm2260_vm8, %v3911_v32, %v2261_v19  ;;  %v2371_v9 = vsel %vm2360_vm13, nan, %v2370_v56  ;;  %v6707_v3 = vmov 2131351028   ;;  %v6708_v56 = vmov 2102212464  }
 0x341   : > { %v2266_v18 = vsel %vm2259_vm14, %v2262_v11, %v2265_v6  ;;  %v6706_v11 = vmov 2475754826  }
 0x342   : > { %v2267_v61 = vsel %vm2256_vm3, nan, %v2266_v18 }
 0x343   : > { %v3915_v33 = vpop.eup %3914  ;;  %v2383_v10 = vpack.c.bf16 %v2371_v9, %v2267_v61 }
 0x344   : > { %v3917_v54 = vpop.eup %3916  ;;  %v2160_v39 = vxor.u32 2147483648, %v3915_v33 }
 0x345   : > { %v2157_v5 = vxor.u32 2147483648, %v3917_v54 }
 0x346   : > { %v2161_v50 = vsel %vm2159_vm6, %v2160_v39, %v3917_v54 }
 0x347   : > { %v2158_v14 = vsel %vm2156_vm12, %v3915_v33, %v2157_v5 }
 0x348   : > { %v2162_v63 = vsel %vm2155_vm9, %v2158_v14, %v2161_v50 }
 0x349   : > { %v2163_v13 = vsel %vm2152_vm15, nan, %v2162_v63 }
 0x34a   : > { %v2382_v17 = vpack.c.bf16 %v2163_v13, %v2059_v62 }
 0x34c   : > { %3656 = vmatprep.subr.bf16.mxu1 %v2382_v17 }
 0x34d   : > { %3657 = vmatpush3.bf16.msra.mxu1 %v2382_v17 }
 0x34e   : > { %3658 = vmatprep.subr.bf16.mxu1 %v2383_v10 }
 0x351   : > { %3659 = vmatpush3.bf16.msra.mxu1 %v2383_v10 }
 0x354   : > { %3661 = vmatmul.mubr.msk.bf16.vlgmr.msra.gmra.mrb[0].mxu1 %vm1462_vm2, %v3851_v20 }
 0x355   : > { %3664 = vmatprep.mubr.msk.bf16.mxu1 %vm1462_vm2, %v3852_v38 }
 0x35c   : > { %3665 = vmatmul.mubr.msk.bf16.gmra.mrb[4].mxu1 %vm1462_vm2, %v3853_v45 }
 0x427   : > { %v3662_v37 = vpop.f32.mrb[0].mxu1 }
 0x428   : > { %v5822_v58 = vadd.f32 %v3662_v37, %v2405_v46  ;;  %v2498_v23 = vpop.f32.mrb[1].mxu1 }
 0x429   : > { %v5824_v21 = vadd.f32 %v2498_v23, %v2395_v41  ;;  %v3663_v24 = vpop.f32.mrb[2].mxu1 }
 0x42a   : > { %v2737_v42 = vand.u32 2147483647, %v5822_v58  ;;  %v2740_v51 = vand.u32 2139095040, %v5822_v58  ;;  %v5828_v36 = vadd.f32 %v3663_v24, %v2410_v55  ;;  %v2501_v26 = vpop.f32.mrb[3].mxu1 }
 0x42b   : > { %v2529_v34 = vand.u32 2147483647, %v5824_v21  ;;  %v2532_v30 = vand.u32 2139095040, %v5824_v21  ;;  %v5851_v25 = vadd.f32 %v2501_v26, %v2400_v12 }
 0x42c   : > { %v2741_v0 = vshrl.u32 %v2740_v51, 23  ;;  %v2744_v27 = vand.u32 8388607, %v2737_v42  ;;  %v2844_v35 = vand.u32 2139095040, %v5828_v36 }
 0x42d   : > { %v2533_v60 = vshrl.u32 %v2532_v30, 23  ;;  %v2536_v16 = vand.u32 8388607, %v2529_v34 }
 0x42e   : > { %v3585_v22 = vadd.s32 4294967169, %v2741_v0  ;;  %v2845_v48 = vshrl.u32 %v2844_v35, 23  ;;  %v2745_v29 = vor.u32 8388608, %v2744_v27 }
 0x42f   : > { %v3577_v15 = vadd.s32 4294967169, %v2533_v60  ;;  %v5837_v44 = vpop.f32.mrb[4].mxu1  ;;  %v2537_v40 = vor.u32 8388608, %v2536_v16 }
 0x430   : > { %v2747_v32 = vadd.s32 1, %v3585_v22  ;;  %v3589_v59 = vadd.s32 4294967169, %v2845_v48  ;;  %v5839_v57 = vpop.f32.mrb[5].mxu1  ;;  %v5845_v33 = vshll.u32 %v2745_v29, 8 }
 0x431   : > { %v2539_v8 = vadd.s32 1, %v3577_v15  ;;  %v5841_v7 = vpop.f32.mrb[6].mxu1  ;;  %v5847_v53 = vshll.u32 %v2537_v40, 8 }
 0x432   : > { %vm2748_vm1 = vcmp.gt.s32.totalorder %v2747_v32, 0  ;;  %v5843_v1 = vpop.f32.mrb[7].mxu1  ;;  %v5849_v4 = vadd.s32 1, %v3589_v59 }
 0x433   : > { %v2749_v52 = vsel %vm2748_vm1, %v2747_v32, 0  ;;  %vm2540_vm4 = vcmp.gt.s32.totalorder %v2539_v8, 0 }
 0x434   : > { %v2750_v49 = vshrl.u32 %v2749_v52, 5  ;;  %v2751_v19 = vand.u32 31, %v2749_v52  ;;  %v2541_v43 = vsel %vm2540_vm4, %v2539_v8, 0  ;;  %vm2852_vm7 = vcmp.gt.s32.totalorder %v5849_v4, 0 }
 0x435   : > { %v5854_v39 = vshrl.u32 %v2541_v43, 5  ;;  %v2543_v5 = vand.u32 31, %v2541_v43 }
 0x436   : > { %v2752_v28 = vsub.s32 32, %v2751_v19  ;;  %v2754_v54 = vshll.u32 %v6639_v47, %v2751_v19  ;;  %v2757_v6 = vshll.u32 %v6706_v11, %v2751_v19  ;;  %v2760_v50 = vshll.u32 %v6707_v3, %v2751_v19 }
 0x437   : > { %v2763_v14 = vshll.u32 %v6708_v56, %v2751_v19  ;;  %v2766_v63 = vshll.u32 %v6684_v31, %v2751_v19  ;;  %vm2769_vm5 = vcmp.lt.s32.totalorder %v2750_v49, 1  ;;  %vm2770_vm0 = vcmp.lt.s32.totalorder %v2750_v49, 2 }
 0x438   : > { %v2755_v18 = vshrl.u32 %v6706_v11, %v2752_v28  ;;  %v2758_v62 = vshrl.u32 %v6707_v3, %v2752_v28  ;;  %v2761_v13 = vshrl.u32 %v6708_v56, %v2752_v28  ;;  %v2753_v9 = vshrl.u32 %v6639_v47, %v2752_v28 }
 0x439   : > { %v2764_v17 = vshrl.u32 %v6684_v31, %v2752_v28  ;;  %v2767_v61 = vshrl.u32 %v6643_v2, %v2752_v28  ;;  %v2544_v45 = vsub.s32 32, %v2543_v5  ;;  %vm2771_vm6 = vcmp.lt.s32.totalorder %v2750_v49, 3 }
 0x43a   : > { %v2756_v10 = vor.u32 %v2755_v18, %v2754_v54  ;;  %v2759_v20 = vor.u32 %v2758_v62, %v2757_v6  ;;  %v2762_v38 = vor.u32 %v2761_v13, %v2760_v50  ;;  %vm2772_vm8 = vcmp.lt.s32.totalorder %v2750_v49, 4 }
 0x43b   : > { %v2765_v41 = vor.u32 %v2764_v17, %v2763_v14  ;;  %v2768_v12 = vor.u32 %v2767_v61, %v2766_v63  ;;  %v2546_v30 = vshll.u32 %v6639_v47, %v2543_v5  ;;  %v2547_v60 = vshrl.u32 %v6706_v11, %v2544_v45 }
 0x43c   : > { %v2773_v46 = vsel %vm2769_vm5, %v2753_v9, %v2756_v10  ;;  %v2774_v37 = vsel %vm2772_vm8, %v2762_v38, 2102212464  ;;  %v2777_v23 = vsel %vm2769_vm5, %v2756_v10, %v2759_v20  ;;  %v2781_v55 = vsel %vm2769_vm5, %v2759_v20, %v2762_v38 }
 0x43d   : > { %v2775_v24 = vsel %vm2771_vm6, %v2759_v20, %v2774_v37  ;;  %v2778_v51 = vsel %vm2772_vm8, %v2765_v41, 920167782  ;;  %v2782_v26 = vsel %vm2772_vm8, %v2768_v12, 1326507024  ;;  %v2549_v16 = vshll.u32 %v6706_v11, %v2543_v5 }
 0x43e   : > { %v2779_v0 = vsel %vm2771_vm6, %v2762_v38, %v2778_v51  ;;  %v2783_v27 = vsel %vm2771_vm6, %v2765_v41, %v2782_v26  ;;  %v2776_v35 = vsel %vm2770_vm0, %v2773_v46, %v2775_v24  ;;  %v2550_v48 = vshrl.u32 %v6707_v3, %v2544_v45 }
 0x43f   : > { %v2780_v22 = vsel %vm2770_vm0, %v2777_v23, %v2779_v0  ;;  %v2784_v15 = vsel %vm2770_vm0, %v2781_v55, %v2783_v27  ;;  %v2548_v59 = vor.u32 %v2547_v60, %v2546_v30  ;;  %v2552_v19 = vshll.u32 %v6707_v3, %v2543_v5 }
 0x440   : > { %v5878_v32 = vmul.u32.u64.low %v5845_v33, %v2784_v15  ;;  %v5879_v29 = vmul.u32.u64.high %v5845_v33, %v2784_v15, %v5878_v32  ;;  %v5882_v40 = vmul.u32.u64.low %v5845_v33, %v2780_v22  ;;  %v5883_v8 = vmul.u32.u64.high %v5845_v33, %v2780_v22, %v5882_v40 }
 0x441   : > { %v2551_v52 = vor.u32 %v2550_v48, %v2549_v16  ;;  %v2553_v43 = vshrl.u32 %v6708_v56, %v2544_v45  ;;  %v2545_v49 = vshrl.u32 %v6639_v47, %v2544_v45  ;;  %v2555_v28 = vshll.u32 %v6708_v56, %v2543_v5 }
 0x442   : > { %v2556_v54 = vshrl.u32 %v6684_v31, %v2544_v45  ;;  %v2559_v6 = vshrl.u32 %v6643_v2, %v2544_v45  ;;  %v2792_v50 = vmul.u32 %v5845_v33, %v2776_v35  ;;  %v2558_v63 = vshll.u32 %v6684_v31, %v2543_v5 }
 0x443   : > { %v2554_v14 = vor.u32 %v2553_v43, %v2552_v19  ;;  %vm2561_vm11 = vcmp.lt.s32.totalorder %v5854_v39, 1  ;;  %vm2794_vm12 = vc.u32 %v5879_v29, %v5882_v40  ;;  %v2795_v18 = vadd.s32 1, %v5883_v8 }
 0x444   : > { %v2557_v62 = vor.u32 %v2556_v54, %v2555_v28  ;;  %vm2562_vm10 = vcmp.lt.s32.totalorder %v5854_v39, 2  ;;  %v2560_v13 = vor.u32 %v2559_v6, %v2558_v63  ;;  %vm2563_vm9 = vcmp.lt.s32.totalorder %v5854_v39, 3 }
 0x445   : > { %vm2564_vm14 = vcmp.lt.s32.totalorder %v5854_v39, 4  ;;  %v2569_v9 = vsel %vm2561_vm11, %v2548_v59, %v2551_v52  ;;  %v2796_v33 = vsel %vm2794_vm12, %v2795_v18, %v5883_v8  ;;  %v2573_v61 = vsel %vm2561_vm11, %v2551_v52, %v2554_v14 }
 0x446   : > { %v2566_v17 = vsel %vm2564_vm14, %v2554_v14, 2102212464  ;;  %v2570_v5 = vsel %vm2564_vm14, %v2557_v62, 920167782  ;;  %v2797_v10 = vadd.s32 %v2796_v33, %v2792_v50  ;;  %v2565_v20 = vsel %vm2561_vm11, %v2545_v49, %v2548_v59 }
 0x447   : > { %v2571_v38 = vsel %vm2563_vm9, %v2554_v14, %v2570_v5  ;;  %v2574_v45 = vsel %vm2564_vm14, %v2560_v13, 1326507024  ;;  %v2567_v41 = vsel %vm2563_vm9, %v2551_v52, %v2566_v17  ;;  %v2853_v37 = vsel %vm2852_vm7, %v5849_v4, 0 }
 0x448   : > { %v2572_v12 = vsel %vm2562_vm10, %v2569_v9, %v2571_v38  ;;  %v2575_v46 = vsel %vm2563_vm9, %v2557_v62, %v2574_v45  ;;  %v2798_v23 = vadd.s32 536870912, %v2797_v10  ;;  %v2841_v0 = vand.u32 2147483647, %v5828_v36 }
 0x449   : > { %v2576_v55 = vsel %vm2562_vm10, %v2573_v61, %v2575_v46  ;;  %v5910_v24 = vmul.u32.u64.low %v5847_v53, %v2572_v12  ;;  %v5911_v51 = vmul.u32.u64.high %v5847_v53, %v2572_v12, %v5910_v24  ;;  %v2568_v4 = vsel %vm2562_vm10, %v2565_v20, %v2567_v41 }
 0x44a   : > { %v5915_v26 = vmul.u32.u64.low %v5847_v53, %v2576_v55  ;;  %v5916_v30 = vmul.u32.u64.high %v5847_v53, %v2576_v55, %v5915_v26  ;;  %v5919_v27 = vshrl.u32 %v2798_v23, 30  ;;  %v2855_v60 = vand.u32 31, %v2853_v37 }
 0x44b   : > { %v2636_v16 = vand.u32 2139095040, %v5851_v25  ;;  %v2587_v22 = vadd.s32 1, %v5911_v51  ;;  %v2584_v48 = vmul.u32 %v5847_v53, %v2568_v4  ;;  %v2848_v39 = vand.u32 8388607, %v2841_v0 }
 0x44c   : > { %v2800_v35 = vshll.u32 %v5919_v27, 30  ;;  %v2856_v15 = vsub.s32 32, %v2855_v60  ;;  %vm2586_vm15 = vc.u32 %v5916_v30, %v5910_v24  ;;  %v2858_v19 = vshll.u32 %v6639_v47, %v2855_v60 }
 0x44d   : > { %v2588_v8 = vsel %vm2586_vm15, %v2587_v22, %v5911_v51  ;;  %v2637_v59 = vshrl.u32 %v2636_v16, 23  ;;  %v2861_v28 = vshll.u32 %v6706_v11, %v2855_v60  ;;  %v2864_v54 = vshll.u32 %v6707_v3, %v2855_v60 }
 0x44e   : > { %v5929_v32 = vsub.s32 %v2797_v10, %v2800_v35  ;;  %v2589_v52 = vadd.s32 %v2588_v8, %v2584_v48  ;;  %v2859_v43 = vshrl.u32 %v6706_v11, %v2856_v15  ;;  %v2862_v49 = vshrl.u32 %v6707_v3, %v2856_v15 }
 0x44f   : > { %v2865_v6 = vshrl.u32 %v6708_v56, %v2856_v15  ;;  %v2854_v14 = vshrl.u32 %v2853_v37, 5  ;;  %v2867_v13 = vshll.u32 %v6708_v56, %v2855_v60  ;;  %v2868_v9 = vshrl.u32 %v6684_v31, %v2856_v15 }
 0x450   : > { %v2803_v53 = vsub.s32 0, %v5929_v32  ;;  %v2590_v50 = vadd.s32 536870912, %v2589_v52  ;;  %v2860_v63 = vor.u32 %v2859_v43, %v2858_v19  ;;  %v2863_v18 = vor.u32 %v2862_v49, %v2861_v28 }
 0x451   : > { %v2866_v62 = vor.u32 %v2865_v6, %v2864_v54  ;;  %v2870_v17 = vshll.u32 %v6684_v31, %v2855_v60  ;;  %v2871_v5 = vshrl.u32 %v6643_v2, %v2856_v15  ;;  %v3581_v61 = vadd.s32 4294967169, %v2637_v59 }
 0x452   : > { %v5943_v33 = vshrl.u32 %v2590_v50, 30  ;;  %v3586_v10 = vmin.u32 %v2803_v53, %v5929_v32  ;;  %v2849_v20 = vor.u32 8388608, %v2848_v39  ;;  %v2869_v38 = vor.u32 %v2868_v9, %v2867_v13 }
 0x453   : > { %v2872_v41 = vor.u32 %v2871_v5, %v2870_v17  ;;  %vm2873_vm13 = vcmp.lt.s32.totalorder %v2854_v14, 1  ;;  %vm2876_vm3 = vcmp.lt.s32.totalorder %v2854_v14, 4  ;;  %vm2875_vm1 = vcmp.lt.s32.totalorder %v2854_v14, 3 }
 0x454   : > { %v2592_v45 = vshll.u32 %v5943_v33, 30  ;;  %v2881_v12 = vsel %vm2873_vm13, %v2860_v63, %v2863_v18  ;;  %v2882_v46 = vsel %vm2876_vm3, %v2869_v38, 920167782  ;;  %v2885_v37 = vsel %vm2873_vm13, %v2863_v18, %v2866_v62 }
 0x455   : > { %vm2874_vm4 = vcmp.lt.s32.totalorder %v2854_v14, 2  ;;  %v2883_v23 = vsel %vm2875_vm1, %v2866_v62, %v2882_v46  ;;  %v2886_v55 = vsel %vm2876_vm3, %v2872_v41, 1326507024  ;;  %v2643_v51 = vadd.s32 1, %v3581_v61  ;;  %v5977_v14 = vpop.permute.xlu1 %2414 }
 0x456   : > { %v2805_v26 = vclz %v3586_v10  ;;  %v2857_v4 = vshrl.u32 %v6639_v47, %v2856_v15  ;;  %v2878_v60 = vsel %vm2876_vm3, %v2866_v62, 2102212464  ;;  %v2887_v16 = vsel %vm2875_vm1, %v2869_v38, %v2886_v55 }
 0x457   : > { %v5954_v35 = vsub.s32 %v2589_v52, %v2592_v45  ;;  %v2884_v22 = vsel %vm2874_vm4, %v2881_v12, %v2883_v23  ;;  %v2888_v48 = vsel %vm2874_vm4, %v2885_v37, %v2887_v16  ;;  %v2889_v8 = vshll.u32 %v2849_v20, 8 }
 0x458   : > { %v2877_v39 = vsel %vm2873_vm13, %v2857_v4, %v2860_v63  ;;  %v2879_v59 = vsel %vm2875_vm1, %v2863_v18, %v2878_v60  ;;  %vm2644_vm5 = vcmp.gt.s32.totalorder %v2643_v51, 0  ;;  %v3587_v49 = vadd.s32 4294967294, %v2805_v26 }
 0x459   : > { %v5960_v19 = vmul.u32.u64.low %v2889_v8, %v2888_v48  ;;  %v5961_v43 = vmul.u32.u64.high %v2889_v8, %v2888_v48, %v5960_v19  ;;  %v5963_v15 = vmul.u32.u64.low %v2889_v8, %v2884_v22  ;;  %v5964_v53 = vmul.u32.u64.high %v2889_v8, %v2884_v22, %v5963_v15 }
 0x45a   : > { %v2595_v52 = vsub.s32 0, %v5954_v35  ;;  %v2645_v28 = vsel %vm2644_vm5, %v2643_v51, 0  ;;  %v2880_v54 = vsel %vm2874_vm4, %v2877_v39, %v2879_v59  ;;  %vm3588_vm6 = vcmp.lt.s32.totalorder %v3587_v49, 0 }
 0x45b   : > { %v2647_v6 = vand.u32 31, %v2645_v28  ;;  %vm2898_vm0 = vc.u32 %v5961_v43, %v5963_v15  ;;  %v2899_v50 = vadd.s32 1, %v5964_v53  ;;  %v2896_v18 = vmul.u32 %v2889_v8, %v2880_v54 }
 0x45c   : > { %v3578_v63 = vmin.u32 %v2595_v52, %v5954_v35  ;;  %v6621_v62 = vand.u32 2147483647, %v5851_v25  ;;  %v5975_v17 = vsel %vm3588_vm6, 0, %v3587_v49  ;;  %v2793_v45 = vadd.s32 %v5882_v40, %v5879_v29  ;;  %v2425_v49 = vpop.permute.xlu1 %2424 }
 0x45d   : > { %v2648_v13 = vsub.s32 32, %v2647_v6  ;;  %v2900_v9 = vsel %vm2898_vm0, %v2899_v50, %v5964_v53  ;;  %v2809_v41 = vsub.s32 32, %v5975_v17  ;;  %v2813_v37 = vsub.s32 4294967266, %v5975_v17 }
 0x45e   : > { %v2901_v5 = vadd.s32 %v2900_v9, %v2896_v18  ;;  %v2597_v61 = vclz %v3578_v63  ;;  %v2640_v20 = vand.u32 8388607, %v6621_v62  ;;  %v2650_v55 = vshll.u32 %v6639_v47, %v2647_v6 }
 0x45f   : > { %v2651_v38 = vshrl.u32 %v6706_v11, %v2648_v13  ;;  %v2654_v12 = vshrl.u32 %v6707_v3, %v2648_v13  ;;  %v2657_v46 = vshrl.u32 %v6708_v56, %v2648_v13  ;;  %v2660_v51 = vshrl.u32 %v6684_v31, %v2648_v13 }
 0x460   : > { %v2902_v10 = vadd.s32 536870912, %v2901_v5  ;;  %v2653_v26 = vshll.u32 %v6706_v11, %v2647_v6  ;;  %v2656_v4 = vshll.u32 %v6707_v3, %v2647_v6  ;;  %v2659_v29 = vshll.u32 %v6708_v56, %v2647_v6 }
 0x461   : > { %v2663_v40 = vshrl.u32 %v6643_v2, %v2648_v13  ;;  %v3579_v60 = vadd.s32 4294967294, %v2597_v61  ;;  %v2646_v22 = vshrl.u32 %v2645_v28, 5  ;;  %v2652_v48 = vor.u32 %v2651_v38, %v2650_v55 }
 0x462   : > { %v5988_v23 = vshrl.u32 %v2902_v10, 30  ;;  %v2655_v8 = vor.u32 %v2654_v12, %v2653_v26  ;;  %v2658_v39 = vor.u32 %v2657_v46, %v2656_v4  ;;  %v2661_v59 = vor.u32 %v2660_v51, %v2659_v29 }
 0x463   : > { %v2662_v19 = vshll.u32 %v6684_v31, %v2647_v6  ;;  %v2814_v53 = vadd.s32 127, %v2813_v37  ;;  %v2811_v54 = vshrl.u32 %v2793_v45, %v2809_v41  ;;  %v2641_v50 = vor.u32 8388608, %v2640_v20 }
 0x464   : > { %v2904_v16 = vshll.u32 %v5988_v23, 30  ;;  %v6001_v18 = vadd.f32 %v5837_v44, %v2425_v49  ;;  %vm3580_vm8 = vcmp.lt.s32.totalorder %v3579_v60, 0  ;;  %vm2665_vm7 = vcmp.lt.s32.totalorder %v2646_v22, 1 }
 0x465   : > { %v2664_v63 = vor.u32 %v2663_v40, %v2662_v19  ;;  %vm2667_vm11 = vcmp.lt.s32.totalorder %v2646_v22, 3  ;;  %vm2668_vm12 = vcmp.lt.s32.totalorder %v2646_v22, 4  ;;  %v2673_v61 = vsel %vm2665_vm7, %v2652_v48, %v2655_v8 }
 0x466   : > { %v5998_v52 = vsub.s32 %v2901_v5, %v2904_v16  ;;  %v2670_v9 = vsel %vm2668_vm12, %v2658_v39, 2102212464  ;;  %v2674_v6 = vsel %vm2668_vm12, %v2661_v59, 920167782  ;;  %v2815_v10 = vshll.u32 %v2814_v53, 23 }
 0x467   : > { %v2649_v5 = vshrl.u32 %v6639_v47, %v2648_v13  ;;  %vm2666_vm10 = vcmp.lt.s32.totalorder %v2646_v22, 2  ;;  %v2675_v20 = vsel %vm2667_vm11, %v2658_v39, %v2674_v6  ;;  %v2677_v44 = vsel %vm2665_vm7, %v2655_v8, %v2658_v39 }
 0x468   : > { %v2907_v28 = vsub.s32 0, %v5998_v52  ;;  %v2676_v38 = vsel %vm2666_vm10, %v2673_v61, %v2675_v20  ;;  %v2678_v45 = vsel %vm2668_vm12, %v2664_v63, 1326507024  ;;  %v2681_v41 = vshll.u32 %v2641_v50, 8 }
 0x469   : > { %v2600_v12 = vsel %vm3580_vm8, 0, %v3579_v60  ;;  %v2669_v46 = vsel %vm2665_vm7, %v2649_v5, %v2652_v48  ;;  %v2671_v37 = vsel %vm2667_vm11, %v2655_v8, %v2670_v9  ;;  %v2679_v55 = vsel %vm2667_vm11, %v2661_v59, %v2678_v45 }
 0x46a   : > { %v3590_v51 = vmin.u32 %v2907_v28, %v5998_v52  ;;  %v2680_v13 = vsel %vm2666_vm10, %v2677_v44, %v2679_v55  ;;  %v6015_v26 = vmul.u32.u64.low %v2681_v41, %v2676_v38  ;;  %v6016_v4 = vmul.u32.u64.high %v2681_v41, %v2676_v38, %v6015_v26 }
 0x46b   : > { %v2816_v29 = vor.u32 4788187, %v2815_v10  ;;  %v2823_v40 = vsub.s32 4, %v5919_v27  ;;  %v6020_v16 = vmul.u32.u64.low %v2681_v41, %v2680_v13  ;;  %v6021_v39 = vmul.u32.u64.high %v2681_v41, %v2680_v13, %v6020_v16 }
 0x46c   : > { %vm2739_vm9 = vcmp.lt.s32.totalorder %v5822_v58, 0  ;;  %v2810_v60 = vshll.u32 %v5929_v32, %v5975_v17  ;;  %v2605_v48 = vsub.s32 4294967266, %v2600_v12  ;;  %v3156_v8 = vand.u32 2139095040, %v6001_v18 }
 0x46d   : > { %vm6029_vm14 = vcmp.le.f32.partialorder %v2737_v42, 0.7853982  ;;  %vm2531_vm15 = vcmp.lt.s32.totalorder %v5824_v21, 0  ;;  %v2601_v19 = vsub.s32 32, %v2600_v12  ;;  %v2672_v49 = vsel %vm2666_vm10, %v2669_v46, %v2671_v37 }
 0x46e   : > { %v2812_v53 = vor.u32 %v2811_v54, %v2810_v60  ;;  %v2909_v50 = vclz %v3590_v51  ;;  %v2691_v63 = vadd.s32 1, %v6016_v4  ;;  %v3157_v28 = vshrl.u32 %v3156_v8, 23 }
 0x46f   : > { %v2817_v32 = vand.u32 2147483647, %v2816_v29  ;;  %v2824_v17 = vsel %vm2739_vm9, %v2823_v40, %v5919_v27  ;;  %v2585_v42 = vadd.s32 %v5910_v24, %v5916_v30  ;;  %v2615_v9 = vsub.s32 4, %v5943_v33 }
 0x470   : > { %v2606_v61 = vadd.s32 127, %v2605_v48  ;;  %v2688_v6 = vmul.u32 %v2681_v41, %v2672_v49  ;;  %vm2690_vm13 = vc.u32 %v6021_v39, %v6015_v26  ;;  %v3601_v22 = vadd.s32 4294967169, %v3157_v28 }
 0x471   : > { %v2603_v54 = vshrl.u32 %v2585_v42, %v2601_v19  ;;  %v2692_v10 = vsel %vm2690_vm13, %v2691_v63, %v6016_v4  ;;  %v6619_v5 = vand.u32 2147483647, %v6001_v18  ;;  %v6048_v20 = vadd.f32 %v5839_v57, %v5977_v14 }
 0x472   : > { %v2819_v27 = vcvt.s32.f32 %v2812_v53  ;;  %v3591_v38 = vadd.s32 4294967294, %v2909_v50  ;;  %v2693_v24 = vadd.s32 %v2692_v10, %v2688_v6  ;;  %v3163_v30 = vadd.s32 1, %v3601_v22 }
 0x473   : > { %v2826_v44 = vsel %vm6029_vm14, 0, %v2824_v17  ;;  %v2602_v45 = vshll.u32 %v5954_v35, %v2600_v12  ;;  %v6056_v41 = vsel %vm2531_vm15, %v2615_v9, %v5943_v33  ;;  %v2607_v37 = vshll.u32 %v2606_v61, 23 }
 0x474   : > { %v6058_v46 = vmul.f32 %v2819_v27, %v2817_v32  ;;  %v2694_v55 = vadd.s32 536870912, %v2693_v24  ;;  %vm3164_vm3 = vcmp.gt.s32.totalorder %v3163_v30, 0  ;;  %v3160_v14 = vand.u32 8388607, %v6619_v5 }
 0x475   : > { %v6060_v57 = vor.u32 %v2603_v54, %v2602_v45  ;;  %v3165_v51 = vsel %vm3164_vm3, %v3163_v30, 0  ;;  %v2948_v13 = vand.u32 2139095040, %v6048_v20  ;;  %vm6067_vm1 = vcmp.le.f32.partialorder %v2529_v34, 0.7853982 }
 0x476   : > { %vm3592_vm4 = vcmp.lt.s32.totalorder %v3591_v38, 0  ;;  %v6071_v33 = vshrl.u32 %v2694_v55, 30  ;;  %v3167_v12 = vand.u32 31, %v3165_v51  ;;  %v6073_v4 = vadd.s32 3, %v2826_v44  ;;  %v6098_v55 = vpop.permute.xlu0 %2419 }
 0x477   : > { %v2821_v40 = vxor.u32 2147483648, %v6058_v46  ;;  %v2608_v16 = vor.u32 4788187, %v2607_v37  ;;  %v2611_v34 = vcvt.s32.f32 %v6060_v57  ;;  %v6081_v8 = vsel %vm3592_vm4, 0, %v3591_v38 }
 0x478   : > { %v2696_v60 = vshll.u32 %v6071_v33, 30  ;;  %v3168_v48 = vsub.s32 32, %v3167_v12  ;;  %v3161_v19 = vor.u32 8388608, %v3160_v14  ;;  %v2949_v49 = vshrl.u32 %v2948_v13, 23 }
 0x479   : > { %v3166_v50 = vshrl.u32 %v3165_v51, 5  ;;  %v3170_v63 = vshll.u32 %v6639_v47, %v3167_v12  ;;  %v3173_v32 = vshll.u32 %v6706_v11, %v3167_v12  ;;  %v3176_v42 = vshll.u32 %v6707_v3, %v3167_v12 }
 0x47a   : > { %v6083_v53 = vsub.s32 %v2693_v24, %v2696_v60  ;;  %v3171_v28 = vshrl.u32 %v6706_v11, %v3168_v48  ;;  %v3174_v17 = vshrl.u32 %v6707_v3, %v3168_v48  ;;  %v3177_v9 = vshrl.u32 %v6708_v56, %v3168_v48 }
 0x47b   : > { %v2609_v61 = vand.u32 2147483647, %v2608_v16  ;;  %v3179_v22 = vshll.u32 %v6708_v56, %v3167_v12  ;;  %v3180_v54 = vshrl.u32 %v6684_v31, %v3168_v48  ;;  %v2917_v10 = vsub.s32 4294967266, %v6081_v8 }
 0x47c   : > { %v2699_v6 = vsub.s32 0, %v6083_v53  ;;  %v3172_v27 = vor.u32 %v3171_v28, %v3170_v63  ;;  %v3175_v38 = vor.u32 %v3174_v17, %v3173_v32  ;;  %v3178_v24 = vor.u32 %v3177_v9, %v3176_v42 }
 0x47d   : > { %v3181_v44 = vor.u32 %v3180_v54, %v3179_v22  ;;  %v3182_v45 = vshll.u32 %v6684_v31, %v3167_v12  ;;  %v3183_v37 = vshrl.u32 %v6643_v2, %v3168_v48  ;;  %v3169_v57 = vshrl.u32 %v6639_v47, %v3168_v48 }
 0x47e   : > { %v3582_v30 = vmin.u32 %v2699_v6, %v6083_v53  ;;  %vm3185_vm5 = vcmp.lt.s32.totalorder %v3166_v50, 1  ;;  %v3201_v14 = vshll.u32 %v3161_v19, 8  ;;  %v3593_v51 = vadd.s32 4294967169, %v2949_v49 }
 0x47f   : > { %v3184_v16 = vor.u32 %v3183_v37, %v3182_v45  ;;  %vm3186_vm0 = vcmp.lt.s32.totalorder %v3166_v50, 2  ;;  %vm3188_vm6 = vcmp.lt.s32.totalorder %v3166_v50, 4  ;;  %vm3187_vm8 = vcmp.lt.s32.totalorder %v3166_v50, 3 }
 0x480   : > { %v2701_v13 = vclz %v3582_v30  ;;  %v3190_v60 = vsel %vm3188_vm6, %v3178_v24, 2102212464  ;;  %v3193_v63 = vsel %vm3185_vm5, %v3172_v27, %v3175_v38  ;;  %v3194_v28 = vsel %vm3188_vm6, %v3181_v44, 920167782  ;;  %v2430_v30 = vpop.permute.xlu0 %2429 }
 0x481   : > { %v3189_v17 = vsel %vm3185_vm5, %v3169_v57, %v3172_v27  ;;  %v3195_v12 = vsel %vm3187_vm8, %v3178_v24, %v3194_v28  ;;  %v3197_v42 = vsel %vm3185_vm5, %v3175_v38, %v3178_v24  ;;  %v3191_v9 = vsel %vm3187_vm8, %v3175_v38, %v3190_v60 }
 0x482   : > { %v3583_v32 = vadd.s32 4294967294, %v2701_v13  ;;  %v3196_v6 = vsel %vm3186_vm0, %v3193_v63, %v3195_v12  ;;  %v3198_v22 = vsel %vm3188_vm6, %v3184_v16, 1326507024  ;;  %v2955_v48 = vadd.s32 1, %v3593_v51 }
 0x483   : > { %v3199_v19 = vsel %vm3187_vm8, %v3181_v44, %v3198_v22  ;;  %v6102_v49 = vmul.u32.u64.low %v3201_v14, %v3196_v6  ;;  %v6103_v54 = vmul.u32.u64.high %v3201_v14, %v3196_v6, %v6102_v49  ;;  %v6106_v45 = vmul.f32 %v2611_v34, %v2609_v61 }
 0x484   : > { %vm3584_vm7 = vcmp.lt.s32.totalorder %v3583_v32, 0  ;;  %v2918_v37 = vadd.s32 127, %v2917_v10  ;;  %v3200_v13 = vsel %vm3186_vm0, %v3197_v42, %v3199_v19  ;;  %vm2956_vm11 = vcmp.gt.s32.totalorder %v2955_v48, 0 }
 0x485   : > { %v3192_v27 = vsel %vm3186_vm0, %v3189_v17, %v3191_v9  ;;  %v6620_v38 = vand.u32 2147483647, %v6048_v20  ;;  %v2957_v24 = vsel %vm2956_vm11, %v2955_v48, 0  ;;  %v6112_v57 = vadd.f32 %v5841_v7, %v2430_v30 }
 0x486   : > { %v6114_v44 = vsel %vm3584_vm7, 0, %v3583_v32  ;;  %v6116_v51 = vmul.u32.u64.low %v3201_v14, %v3200_v13  ;;  %v6117_v16 = vmul.u32.u64.high %v3201_v14, %v3200_v13, %v6116_v51  ;;  %v2959_v60 = vand.u32 31, %v2957_v24 }
 0x487   : > { %v6124_v34 = vsel %vm2739_vm9, %v2821_v40, %v6058_v46  ;;  %v2897_v50 = vadd.s32 %v5963_v15, %v5961_v43  ;;  %v3211_v7 = vadd.s32 1, %v6103_v54  ;;  %v2913_v63 = vsub.s32 32, %v6081_v8 }
 0x488   : > { %v2919_v28 = vshll.u32 %v2918_v37, 23  ;;  %v2960_v32 = vsub.s32 32, %v2959_v60  ;;  %v2709_v17 = vsub.s32 4294967266, %v6114_v44  ;;  %v3208_v12 = vmul.u32 %v3201_v14, %v3192_v27 }
 0x489   : > { %v2952_v46 = vand.u32 8388607, %v6620_v38  ;;  %v3260_v40 = vand.u32 2139095040, %v6112_v57  ;;  %vm3210_vm12 = vc.u32 %v6117_v16, %v6102_v49  ;;  %v6138_v43 = vshrl.u32 %v2957_v24, 5 }
 0x48a   : > { %v2962_v15 = vshll.u32 %v6639_v47, %v2959_v60  ;;  %v2963_v42 = vshrl.u32 %v6706_v11, %v2960_v32  ;;  %v3212_v9 = vsel %vm3210_vm12, %v3211_v7, %v6103_v54  ;;  %v2965_v6 = vshll.u32 %v6706_v11, %v2959_v60 }
 0x48b   : > { %v2966_v14 = vshrl.u32 %v6707_v3, %v2960_v32  ;;  %v2968_v22 = vshll.u32 %v6707_v3, %v2959_v60  ;;  %v3213_v48 = vadd.s32 %v3212_v9, %v3208_v12  ;;  %v2969_v19 = vshrl.u32 %v6708_v56, %v2960_v32 }
 0x48c   : > { %v2971_v30 = vshll.u32 %v6708_v56, %v2959_v60  ;;  %v2972_v37 = vshrl.u32 %v6684_v31, %v2960_v32  ;;  %v2964_v13 = vor.u32 %v2963_v42, %v2962_v15  ;;  %v2974_v24 = vshll.u32 %v6684_v31, %v2959_v60 }
 0x48d   : > { %v2967_v27 = vor.u32 %v2966_v14, %v2965_v6  ;;  %v2975_v51 = vshrl.u32 %v6643_v2, %v2960_v32  ;;  %v2914_v54 = vshll.u32 %v5998_v52, %v6081_v8  ;;  %v3214_v7 = vadd.s32 536870912, %v3213_v48 }
 0x48e   : > { %v2970_v5 = vor.u32 %v2969_v19, %v2968_v22  ;;  %v2973_v38 = vor.u32 %v2972_v37, %v2971_v30  ;;  %v2915_v62 = vshrl.u32 %v2897_v50, %v2913_v63  ;;  %v2920_v12 = vor.u32 4788187, %v2919_v28 }
 0x48f   : > { %v2953_v9 = vor.u32 8388608, %v2952_v46  ;;  %v2976_v29 = vor.u32 %v2975_v51, %v2974_v24  ;;  %vm2843_vm10 = vcmp.lt.s32.totalorder %v5828_v36, 0  ;;  %v2710_v10 = vadd.s32 127, %v2709_v17 }
 0x490   : > { %v6154_v61 = vshrl.u32 %v3214_v7, 30  ;;  %vm2977_vm9 = vcmp.lt.s32.totalorder %v6138_v43, 1  ;;  %vm2980_vm13 = vcmp.lt.s32.totalorder %v6138_v43, 4  ;;  %vm2979_vm3 = vcmp.lt.s32.totalorder %v6138_v43, 3 }
 0x491   : > { %v2985_v52 = vsel %vm2977_vm9, %v2964_v13, %v2967_v27  ;;  %v2986_v8 = vsel %vm2980_vm13, %v2973_v38, 920167782  ;;  %v3261_v60 = vshrl.u32 %v3260_v40, 23  ;;  %v2705_v50 = vsub.s32 32, %v6114_v44 }
 0x492   : > { %v3216_v63 = vshll.u32 %v6154_v61, 30  ;;  %v2987_v28 = vsel %vm2979_vm3, %v2970_v5, %v2986_v8  ;;  %v2989_v17 = vsel %vm2977_vm9, %v2967_v27, %v2970_v5  ;;  %v2689_v46 = vadd.s32 %v6015_v26, %v6021_v39 }
 0x493   : > { %vm2978_vm4 = vcmp.lt.s32.totalorder %v6138_v43, 2  ;;  %v2982_v15 = vsel %vm2980_vm13, %v2970_v5, 2102212464  ;;  %v2990_v42 = vsel %vm2980_vm13, %v2976_v29, 1326507024  ;;  %v2711_v6 = vshll.u32 %v2710_v10, 23 }
 0x494   : > { %v2961_v40 = vshrl.u32 %v6639_v47, %v2960_v32  ;;  %v2988_v14 = vsel %vm2978_vm4, %v2985_v52, %v2987_v28  ;;  %v2991_v22 = vsel %vm2979_vm3, %v2973_v38, %v2990_v42  ;;  %v2916_v19 = vor.u32 %v2915_v62, %v2914_v54 }
 0x495   : > { %v2992_v30 = vsel %vm2978_vm4, %v2989_v17, %v2991_v22  ;;  %v2993_v37 = vshll.u32 %v2953_v9, 8  ;;  %v3605_v24 = vadd.s32 4294967169, %v3261_v60  ;;  %vm6179_vm5 = vcmp.le.f32.partialorder %v2841_v0, 0.7853982 }
 0x496   : > { %v2707_v39 = vshrl.u32 %v2689_v46, %v2705_v50  ;;  %v6183_v5 = vsub.s32 %v3213_v48, %v3216_v63  ;;  %v2981_v29 = vsel %vm2977_vm9, %v2961_v40, %v2964_v13  ;;  %v2983_v62 = vsel %vm2979_vm3, %v2967_v27, %v2982_v15 }
 0x497   : > { %v6189_v38 = vmul.u32.u64.low %v2993_v37, %v2992_v30  ;;  %v6190_v10 = vmul.u32.u64.high %v2993_v37, %v2992_v30, %v6189_v38  ;;  %v6192_v32 = vmul.u32.u64.low %v2993_v37, %v2988_v14  ;;  %v6193_v51 = vmul.u32.u64.high %v2993_v37, %v2988_v14, %v6192_v32 }
 0x498   : > { %v2921_v0 = vand.u32 2147483647, %v2920_v12  ;;  %v2706_v54 = vshll.u32 %v6083_v53, %v6114_v44  ;;  %v2712_v7 = vor.u32 4788187, %v2711_v6  ;;  %v3267_v48 = vadd.s32 1, %v3605_v24 }
 0x499   : > { %v2825_v13 = vsel %vm6029_vm14, %v5822_v58, %v6124_v34  ;;  %v6715_v27 = vsub.s32 4, %v5988_v23  ;;  %v2984_v12 = vsel %vm2978_vm4, %v2981_v29, %v2983_v62  ;;  %v6716_v53 = vxor.u32 2147483648, %v6106_v45 }
 0x49a   : > { %v2923_v52 = vcvt.s32.f32 %v2916_v19  ;;  %v2708_v8 = vor.u32 %v2707_v39, %v2706_v54  ;;  %vm3268_vm0 = vcmp.gt.s32.totalorder %v3267_v48, 0  ;;  %v6623_v59 = vmov 0.0  }
 0x49b   : > { %v6207_v9 = vsel %vm2843_vm10, %v6715_v27, %v5988_v23  ;;  %v2614_v44 = vsel %vm2531_vm15, %v6716_v53, %v6106_v45  ;;  %3668 = vmatprep.subr.bf16.mxu0 %v6623_v59  ;;  %v3219_v34 = vsub.s32 0, %v6183_v5  ;;  %vm3002_vm14 = vc.u32 %v6190_v10, %v6192_v32 }
 0x49c   : > { %v3003_v23 = vadd.s32 1, %v6193_v51  ;;  %v3269_v43 = vsel %vm3268_vm0, %v3267_v48, 0  ;;  %v2924_v60 = vmul.f32 %v2923_v52, %v2921_v0  ;;  %v2713_v50 = vand.u32 2147483647, %v2712_v7 }
 0x49d   : > { %v3000_v63 = vmul.u32 %v2993_v37, %v2984_v12  ;;  %v3271_v28 = vand.u32 31, %v3269_v43  ;;  %3918 = vcosq.f32 %v2825_v13  ;;  %v6717_v45 = vsel %vm6067_vm1, 0, %v6056_v41 }
 0x49e   : > { %v6225_v17 = vadd.s32 3, %v6717_v45  ;;  %v3004_v46 = vsel %vm3002_vm14, %v3003_v23, %v6193_v51  ;;  %v6622_v15 = vand.u32 2147483647, %v6112_v57  ;;  %3920 = vsinq.f32 %v2825_v13 }
 0x49f   : > { %v2715_v42 = vcvt.s32.f32 %v2708_v8  ;;  %v3005_v6 = vadd.s32 %v3004_v46, %v3000_v63  ;;  %v3272_v40 = vsub.s32 32, %v3271_v28  ;;  %v6232_v14 = vsel %vm6067_vm1, %v5824_v21, %v2614_v44 }
 0x4a0   : > { %v2930_v22 = vsel %vm6179_vm5, 0, %v6207_v9  ;;  %v3602_v41 = vmin.u32 %v3219_v34, %v6183_v5  ;;  %v6240_v19 = vadd.f32 %v5843_v1, %v6098_v55  ;;  %v2925_v30 = vxor.u32 2147483648, %v2924_v60 }
 0x4a1   : > { %v6242_v37 = vmul.f32 %v2715_v42, %v2713_v50  ;;  %v2719_v24 = vsub.s32 4, %v6071_v33  ;;  %v3006_v39 = vadd.s32 536870912, %v3005_v6  ;;  %v3264_v35 = vand.u32 8388607, %v6622_v15 }
 0x4a2   : > { %v3275_v29 = vshrl.u32 %v6706_v11, %v3272_v40  ;;  %v3278_v62 = vshrl.u32 %v6707_v3, %v3272_v40  ;;  %v3281_v38 = vshrl.u32 %v6708_v56, %v3272_v40  ;;  %v3274_v1 = vshll.u32 %v6639_v47, %v3271_v28 }
 0x4a3   : > { %v6250_v51 = vshrl.u32 %v3006_v39, 30  ;;  %v3277_v55 = vshll.u32 %v6706_v11, %v3271_v28  ;;  %v3284_v0 = vshrl.u32 %v6684_v31, %v3272_v40  ;;  %v3221_v54 = vclz %v3602_v41 }
 0x4a4   : > { %v3280_v7 = vshll.u32 %v6707_v3, %v3271_v28  ;;  %v3283_v48 = vshll.u32 %v6708_v56, %v3271_v28  ;;  %v3052_v13 = vand.u32 2139095040, %v6240_v19  ;;  %v3270_v12 = vshrl.u32 %v3269_v43, 5 }
 0x4a5   : > { %v3008_v27 = vshll.u32 %v6250_v51, 30  ;;  %v3276_v53 = vor.u32 %v3275_v29, %v3274_v1  ;;  %v3279_v44 = vor.u32 %v3278_v62, %v3277_v55  ;;  %vm2635_vm15 = vcmp.lt.s32.totalorder %v5851_v25, 0 }
 0x4a6   : > { %v3282_v52 = vor.u32 %v3281_v38, %v3280_v7  ;;  %v3285_v8 = vor.u32 %v3284_v0, %v3283_v48  ;;  %v3286_v34 = vshll.u32 %v6684_v31, %v3271_v28  ;;  %v3287_v23 = vshrl.u32 %v6643_v2, %v3272_v40 }
 0x4a7   : > { %v2926_v50 = vsel %vm2843_vm10, %v2925_v30, %v2924_v60  ;;  %v2717_v63 = vxor.u32 2147483648, %v6242_v37  ;;  %v6265_v45 = vsub.s32 %v3005_v6, %v3008_v27  ;;  %v3265_v46 = vor.u32 8388608, %v3264_v35  ;;  %v6267_v42 = vpop.eup %3918 }
 0x4a8   : > { %v3603_v43 = vadd.s32 4294967294, %v3221_v54  ;;  %v3288_v41 = vor.u32 %v3287_v23, %v3286_v34  ;;  %v3053_v29 = vshrl.u32 %v3052_v13, 23  ;;  %v6270_v62 = vpop.eup %3920  ;;  %v6718_v28 = vand.u32 2147483647, %v5851_v25 }
 0x4a9   : > { %v3011_v60 = vsub.s32 0, %v6265_v45  ;;  %v3273_v6 = vshrl.u32 %v6639_v47, %v3272_v40  ;;  %vm3289_vm6 = vcmp.lt.s32.totalorder %v3270_v12, 1  ;;  %vm3292_vm8 = vcmp.lt.s32.totalorder %v3270_v12, 4 }
 0x4aa   : > { %vm6274_vm1 = vcmp.le.f32.partialorder %v6718_v28, 0.7853982  ;;  %vm3291_vm7 = vcmp.lt.s32.totalorder %v3270_v12, 3  ;;  %v3294_v30 = vsel %vm3292_vm8, %v3282_v52, 2102212464  ;;  %v3297_v35 = vsel %vm3289_vm6, %v3276_v53, %v3279_v44 }
 0x4ab   : > { %v3298_v1 = vsel %vm3292_vm8, %v3285_v8, 920167782  ;;  %v3594_v55 = vmin.u32 %v3011_v60, %v6265_v45  ;;  %vm3290_vm11 = vcmp.lt.s32.totalorder %v3270_v12, 2  ;;  %v3301_v54 = vsel %vm3289_vm6, %v3279_v44, %v3282_v52 }
 0x4ac   : > { %v3299_v0 = vsel %vm3291_vm7, %v3282_v52, %v3298_v1  ;;  %v3302_v48 = vsel %vm3292_vm8, %v3288_v41, 1326507024  ;;  %v3305_v13 = vshll.u32 %v3265_v46, 8  ;;  %v3597_v27 = vadd.s32 4294967169, %v3053_v29 }
 0x4ad   : > { %v3300_v7 = vsel %vm3290_vm11, %v3297_v35, %v3299_v0  ;;  %vm3604_vm12 = vcmp.lt.s32.totalorder %v3603_v43, 0  ;;  %v3293_v34 = vsel %vm3289_vm6, %v3273_v6, %v3276_v53  ;;  %v3295_v23 = vsel %vm3291_vm7, %v3279_v44, %v3294_v30 }
 0x4ae   : > { %v3303_v40 = vsel %vm3291_vm7, %v3285_v8, %v3302_v48  ;;  %v3013_v28 = vclz %v3594_v55  ;;  %v6283_v59 = vmul.u32.u64.low %v3305_v13, %v3300_v7  ;;  %v6284_v39 = vmul.u32.u64.high %v3305_v13, %v3300_v7, %v6283_v59 }
 0x4af   : > { %v3304_v15 = vsel %vm3290_vm11, %v3301_v54, %v3303_v40  ;;  %3922 = vsinq.f32 %v6232_v14  ;;  %v2720_v52 = vsel %vm2635_vm15, %v2719_v24, %v6071_v33  ;;  %v2929_v53 = vsel %vm6179_vm5, %v5828_v36, %v2926_v50 }
 0x4b0   : > { %v6291_v41 = vmul.u32.u64.low %v3305_v13, %v3304_v15  ;;  %v6292_v46 = vmul.u32.u64.high %v3305_v13, %v3304_v15, %v6291_v41  ;;  %v2718_v44 = vsel %vm2635_vm15, %v2717_v63, %v6242_v37  ;;  %v6300_v8 = vsel %vm3604_vm12, 0, %v3603_v43 }
 0x4b1   : > { %v3059_v29 = vadd.s32 1, %v3597_v27  ;;  %3924 = vcosq.f32 %v6232_v14  ;;  %v6307_v33 = vadd.s32 3, %v2930_v22  ;;  %v3296_v15 = vsel %vm3290_vm11, %v3293_v34, %v3295_v23 }
 0x4b2   : > { %v6721_v24 = vand.u32 2147483647, %v6240_v19  ;;  %v2722_v60 = vsel %vm6274_vm1, 0, %v2720_v52  ;;  %v3595_v37 = vadd.s32 4294967294, %v3013_v28  ;;  %v3315_v63 = vadd.s32 1, %v6284_v39 }
 0x4b3   : > { %vm3060_vm10 = vcmp.gt.s32.totalorder %v3059_v29, 0  ;;  %3926 = vcosq.f32 %v2929_v53  ;;  %v2721_v26 = vsel %vm6274_vm1, %v5851_v25, %v2718_v44  ;;  %v3225_v9 = vsub.s32 32, %v6300_v8 }
 0x4b4   : > { %v3056_v50 = vand.u32 8388607, %v6721_v24  ;;  %v6320_v14 = vand.u32 3, %v6225_v17  ;;  %v3229_v22 = vsub.s32 4294967266, %v6300_v8  ;;  %v3312_v12 = vmul.u32 %v3305_v13, %v3296_v15 }
 0x4b5   : > { %vm3314_vm9 = vc.u32 %v6292_v46, %v6283_v59  ;;  %v3061_v43 = vsel %vm3060_vm10, %v3059_v29, 0  ;;  %3928 = vsinq.f32 %v2929_v53  ;;  %v3209_v6 = vadd.s32 %v6102_v49, %v6117_v16 }
 0x4b6   : > { %v3316_v30 = vsel %vm3314_vm9, %v3315_v63, %v6284_v39  ;;  %v3057_v38 = vor.u32 8388608, %v3056_v50  ;;  %3930 = vcosq.f32 %v2721_v26  ;;  %vm3596_vm13 = vcmp.lt.s32.totalorder %v3595_v37, 0 }
 0x4b7   : > { %v3317_v35 = vadd.s32 %v3316_v30, %v3312_v12  ;;  %v3063_v1 = vand.u32 31, %v3061_v43  ;;  %3932 = vsinq.f32 %v2721_v26  ;;  %v6328_v17 = vadd.s32 3, %v2722_v60 }
 0x4b8   : > { %v6332_v55 = vadd.s32 %v6192_v32, %v6190_v10  ;;  %vm2625_vm3 = vcmp.eq.s32.totalorder %v6320_v14, 0  ;;  %v6335_v0 = vshrl.u32 %v3209_v6, %v3225_v9  ;;  %v6337_v54 = vadd.s32 127, %v3229_v22 }
 0x4b9   : > { %v3318_v49 = vadd.s32 536870912, %v3317_v35  ;;  %v3064_v16 = vsub.s32 32, %v3063_v1  ;;  %v3923_v39 = vpop.eup %3922  ;;  %v6339_v7 = vsel %vm3596_vm13, 0, %v3595_v37  ;;  %v6341_v48 = vshrl.u32 %v3061_v43, 5 }
 0x4ba   : > { %v3066_v13 = vshll.u32 %v6639_v47, %v3063_v1  ;;  %v6344_v27 = vshll.u32 %v3057_v38, 8  ;;  %v3069_v32 = vshll.u32 %v6706_v11, %v3063_v1  ;;  %v3072_v28 = vshll.u32 %v6707_v3, %v3063_v1 }
 0x4bb   : > { %v6346_v34 = vshrl.u32 %v3318_v49, 30  ;;  %v3067_v10 = vshrl.u32 %v6706_v11, %v3064_v16  ;;  %v3070_v23 = vshrl.u32 %v6707_v3, %v3064_v16  ;;  %v3925_v40 = vpop.eup %3924  ;;  %v3073_v52 = vshrl.u32 %v6708_v56, %v3064_v16 }
 0x4bc   : > { %v3075_v41 = vshll.u32 %v6708_v56, %v3063_v1  ;;  %v3076_v53 = vshrl.u32 %v6684_v31, %v3064_v16  ;;  %v2626_v24 = vxor.u32 2147483648, %v3923_v39  ;;  %v3078_v37 = vshll.u32 %v6684_v31, %v3063_v1 }
 0x4bd   : > { %v3320_v44 = vshll.u32 %v6346_v34, 30  ;;  %v3068_v29 = vor.u32 %v3067_v10, %v3066_v13  ;;  %v3071_v15 = vor.u32 %v3070_v23, %v3069_v32  ;;  %v6356_v50 = vpop.eup %3926  ;;  %v3074_v60 = vor.u32 %v3073_v52, %v3072_v28 }
 0x4be   : > { %v3077_v11 = vor.u32 %v3076_v53, %v3075_v41  ;;  %v3079_v63 = vshrl.u32 %v6643_v2, %v3064_v16  ;;  %v3017_v3 = vsub.s32 32, %v6339_v7  ;;  %vm2624_vm4 = vcmp.lt.s32.totalorder %v6320_v14, 2 }
 0x4bf   : > { %v6361_v26 = vsub.s32 %v3317_v35, %v3320_v44  ;;  %vm2628_vm5 = vcmp.eq.s32.totalorder %v6320_v14, 2  ;;  %v2629_v56 = vxor.u32 2147483648, %v3925_v40  ;;  %v6365_v9 = vpop.eup %3928  ;;  %v3018_v22 = vshll.u32 %v6265_v45, %v6339_v7 }
 0x4c0   : > { %v3021_v12 = vsub.s32 4294967266, %v6339_v7  ;;  %v3080_v43 = vor.u32 %v3079_v63, %v3078_v37  ;;  %vm3081_vm0 = vcmp.lt.s32.totalorder %v6341_v48, 1  ;;  %v3931_v2 = vpop.eup %3930  ;;  %vm3084_vm14 = vcmp.lt.s32.totalorder %v6341_v48, 4 }
 0x4c1   : > { %v3323_v31 = vsub.s32 0, %v6361_v26  ;;  %v3089_v6 = vsel %vm3081_vm0, %v3068_v29, %v3071_v15  ;;  %v2627_v30 = vsel %vm2625_vm3, %v3925_v40, %v2626_v24  ;;  %v3933_v38 = vpop.eup %3932  ;;  %vm3082_vm15 = vcmp.lt.s32.totalorder %v6341_v48, 2 }
 0x4c2   : > { %vm3083_vm1 = vcmp.lt.s32.totalorder %v6341_v48, 3  ;;  %v3086_v35 = vsel %vm3084_vm14, %v3074_v60, 2102212464  ;;  %v3090_v1 = vsel %vm3084_vm14, %v3077_v11, 920167782  ;;  %v3065_v13 = vshrl.u32 %v6639_v47, %v3064_v16 }
 0x4c3   : > { %v3606_v49 = vmin.u32 %v3323_v31, %v6361_v26  ;;  %v3091_v10 = vsel %vm3083_vm1, %v3074_v60, %v3090_v1  ;;  %v3093_v32 = vsel %vm3081_vm0, %v3071_v15, %v3074_v60  ;;  %v3022_v23 = vadd.s32 127, %v3021_v12 }
 0x4c4   : > { %v3092_v28 = vsel %vm3082_vm15, %v3089_v6, %v3091_v10  ;;  %v3094_v40 = vsel %vm3084_vm14, %v3080_v43, 1326507024  ;;  %vm2621_vm6 = vweird.f32 %v5824_v21  ;;  %v2630_v52 = vsel %vm2628_vm5, %v2629_v56, %v3923_v39 }
 0x4c5   : > { %v3325_v41 = vclz %v3606_v49  ;;  %v3085_v53 = vsel %vm3081_vm0, %v3065_v13, %v3068_v29  ;;  %v3087_v44 = vsel %vm3083_vm1, %v3071_v15, %v3086_v35  ;;  %v3095_v47 = vsel %vm3083_vm1, %v3077_v11, %v3094_v40 }
 0x4c6   : > { %v3096_v16 = vsel %vm3082_vm15, %v3093_v32, %v3095_v47  ;;  %v6393_v24 = vmul.u32.u64.low %v6344_v27, %v3092_v28  ;;  %v6394_v60 = vmul.u32.u64.high %v6344_v27, %v3092_v28, %v6393_v24  ;;  %v2727_v37 = vand.u32 3, %v6328_v17 }
 0x4c7   : > { %v3607_v63 = vadd.s32 4294967294, %v3325_v41  ;;  %v6399_v12 = vmul.u32.u64.low %v6344_v27, %v3096_v16  ;;  %v6400_v39 = vmul.u32.u64.high %v6344_v27, %v3096_v16, %v6399_v12  ;;  %v2730_v56 = vxor.u32 2147483648, %v3933_v38 }
 0x4c8   : > { %v3023_v43 = vshll.u32 %v3022_v23, 23  ;;  %v2631_v29 = vsel %vm2624_vm4, %v2627_v30, %v2630_v52  ;;  %vm2729_vm8 = vcmp.eq.s32.totalorder %v2727_v37, 0  ;;  %v2733_v15 = vxor.u32 2147483648, %v3931_v2 }
 0x4c9   : > { %vm3608_vm7 = vcmp.lt.s32.totalorder %v3607_v63, 0  ;;  %v3088_v11 = vsel %vm3082_vm15, %v3085_v53, %v3087_v44  ;;  %v2731_v31 = vsel %vm2729_vm8, %v3931_v2, %v2730_v56  ;;  %vm2732_vm11 = vcmp.eq.s32.totalorder %v2727_v37, 2 }
 0x4ca   : > { %v3328_v6 = vsel %vm3608_vm7, 0, %v3607_v63  ;;  %v3107_v17 = vadd.s32 1, %v6394_v60  ;;  %v2734_v35 = vsel %vm2732_vm11, %v2733_v15, %v3933_v38  ;;  %v2831_v1 = vand.u32 3, %v6073_v4 }
 0x4cb   : > { %v3019_v49 = vshrl.u32 %v6332_v55, %v3017_v3  ;;  %v3333_v13 = vsub.s32 4294967266, %v3328_v6  ;;  %vm2728_vm12 = vcmp.lt.s32.totalorder %v2727_v37, 2  ;;  %v2834_v14 = vxor.u32 2147483648, %v6270_v62 }
 0x4cc   : > { %v3104_v30 = vmul.u32 %v6344_v27, %v3088_v11  ;;  %vm3106_vm10 = vc.u32 %v6400_v39, %v6393_v24  ;;  %vm2725_vm9 = vweird.f32 %v5851_v25  ;;  %v2735_v48 = vsel %vm2728_vm12, %v2731_v31, %v2734_v35 }
 0x4cd   : > { %v3024_v2 = vor.u32 4788187, %v3023_v43  ;;  %v3108_v10 = vsel %vm3106_vm10, %v3107_v17, %v6394_v60  ;;  %v2632_v4 = vsel %vm2621_vm6, nan, %v2631_v29  ;;  %v2736_v38 = vsel %vm2725_vm9, nan, %v2735_v48 }
 0x4ce   : > { %v3334_v55 = vadd.s32 127, %v3333_v13  ;;  %v3109_v3 = vadd.s32 %v3108_v10, %v3104_v30  ;;  %v3362_v32 = vpack.c.bf16 %v2736_v38, %v2632_v4  ;;  %vm2833_vm13 = vcmp.eq.s32.totalorder %v2831_v1, 0 }
 0x4cf   : > { %v3329_v23 = vsub.s32 32, %v3328_v6  ;;  %v2835_v27 = vsel %vm2833_vm13, %v6267_v42, %v2834_v14  ;;  %vm2836_vm3 = vcmp.eq.s32.totalorder %v2831_v1, 2  ;;  %v2837_v28 = vxor.u32 2147483648, %v6267_v42 }
 0x4d0   : > { %v3110_v40 = vadd.s32 536870912, %v3109_v3  ;;  %3669 = vmatpush3.bf16.msra.mxu0 %v3362_v32  ;;  %v2935_v25 = vand.u32 3, %v6307_v33  ;;  %v2938_v52 = vxor.u32 2147483648, %v6365_v9  ;;  %v2941_v21 = vxor.u32 2147483648, %v6356_v50 }
 0x4d1   : > { %v3231_v41 = vshll.u32 %v6337_v54, 23  ;;  %v3020_v53 = vor.u32 %v3019_v49, %v3018_v22  ;;  %v3313_v44 = vadd.s32 %v6283_v59, %v6292_v46  ;;  %v6722_v47 = vmov 0.0  }
 0x4d2   : > { %3670 = vmatprep.subr.bf16.mxu0 %v6722_v47  ;;  %v2838_v42 = vsel %vm2836_vm3, %v2837_v28, %v6270_v62  ;;  %v3335_v16 = vshll.u32 %v3334_v55, 23  ;;  %v6430_v60 = vshrl.u32 %v3110_v40, 30  ;;  %vm2832_vm4 = vcmp.lt.s32.totalorder %v2831_v1, 2 }
 0x4d3   : > { %vm2937_vm5 = vcmp.eq.s32.totalorder %v2935_v25, 0  ;;  %v3025_v33 = vand.u32 2147483647, %v3024_v2  ;;  %v2839_v37 = vsel %vm2832_vm4, %v2835_v27, %v2838_v42  ;;  %vm2940_vm0 = vcmp.eq.s32.totalorder %v2935_v25, 2 }
 0x4d4   : > { %v2939_v54 = vsel %vm2937_vm5, %v6356_v50, %v2938_v52  ;;  %v3331_v63 = vshrl.u32 %v3313_v44, %v3329_v23  ;;  %v3112_v45 = vshll.u32 %v6430_v60, 30  ;;  %vm2936_vm14 = vcmp.lt.s32.totalorder %v2935_v25, 2 }
 0x4d5   : > { %v2942_v59 = vsel %vm2940_vm0, %v2941_v21, %v6365_v9  ;;  %v3330_v46 = vshll.u32 %v6361_v26, %v3328_v6  ;;  %vm2829_vm15 = vweird.f32 %v5822_v58  ;;  %vm2933_vm1 = vweird.f32 %v5828_v36 }
 0x4d6   : > { %v2943_v62 = vsel %vm2936_vm14, %v2939_v54, %v2942_v59  ;;  %v3336_v7 = vor.u32 4788187, %v3335_v16  ;;  %v3113_v22 = vsub.s32 %v3109_v3, %v3112_v45  ;;  %v2840_v12 = vsel %vm2829_vm15, nan, %v2839_v37 }
 0x4d7   : > { %v2944_v56 = vsel %vm2933_vm1, nan, %v2943_v62  ;;  %v3226_v50 = vshll.u32 %v6183_v5, %v6300_v8  ;;  %v3232_v43 = vor.u32 4788187, %v3231_v41  ;;  %v3027_v29 = vcvt.s32.f32 %v3020_v53 }
 0x4d8   : > { %v3363_v15 = vpack.c.bf16 %v2944_v56, %v2840_v12  ;;  %v3332_v11 = vor.u32 %v3331_v63, %v3330_v46  ;;  %v3115_v31 = vsub.s32 0, %v3113_v22  ;;  %v3337_v58 = vand.u32 2147483647, %v3336_v7 }
 0x4d9   : > { %v3228_v9 = vor.u32 %v6335_v0, %v3226_v50  ;;  %v3028_v26 = vmul.f32 %v3027_v29, %v3025_v33  ;;  %v3233_v36 = vand.u32 2147483647, %v3232_v43  ;;  %vm2947_vm6 = vcmp.lt.s32.totalorder %v6048_v20, 0 }
 0x4da   : > { %3671 = vmatpush3.bf16.msra.mxu0 %v3363_v15  ;;  %v3598_v6 = vmin.u32 %v3115_v31, %v3113_v22  ;;  %v3339_v17 = vcvt.s32.f32 %v3332_v11  ;;  %vm4024_vm7 = vmmov 0   ;;  %v3105_v48 = vadd.s32 %v6393_v24, %v6400_v39 }
 0x4db   : > { %3672 = vmatprep.subr.bf16.mxu0 %v6722_v47  ;;  %v3235_v1 = vcvt.s32.f32 %v3228_v9  ;;  %v3029_v49 = vxor.u32 2147483648, %v3028_v26  ;;  %3676 = vmatprep.mubr.msk.bf16.mxu0 %vm4024_vm7, %v6722_v47  ;;  %v6723_v38 = vand.u32 2147483647, %v6048_v20  ;;  %vm3259_vm12 = vcmp.lt.s32.totalorder %v6112_v57, 0 }
 0x4dc   : > { %v3117_v35 = vclz %v3598_v6  ;;  %v3340_v13 = vmul.f32 %v3339_v17, %v3337_v58  ;;  %v3031_v24 = vsub.s32 4, %v6250_v51  ;;  %vm3155_vm10 = vcmp.lt.s32.totalorder %v6001_v18, 0 }
 0x4dd   : > { %v3236_v8 = vmul.f32 %v3235_v1, %v3233_v36  ;;  %v3030_v0 = vsel %vm2947_vm6, %v3029_v49, %v3028_v26  ;;  %vm6450_vm11 = vcmp.le.f32.partialorder %v6723_v38, 0.7853982  ;;  %v6726_v52 = vand.u32 2147483647, %v6112_v57 }
 0x4de   : > { %v3599_v5 = vadd.s32 4294967294, %v3117_v35  ;;  %v3341_v30 = vxor.u32 2147483648, %v3340_v13  ;;  %v3033_v3 = vsel %vm6450_vm11, %v6048_v20, %v3030_v0  ;;  %v6729_v44 = vand.u32 2147483647, %v6001_v18 }
 0x4df   : > { %v3237_v4 = vxor.u32 2147483648, %v3236_v8  ;;  %3934 = vcosq.f32 %v3033_v3  ;;  %vm6466_vm9 = vcmp.le.f32.partialorder %v6726_v52, 0.7853982  ;;  %v3032_v16 = vsel %vm2947_vm6, %v3031_v24, %v6250_v51 }
 0x4e0   : > { %vm3600_vm8 = vcmp.lt.s32.totalorder %v3599_v5, 0  ;;  %v3342_v39 = vsel %vm3259_vm12, %v3341_v30, %v3340_v13  ;;  %3936 = vsinq.f32 %v3033_v3  ;;  %vm6475_vm13 = vcmp.le.f32.partialorder %v6729_v44, 0.7853982 }
 0x4e1   : > { %v3120_v14 = vsel %vm3600_vm8, 0, %v3599_v5  ;;  %v3238_v25 = vsel %vm3155_vm10, %v3237_v4, %v3236_v8  ;;  %v3345_v53 = vsel %vm6466_vm9, %v6112_v57, %v3342_v39  ;;  %v3343_v63 = vsub.s32 4, %v6346_v34 }
 0x4e2   : > { %v3121_v2 = vsub.s32 32, %v3120_v14  ;;  %v3125_v10 = vsub.s32 4294967266, %v3120_v14  ;;  %v3122_v32 = vshll.u32 %v3113_v22, %v3120_v14  ;;  %v3241_v54 = vsel %vm6475_vm13, %v6001_v18, %v3238_v25 }
 0x4e3   : > { %v3135_v45 = vsub.s32 4, %v6430_v60  ;;  %3938 = vcosq.f32 %v3345_v53  ;;  %v3239_v46 = vsub.s32 4, %v6154_v61  ;;  %v3034_v62 = vsel %vm6450_vm11, 0, %v3032_v16  ;;  %v3361_v16 = vld [vmem:[%s6569_s7] sm:$0x3] }
 0x4e4   : > { %v3123_v23 = vshrl.u32 %v3105_v48, %v3121_v2  ;;  %v3126_v27 = vadd.s32 127, %v3125_v10  ;;  %3940 = vsinq.f32 %v3345_v53  ;;  %vm3051_vm3 = vcmp.lt.s32.totalorder %v6240_v19, 0 }
 0x4e5   : > { %3942 = vcosq.f32 %v3241_v54  ;;  %v3344_v7 = vsel %vm3259_vm12, %v3343_v63, %v6346_v34  ;;  %v3136_v22 = vsel %vm3051_vm3, %v3135_v45, %v6430_v60  ;;  %v3038_v12 = vadd.s32 3, %v3034_v62 }
 0x4e6   : > { %v3124_v28 = vor.u32 %v3123_v23, %v3122_v32  ;;  %v3127_v40 = vshll.u32 %v3126_v27, 23  ;;  %3944 = vsinq.f32 %v3241_v54  ;;  %v6732_v56 = vand.u32 2147483647, %v6240_v19 }
 0x4e7   : > { %v3240_v29 = vsel %vm3155_vm10, %v3239_v46, %v6154_v61  ;;  %v3346_v31 = vsel %vm6466_vm9, 0, %v3344_v7  ;;  %v3039_v60 = vand.u32 3, %v3038_v12  ;;  %vm3037_vm9 = vweird.f32 %v6048_v20 }
 0x4e8   : > { %v3128_v41 = vor.u32 4788187, %v3127_v40  ;;  %v3131_v37 = vcvt.s32.f32 %v3124_v28  ;;  %vm3050_vm4 = vcmp.le.f32.partialorder %v6732_v56, 0.7853982  ;;  %v3242_v34 = vsel %vm6475_vm13, 0, %v3240_v29 }
 0x4e9   : > { %v3935_v43 = vpop.eup %3934  ;;  %v3138_v9 = vsel %vm3050_vm4, 0, %v3136_v22  ;;  %v3350_v26 = vadd.s32 3, %v3346_v31  ;;  %v3246_v61 = vadd.s32 3, %v3242_v34  ;;  %vm3041_vm5 = vcmp.eq.s32.totalorder %v3039_v60, 0 }
 0x4ea   : > { %v3129_v33 = vand.u32 2147483647, %v3128_v41  ;;  %v3937_v11 = vpop.eup %3936  ;;  %v3142_v58 = vadd.s32 3, %v3138_v9  ;;  %v3045_v36 = vxor.u32 2147483648, %v3935_v43  ;;  %vm3044_vm0 = vcmp.eq.s32.totalorder %v3039_v60, 2 }
 0x4eb   : > { %v3042_v6 = vxor.u32 2147483648, %v3937_v11  ;;  %v3351_v0 = vand.u32 3, %v3350_v26  ;;  %vm3040_vm14 = vcmp.lt.s32.totalorder %v3039_v60, 2  ;;  %v3247_v48 = vand.u32 3, %v3246_v61 }
 0x4ec   : > { %v3132_v59 = vmul.f32 %v3131_v37, %v3129_v33  ;;  %v3046_v5 = vsel %vm3044_vm0, %v3045_v36, %v3937_v11  ;;  %v3143_v8 = vand.u32 3, %v3142_v58  ;;  %vm3141_vm13 = vweird.f32 %v6240_v19  ;;  %v3370_v33 = vpop.permute.xlu1 %3369 }
 0x4ed   : > { %v3939_v17 = vpop.eup %3938  ;;  %v3043_v13 = vsel %vm3041_vm5, %v3935_v43, %v3042_v6  ;;  %vm3353_vm1 = vcmp.eq.s32.totalorder %v3351_v0, 0  ;;  %vm3356_vm6 = vcmp.eq.s32.totalorder %v3351_v0, 2  ;;  %vm3249_vm11 = vcmp.eq.s32.totalorder %v3247_v48, 0 }
 0x4ee   : > { %v3133_v51 = vxor.u32 2147483648, %v3132_v59  ;;  %v3941_v35 = vpop.eup %3940  ;;  %v3357_v30 = vxor.u32 2147483648, %v3939_v17  ;;  %v3047_v10 = vsel %vm3040_vm14, %v3043_v13, %v3046_v5  ;;  %vm3144_vm15 = vcmp.lt.s32.totalorder %v3143_v8, 2 }
 0x4ef   : > { %v3943_v1 = vpop.eup %3942  ;;  %v3354_v14 = vxor.u32 2147483648, %v3941_v35  ;;  %vm3148_vm8 = vcmp.eq.s32.totalorder %v3143_v8, 2  ;;  %vm3145_vm7 = vcmp.eq.s32.totalorder %v3143_v8, 0  ;;  %vm3252_vm12 = vcmp.eq.s32.totalorder %v3247_v48, 2 }
 0x4f0   : > { %v3134_v50 = vsel %vm3051_vm3, %v3133_v51, %v3132_v59  ;;  %v3945_v49 = vpop.eup %3944  ;;  %v3253_v38 = vxor.u32 2147483648, %v3943_v1  ;;  %v3358_v27 = vsel %vm3356_vm6, %v3357_v30, %v3941_v35  ;;  %vm3352_vm10 = vcmp.lt.s32.totalorder %v3351_v0, 2 }
 0x4f1   : > { %v3137_v15 = vsel %vm3050_vm4, %v6240_v19, %v3134_v50  ;;  %v3250_v4 = vxor.u32 2147483648, %v3945_v49  ;;  %v3355_v23 = vsel %vm3353_vm1, %v3939_v17, %v3354_v14  ;;  %v3048_v21 = vsel %vm3037_vm9, nan, %v3047_v10 }
 0x4f2   : > { %3946 = vcosq.f32 %v3137_v15  ;;  %v3254_v40 = vsel %vm3252_vm12, %v3253_v38, %v3945_v49  ;;  %v3359_v52 = vsel %vm3352_vm10, %v3355_v23, %v3358_v27  ;;  %vm3248_vm3 = vcmp.lt.s32.totalorder %v3247_v48, 2 }
 0x4f3   : > { %3948 = vsinq.f32 %v3137_v15  ;;  %v3251_v28 = vsel %vm3249_vm11, %v3943_v1, %v3250_v4  ;;  %vm3349_vm4 = vweird.f32 %v6112_v57  ;;  %vm3245_vm5 = vweird.f32 %v6001_v18 }
 0x4f4   : > { %v3255_v44 = vsel %vm3248_vm3, %v3251_v28, %v3254_v40  ;;  %v3360_v42 = vsel %vm3349_vm4, nan, %v3359_v52 }
 0x4f5   : > { %v3256_v20 = vsel %vm3245_vm5, nan, %v3255_v44 }
 0x4f6   : > { %v3365_v19 = vpack.c.bf16 %v3360_v42, %v3256_v20 }
 0x4fc   : > { %v3947_v2 = vpop.eup %3946 }
 0x4fd   : > { %v3949_v55 = vpop.eup %3948  ;;  %v3149_v3 = vxor.u32 2147483648, %v3947_v2 }
 0x4fe   : > { %v3146_v32 = vxor.u32 2147483648, %v3949_v55 }
 0x4ff   : > { %v3150_v24 = vsel %vm3148_vm8, %v3149_v3, %v3949_v55 }
 0x500   : > { %v3147_v39 = vsel %vm3145_vm7, %v3947_v2, %v3146_v32 }
 0x501   : > { %v3151_v25 = vsel %vm3144_vm15, %v3147_v39, %v3150_v24 }
 0x502   : > { %v3152_v41 = vsel %vm3141_vm13, nan, %v3151_v25 }
 0x503   : > { %v3364_v53 = vpack.c.bf16 %v3152_v41, %v3048_v21 }
 0x505   : > { %3673 = vmatpush3.bf16.msra.mxu0 %v3364_v53 }
 0x506   : > { %3674 = vmatprep.subr.bf16.mxu0 %v6722_v47 }
 0x509   : > { %3675 = vmatpush3.bf16.msra.mxu0 %v3365_v19 }
 0x50c   : > { %3677 = vmatmul.mubr.msk.bf16.vlgmr.msra.gmra.mrb[8].mxu0 %vm1462_vm2, %v3361_v16 }
 0x5df   : > { %v3409_v57 = vpop.f32.mrb[8].mxu0 }
 0x5e0   : > { %v3410_v18 = vadd.f32 %v3409_v57, %v3370_v33  ;;  %v3678_v37 = vpop.f32.mrb[9].mxu0 }
 0x5e1   : > { %v3412_v47 = vpop.f32.mrb[10].mxu0 }
 0x5e2   : > { %v3610_v54 = vclamps-f32 %v3410_v18, 1.0  ;;  %v3679_v63 = vpop.f32.mrb[11].mxu0 }
 0x5e4   : > { %3417 = vst [vmem:[%s323_s29] sm:$0x7] %v3610_v54 }
 0x5e5   : > { %3963 = shalt.err (!%p3960_p3)
}
 0x5e6   : > { %s3964_s26 = scalar_lea.hbm %s6520_s21, 64  ;;  %s3968_s29 = scalar_lea.hbm %s6571_s9, 256 }
 0x5e7   : > { %p3965_p4 = scmp.ne.s32.totalorder %s6520_s21, %s3964_s26  ;;  %p3969_p9 = scmp.lt.u32.totalorder %s6520_s21, %s6571_s9 }
 0x5e8   : > { %p3970_p10 = scmp.lt.u32.totalorder %s3968_s29, %s3964_s26  ;;  %p3972_p12 = scmp.lt.u32.totalorder %s3964_s26, %s6520_s21 }
 0x5e9   : > { %p3966_p7 = pnand %p3965_p4, %p4114_p5 }
 0x5ea   : > { %p3971_p11 = por %p3970_p10, %p3969_p9 }
 0x5eb   : > { %p3967_p8 = pneg %p3966_p7 }
 0x5ec   : > { %p3973_p13 = por %p3972_p12, %p3971_p11 }
 0x5ee   : > { %p3974_p0 = pnand %p3973_p13, %p3967_p8 }
 0x5f0   : > { %3977 = shalt.err (!%p3974_p0)
}
 0x5f1   : > { %3776 = dma.vmem_to_hbm [thread:$0]  (%p4114_p5), %s6522_s14, 64, %s6520_s21, %s3419_s22  }
 0x5f2 PF: > { %p3782_p1 = scmp.ge.s32.totalorder %s4012_s12, 2  ;;  %s3444_s13 = sand.u32 1, %s4000_s30  }
 0x5f3   : > { %s3445_s23 = scalar_lea.sflag [#allocation3], %s3444_s13 }
 0x5f4   : > { %p3779_p2 = pnand %p3782_p1, %p4118_p6 }
 0x5f6   : > { %3995 = dma.done.wait (!%p3779_p2), %s3445_s23, 64  }
 0x5f7   : > { %3997 = vsyncadd (!%p3779_p2), %s3445_s23, 4294967232  ;;  %p19_p3 = scmp.ge.s32.totalorder %s4101_s15, 6   ;;  %s6733_s30 = smov %s4004_s10 }
 0x5f8   : > { %s6734_s10 = smov %s4008_s11  ;;  %s6735_s11 = smov %s4112_s18 }
 0x5f9   : > { %s6736_s12 = smov %s4101_s15  ;;  %21 = sbr.rel (!%p19_p3) target bundleno = 3 (0x3), region = 91 }
 0x600   :  { %3450 = vsyncpa [#allocation3], 1 }
 0x601   :  { %3452 = vsyncpa [#allocation3 + $0x1], 1 }

</bundles_post_ra>
